<compile_context>
chip_gen: v7x
topology: tpu7x:2x2x1
jax: 0.10.0
libtpu: 0.0.40
codegen_flags: <defaults>
</compile_context>

<pallas_src>
import functools

import jax
import jax.numpy as jnp
from jax.experimental import pallas as pl
from jax.experimental.pallas import tpu as pltpu


def _basic_block_kernel(x_ref, w1_ref, w2_ref, s1_ref, b1_ref, s2_ref, b2_ref,
                        out_ref, pad_s, col_s, *, H, W, C):
    """Fused: relu(bn2(conv2(relu(bn1(conv1(x))))) + x) for one image.

    x_ref   : (1, H, W, C)      compute-dtype NHWC input tile
    w?_ref  : (9*C, C)          im2col weights (HWIO flattened over 3x3xCin)
    s?/b?   : (1, C) f32        folded BN scale / shift
    out_ref : (1, H, W, C)
    pad_s   : (H+2, W+2, C)     shared zero-padded activation scratch (VMEM)
    col_s   : (H*W, 9*C)        im2col slab scratch (VMEM), reused by both convs
    """
    cdt = pad_s.dtype

    def zero_halo():
        # Only the 1-pixel ring; the interior is fully overwritten below.
        zrow = jnp.zeros((1, W + 2, C), cdt)
        zcol = jnp.zeros((H, 1, C), cdt)
        pad_s[pl.ds(0, 1)] = zrow
        pad_s[pl.ds(H + 1, 1)] = zrow
        pad_s[pl.ds(1, H), pl.ds(0, 1)] = zcol
        pad_s[pl.ds(1, H), pl.ds(W + 1, 1)] = zcol

    def conv3x3(w_ref):
        # Build the (H*W, 9*C) im2col slab once, then a single K=9C MXU matmul.
        for dy in range(3):
            for dx in range(3):
                t = dy * 3 + dx
                col_s[:, pl.ds(t * C, C)] = (
                    pad_s[pl.ds(dy, H), pl.ds(dx, W), :].reshape(H * W, C))
        return jnp.dot(col_s[...], w_ref[...],
                       preferred_element_type=jnp.float32)       # (H*W, C) f32

    # ---- conv1 (3x3, stride 1, pad 1) + folded BN1 + ReLU ----
    zero_halo()
    pad_s[pl.ds(1, H), pl.ds(1, W), :] = x_ref[0]
    h = jnp.maximum(conv3x3(w1_ref) * s1_ref[...] + b1_ref[...], 0.0)

    # ---- conv2 (3x3, stride 1, pad 1) + folded BN2 ----
    pad_s[pl.ds(1, H), pl.ds(1, W), :] = h.reshape(H, W, C).astype(cdt)
    out = conv3x3(w2_ref) * s2_ref[...] + b2_ref[...]

    # ---- identity shortcut + final ReLU (f32 epilogue) ----
    resid = x_ref[0].reshape(H * W, C).astype(jnp.float32)
    out = jnp.maximum(out + resid, 0.0)
    out_ref[0] = out.reshape(H, W, C).astype(out_ref.dtype)


def basic_block_forward(x_nchw, p, eps=1e-5, compute_dtype=jnp.bfloat16):
    """BasicBlock forward (stride=1, identity shortcut). NCHW in / NCHW out."""
    B, C, H, W = x_nchw.shape
    out_dtype = x_nchw.dtype

    x = jnp.transpose(x_nchw, (0, 2, 3, 1)).astype(compute_dtype)   # NCHW -> NHWC

    # OIHW -> HWIO -> (9*Cin, Cout) im2col weight; row index = (dy*3+dx)*C + cin.
    w1 = jnp.transpose(p["w1"], (2, 3, 1, 0)).reshape(9 * C, C).astype(compute_dtype)
    w2 = jnp.transpose(p["w2"], (2, 3, 1, 0)).reshape(9 * C, C).astype(compute_dtype)

    inv1 = p["g1"] / jnp.sqrt(p["v1"] + eps)
    inv2 = p["g2"] / jnp.sqrt(p["v2"] + eps)
    s1 = inv1.reshape(1, C).astype(jnp.float32)
    b1 = (p["b1"] - p["m1"] * inv1).reshape(1, C).astype(jnp.float32)
    s2 = inv2.reshape(1, C).astype(jnp.float32)
    b2 = (p["b2"] - p["m2"] * inv2).reshape(1, C).astype(jnp.float32)

    kernel = functools.partial(_basic_block_kernel, H=H, W=W, C=C)

    out_nhwc = pl.pallas_call(
        kernel,
        out_shape=jax.ShapeDtypeStruct((B, H, W, C), out_dtype),
        grid=(B,),
        in_specs=[
            pl.BlockSpec((1, H, W, C), lambda b: (b, 0, 0, 0)),      # x (per image)
            pl.BlockSpec((9 * C, C), lambda b: (0, 0)),              # w1 (resident)
            pl.BlockSpec((9 * C, C), lambda b: (0, 0)),              # w2 (resident)
            pl.BlockSpec((1, C), lambda b: (0, 0)),                  # s1
            pl.BlockSpec((1, C), lambda b: (0, 0)),                  # b1
            pl.BlockSpec((1, C), lambda b: (0, 0)),                  # s2
            pl.BlockSpec((1, C), lambda b: (0, 0)),                  # b2
        ],
        out_specs=pl.BlockSpec((1, H, W, C), lambda b: (b, 0, 0, 0)),
        scratch_shapes=[
            pltpu.VMEM((H + 2, W + 2, C), compute_dtype),            # shared padded act
            pltpu.VMEM((H * W, 9 * C), compute_dtype),               # im2col slab
        ],
        compiler_params=pltpu.CompilerParams(
            dimension_semantics=("parallel",),                       # megacore batch split
            vmem_limit_bytes=32 * 1024 * 1024,
        ),
    )(x, w1, w2, s1, b1, s2, b2)

    return jnp.transpose(out_nhwc, (0, 3, 1, 2)).astype(out_dtype)   # NHWC -> NCHW


def _ref_forward(x_nchw, p, eps=1e-5):
    """Pure-JAX reference (eval-mode BatchNorm), NCHW in / NCHW out."""
    x = jnp.transpose(x_nchw, (0, 2, 3, 1))

    def conv(h, w_oihw):
        return jax.lax.conv_general_dilated(
            h, jnp.transpose(w_oihw, (2, 3, 1, 0)),
            window_strides=(1, 1), padding=((1, 1), (1, 1)),
            dimension_numbers=("NHWC", "HWIO", "NHWC"))

    def bn(h, g, b, m, v):
        return (h - m) / jnp.sqrt(v + eps) * g + b

    h = jax.nn.relu(bn(conv(x, p["w1"]), p["g1"], p["b1"], p["m1"], p["v1"]))
    o = bn(conv(h, p["w2"]), p["g2"], p["b2"], p["m2"], p["v2"]) + x
    o = jax.nn.relu(o)
    return jnp.transpose(o, (0, 3, 1, 2))


def _make_params(key, planes):
    ks = jax.random.split(key, 10)
    f = jnp.float32
    return dict(
        w1=0.1 * jax.random.normal(ks[0], (planes, planes, 3, 3), f),
        g1=1.0 + 0.1 * jax.random.normal(ks[1], (planes,), f),
        b1=0.05 * jax.random.normal(ks[2], (planes,), f),
        m1=0.1 * jax.random.normal(ks[3], (planes,), f),
        v1=1.0 + 0.2 * jax.random.uniform(ks[4], (planes,), dtype=f),
        w2=0.1 * jax.random.normal(ks[5], (planes, planes, 3, 3), f),
        g2=1.0 + 0.1 * jax.random.normal(ks[6], (planes,), f),
        b2=0.05 * jax.random.normal(ks[7], (planes,), f),
        m2=0.1 * jax.random.normal(ks[8], (planes,), f),
        v2=1.0 + 0.2 * jax.random.uniform(ks[9], (planes,), dtype=f),
    )


if __name__ == "__main__":
    key = jax.random.PRNGKey(0)
    kp, kx = jax.random.split(key)

    B, C, H, W = 2, 8, 16, 16          # in_planes = planes = 8, stride = 1
    params = _make_params(kp, C)
    x = jax.random.normal(kx, (B, C, H, W), jnp.float32)

    ref = jax.block_until_ready(_ref_forward(x, params))

    # f32 compute path: tight check against the f32 reference.
    out_f32 = jax.block_until_ready(
        basic_block_forward(x, params, compute_dtype=jnp.float32))
    assert out_f32.shape == (B, C, H, W)
    err32 = float(jnp.max(jnp.abs(out_f32 - ref)))
    assert jnp.allclose(out_f32, ref, atol=3e-2, rtol=3e-2), err32

    # Default bf16 compute path (f32 accumulation + f32 epilogue): loose check.
    out_bf16 = jax.block_until_ready(basic_block_forward(x, params))
    errbf = float(jnp.max(jnp.abs(out_bf16 - ref)))
    assert jnp.allclose(out_bf16, ref, atol=1e-1, rtol=1e-1), errbf

    print("KERNEL_OK")
</pallas_src>

<mosaic_0001>
module attributes {stable_mosaic.version = 11 : i64} {
  func.func @_basic_block_kernel(%arg0: i32, %arg1: memref<1x16x16x8xf32, #tpu.memory_space<vmem>>, %arg2: memref<72x8xf32, #tpu.memory_space<vmem>>, %arg3: memref<72x8xf32, #tpu.memory_space<vmem>>, %arg4: memref<1x8xf32, #tpu.memory_space<vmem>>, %arg5: memref<1x8xf32, #tpu.memory_space<vmem>>, %arg6: memref<1x8xf32, #tpu.memory_space<vmem>>, %arg7: memref<1x8xf32, #tpu.memory_space<vmem>>, %arg8: memref<1x16x16x8xf32, #tpu.memory_space<vmem>>, %arg9: memref<18x18x8xf32, #tpu.memory_space<vmem>>, %arg10: memref<256x72xf32, #tpu.memory_space<vmem>>) attributes {dimension_semantics = [#tpu.dimension_semantics<parallel>], iteration_bounds = array<i64: 2>, scalar_prefetch = 0 : i64, scratch_operands = 2 : i64, tpu.core_type = #tpu.core_type<tc>, window_params = [{transform_indices = @transform_0, window_bounds = array<i64: 1, 16, 16, 8>}, {pipeline_mode = #tpu.pipeline_mode<synchronous>, transform_indices = @transform_1, window_bounds = array<i64: 72, 8>}, {pipeline_mode = #tpu.pipeline_mode<synchronous>, transform_indices = @transform_2, window_bounds = array<i64: 72, 8>}, {pipeline_mode = #tpu.pipeline_mode<synchronous>, transform_indices = @transform_3, window_bounds = array<i64: 1, 8>}, {pipeline_mode = #tpu.pipeline_mode<synchronous>, transform_indices = @transform_4, window_bounds = array<i64: 1, 8>}, {pipeline_mode = #tpu.pipeline_mode<synchronous>, transform_indices = @transform_5, window_bounds = array<i64: 1, 8>}, {pipeline_mode = #tpu.pipeline_mode<synchronous>, transform_indices = @transform_6, window_bounds = array<i64: 1, 8>}, {transform_indices = @transform_7, window_bounds = array<i64: 1, 16, 16, 8>}]} {
    %cst = arith.constant 0.000000e+00 : f32
    %0 = vector.broadcast %cst : f32 to vector<1x18x8xf32>
    %cst_0 = arith.constant 0.000000e+00 : f32
    %1 = vector.broadcast %cst_0 : f32 to vector<16x1x8xf32>
    %c0 = arith.constant 0 : index
    %c0_1 = arith.constant 0 : index
    %c0_2 = arith.constant 0 : index
    %2 = vector.load %arg9[%c0, %c0_1, %c0_2] : memref<18x18x8xf32, #tpu.memory_space<vmem>>, vector<1x18x8xf32>
    tpu.vector_store %arg9[%c0, %c0_1, %c0_2], %0 {strides = array<i32>} : memref<18x18x8xf32, #tpu.memory_space<vmem>>, vector<1x18x8xf32>,
    %c17 = arith.constant 17 : index
    %c0_3 = arith.constant 0 : index
    %c0_4 = arith.constant 0 : index
    %3 = vector.load %arg9[%c17, %c0_3, %c0_4] : memref<18x18x8xf32, #tpu.memory_space<vmem>>, vector<1x18x8xf32>
    tpu.vector_store %arg9[%c17, %c0_3, %c0_4], %0 {strides = array<i32>} : memref<18x18x8xf32, #tpu.memory_space<vmem>>, vector<1x18x8xf32>,
    %c1 = arith.constant 1 : index
    %c0_5 = arith.constant 0 : index
    %c0_6 = arith.constant 0 : index
    %4 = vector.load %arg9[%c1, %c0_5, %c0_6] : memref<18x18x8xf32, #tpu.memory_space<vmem>>, vector<16x1x8xf32>
    tpu.vector_store %arg9[%c1, %c0_5, %c0_6], %1 {strides = array<i32>} : memref<18x18x8xf32, #tpu.memory_space<vmem>>, vector<16x1x8xf32>,
    %c1_7 = arith.constant 1 : index
    %c17_8 = arith.constant 17 : index
    %c0_9 = arith.constant 0 : index
    %5 = vector.load %arg9[%c1_7, %c17_8, %c0_9] : memref<18x18x8xf32, #tpu.memory_space<vmem>>, vector<16x1x8xf32>
    tpu.vector_store %arg9[%c1_7, %c17_8, %c0_9], %1 {strides = array<i32>} : memref<18x18x8xf32, #tpu.memory_space<vmem>>, vector<16x1x8xf32>,
    %c0_10 = arith.constant 0 : index
    %c0_11 = arith.constant 0 : index
    %c0_12 = arith.constant 0 : index
    %c0_13 = arith.constant 0 : index
    %6 = vector.load %arg1[%c0_10, %c0_11, %c0_12, %c0_13] : memref<1x16x16x8xf32, #tpu.memory_space<vmem>>, vector<1x16x16x8xf32>
    %7 = vector.shape_cast %6 : vector<1x16x16x8xf32> to vector<16x16x8xf32>
    %c1_14 = arith.constant 1 : index
    %c1_15 = arith.constant 1 : index
    %c0_16 = arith.constant 0 : index
    %8 = vector.load %arg9[%c1_14, %c1_15, %c0_16] : memref<18x18x8xf32, #tpu.memory_space<vmem>>, vector<16x16x8xf32>
    tpu.vector_store %arg9[%c1_14, %c1_15, %c0_16], %7 {strides = array<i32>} : memref<18x18x8xf32, #tpu.memory_space<vmem>>, vector<16x16x8xf32>,
    %c0_17 = arith.constant 0 : index
    %c0_18 = arith.constant 0 : index
    %c0_19 = arith.constant 0 : index
    %9 = vector.load %arg9[%c0_17, %c0_18, %c0_19] : memref<18x18x8xf32, #tpu.memory_space<vmem>>, vector<16x16x8xf32>
    %10 = vector.shape_cast %9 : vector<16x16x8xf32> to vector<256x8xf32>
    %c0_20 = arith.constant 0 : index
    %c0_21 = arith.constant 0 : index
    %11 = vector.load %arg10[%c0_20, %c0_21] : memref<256x72xf32, #tpu.memory_space<vmem>>, vector<256x8xf32>
    tpu.vector_store %arg10[%c0_20, %c0_21], %10 {strides = array<i32>} : memref<256x72xf32, #tpu.memory_space<vmem>>, vector<256x8xf32>,
    %c0_22 = arith.constant 0 : index
    %c1_23 = arith.constant 1 : index
    %c0_24 = arith.constant 0 : index
    %12 = vector.load %arg9[%c0_22, %c1_23, %c0_24] : memref<18x18x8xf32, #tpu.memory_space<vmem>>, vector<16x16x8xf32>
    %13 = vector.shape_cast %12 : vector<16x16x8xf32> to vector<256x8xf32>
    %c0_25 = arith.constant 0 : index
    %c8 = arith.constant 8 : index
    %14 = vector.load %arg10[%c0_25, %c8] : memref<256x72xf32, #tpu.memory_space<vmem>>, vector<256x8xf32>
    tpu.vector_store %arg10[%c0_25, %c8], %13 {strides = array<i32>} : memref<256x72xf32, #tpu.memory_space<vmem>>, vector<256x8xf32>,
    %c0_26 = arith.constant 0 : index
    %c2 = arith.constant 2 : index
    %c0_27 = arith.constant 0 : index
    %15 = vector.load %arg9[%c0_26, %c2, %c0_27] : memref<18x18x8xf32, #tpu.memory_space<vmem>>, vector<16x16x8xf32>
    %16 = vector.shape_cast %15 : vector<16x16x8xf32> to vector<256x8xf32>
    %c0_28 = arith.constant 0 : index
    %c16 = arith.constant 16 : index
    %17 = vector.load %arg10[%c0_28, %c16] : memref<256x72xf32, #tpu.memory_space<vmem>>, vector<256x8xf32>
    tpu.vector_store %arg10[%c0_28, %c16], %16 {strides = array<i32>} : memref<256x72xf32, #tpu.memory_space<vmem>>, vector<256x8xf32>,
    %c1_29 = arith.constant 1 : index
    %c0_30 = arith.constant 0 : index
    %c0_31 = arith.constant 0 : index
    %18 = vector.load %arg9[%c1_29, %c0_30, %c0_31] : memref<18x18x8xf32, #tpu.memory_space<vmem>>, vector<16x16x8xf32>
    %19 = vector.shape_cast %18 : vector<16x16x8xf32> to vector<256x8xf32>
    %c0_32 = arith.constant 0 : index
    %c24 = arith.constant 24 : index
    %20 = vector.load %arg10[%c0_32, %c24] : memref<256x72xf32, #tpu.memory_space<vmem>>, vector<256x8xf32>
    tpu.vector_store %arg10[%c0_32, %c24], %19 {strides = array<i32>} : memref<256x72xf32, #tpu.memory_space<vmem>>, vector<256x8xf32>,
    %c1_33 = arith.constant 1 : index
    %c1_34 = arith.constant 1 : index
    %c0_35 = arith.constant 0 : index
    %21 = vector.load %arg9[%c1_33, %c1_34, %c0_35] : memref<18x18x8xf32, #tpu.memory_space<vmem>>, vector<16x16x8xf32>
    %22 = vector.shape_cast %21 : vector<16x16x8xf32> to vector<256x8xf32>
    %c0_36 = arith.constant 0 : index
    %c32 = arith.constant 32 : index
    %23 = vector.load %arg10[%c0_36, %c32] : memref<256x72xf32, #tpu.memory_space<vmem>>, vector<256x8xf32>
    tpu.vector_store %arg10[%c0_36, %c32], %22 {strides = array<i32>} : memref<256x72xf32, #tpu.memory_space<vmem>>, vector<256x8xf32>,
    %c1_37 = arith.constant 1 : index
    %c2_38 = arith.constant 2 : index
    %c0_39 = arith.constant 0 : index
    %24 = vector.load %arg9[%c1_37, %c2_38, %c0_39] : memref<18x18x8xf32, #tpu.memory_space<vmem>>, vector<16x16x8xf32>
    %25 = vector.shape_cast %24 : vector<16x16x8xf32> to vector<256x8xf32>
    %c0_40 = arith.constant 0 : index
    %c40 = arith.constant 40 : index
    %26 = vector.load %arg10[%c0_40, %c40] : memref<256x72xf32, #tpu.memory_space<vmem>>, vector<256x8xf32>
    tpu.vector_store %arg10[%c0_40, %c40], %25 {strides = array<i32>} : memref<256x72xf32, #tpu.memory_space<vmem>>, vector<256x8xf32>,
    %c2_41 = arith.constant 2 : index
    %c0_42 = arith.constant 0 : index
    %c0_43 = arith.constant 0 : index
    %27 = vector.load %arg9[%c2_41, %c0_42, %c0_43] : memref<18x18x8xf32, #tpu.memory_space<vmem>>, vector<16x16x8xf32>
    %28 = vector.shape_cast %27 : vector<16x16x8xf32> to vector<256x8xf32>
    %c0_44 = arith.constant 0 : index
    %c48 = arith.constant 48 : index
    %29 = vector.load %arg10[%c0_44, %c48] : memref<256x72xf32, #tpu.memory_space<vmem>>, vector<256x8xf32>
    tpu.vector_store %arg10[%c0_44, %c48], %28 {strides = array<i32>} : memref<256x72xf32, #tpu.memory_space<vmem>>, vector<256x8xf32>,
    %c2_45 = arith.constant 2 : index
    %c1_46 = arith.constant 1 : index
    %c0_47 = arith.constant 0 : index
    %30 = vector.load %arg9[%c2_45, %c1_46, %c0_47] : memref<18x18x8xf32, #tpu.memory_space<vmem>>, vector<16x16x8xf32>
    %31 = vector.shape_cast %30 : vector<16x16x8xf32> to vector<256x8xf32>
    %c0_48 = arith.constant 0 : index
    %c56 = arith.constant 56 : index
    %32 = vector.load %arg10[%c0_48, %c56] : memref<256x72xf32, #tpu.memory_space<vmem>>, vector<256x8xf32>
    tpu.vector_store %arg10[%c0_48, %c56], %31 {strides = array<i32>} : memref<256x72xf32, #tpu.memory_space<vmem>>, vector<256x8xf32>,
    %c2_49 = arith.constant 2 : index
    %c2_50 = arith.constant 2 : index
    %c0_51 = arith.constant 0 : index
    %33 = vector.load %arg9[%c2_49, %c2_50, %c0_51] : memref<18x18x8xf32, #tpu.memory_space<vmem>>, vector<16x16x8xf32>
    %34 = vector.shape_cast %33 : vector<16x16x8xf32> to vector<256x8xf32>
    %c0_52 = arith.constant 0 : index
    %c64 = arith.constant 64 : index
    %35 = vector.load %arg10[%c0_52, %c64] : memref<256x72xf32, #tpu.memory_space<vmem>>, vector<256x8xf32>
    tpu.vector_store %arg10[%c0_52, %c64], %34 {strides = array<i32>} : memref<256x72xf32, #tpu.memory_space<vmem>>, vector<256x8xf32>,
    %c0_53 = arith.constant 0 : index
    %c0_54 = arith.constant 0 : index
    %36 = vector.load %arg10[%c0_53, %c0_54] : memref<256x72xf32, #tpu.memory_space<vmem>>, vector<256x72xf32>
    %c0_55 = arith.constant 0 : index
    %c0_56 = arith.constant 0 : index
    %37 = vector.load %arg2[%c0_55, %c0_56] : memref<72x8xf32, #tpu.memory_space<vmem>>, vector<72x8xf32>
    %cst_57 = arith.constant dense<0.000000e+00> : vector<256x8xf32>
    %38 = tpu.matmul %36, %37, %cst_57 {dimension_numbers = #tpu.dot_dimension_numbers<[1], [0], [0], [1], [0, 0, 1, 1], [], []>} : vector<256x72xf32>, vector<72x8xf32>, vector<256x8xf32> -> vector<256x8xf32>
    %c0_58 = arith.constant 0 : index
    %c0_59 = arith.constant 0 : index
    %39 = vector.load %arg4[%c0_58, %c0_59] : memref<1x8xf32, #tpu.memory_space<vmem>>, vector<1x8xf32>
    %40 = vector.broadcast %39 : vector<1x8xf32> to vector<256x8xf32>
    %41 = arith.mulf %38, %40 : vector<256x8xf32>
    %c0_60 = arith.constant 0 : index
    %c0_61 = arith.constant 0 : index
    %42 = vector.load %arg5[%c0_60, %c0_61] : memref<1x8xf32, #tpu.memory_space<vmem>>, vector<1x8xf32>
    %43 = vector.broadcast %42 : vector<1x8xf32> to vector<256x8xf32>
    %44 = arith.addf %41, %43 : vector<256x8xf32>
    %cst_62 = arith.constant 0.000000e+00 : f32
    %45 = vector.broadcast %cst_62 : f32 to vector<256x8xf32>
    %46 = arith.maximumf %44, %45 : vector<256x8xf32>
    %47 = vector.shape_cast %46 : vector<256x8xf32> to vector<16x16x8xf32>
    %c1_63 = arith.constant 1 : index
    %c1_64 = arith.constant 1 : index
    %c0_65 = arith.constant 0 : index
    %48 = vector.load %arg9[%c1_63, %c1_64, %c0_65] : memref<18x18x8xf32, #tpu.memory_space<vmem>>, vector<16x16x8xf32>
    tpu.vector_store %arg9[%c1_63, %c1_64, %c0_65], %47 {strides = array<i32>} : memref<18x18x8xf32, #tpu.memory_space<vmem>>, vector<16x16x8xf32>,
    %c0_66 = arith.constant 0 : index
    %c0_67 = arith.constant 0 : index
    %c0_68 = arith.constant 0 : index
    %49 = vector.load %arg9[%c0_66, %c0_67, %c0_68] : memref<18x18x8xf32, #tpu.memory_space<vmem>>, vector<16x16x8xf32>
    %50 = vector.shape_cast %49 : vector<16x16x8xf32> to vector<256x8xf32>
    %c0_69 = arith.constant 0 : index
    %c0_70 = arith.constant 0 : index
    %51 = vector.load %arg10[%c0_69, %c0_70] : memref<256x72xf32, #tpu.memory_space<vmem>>, vector<256x8xf32>
    tpu.vector_store %arg10[%c0_69, %c0_70], %50 {strides = array<i32>} : memref<256x72xf32, #tpu.memory_space<vmem>>, vector<256x8xf32>,
    %c0_71 = arith.constant 0 : index
    %c1_72 = arith.constant 1 : index
    %c0_73 = arith.constant 0 : index
    %52 = vector.load %arg9[%c0_71, %c1_72, %c0_73] : memref<18x18x8xf32, #tpu.memory_space<vmem>>, vector<16x16x8xf32>
    %53 = vector.shape_cast %52 : vector<16x16x8xf32> to vector<256x8xf32>
    %c0_74 = arith.constant 0 : index
    %c8_75 = arith.constant 8 : index
    %54 = vector.load %arg10[%c0_74, %c8_75] : memref<256x72xf32, #tpu.memory_space<vmem>>, vector<256x8xf32>
    tpu.vector_store %arg10[%c0_74, %c8_75], %53 {strides = array<i32>} : memref<256x72xf32, #tpu.memory_space<vmem>>, vector<256x8xf32>,
    %c0_76 = arith.constant 0 : index
    %c2_77 = arith.constant 2 : index
    %c0_78 = arith.constant 0 : index
    %55 = vector.load %arg9[%c0_76, %c2_77, %c0_78] : memref<18x18x8xf32, #tpu.memory_space<vmem>>, vector<16x16x8xf32>
    %56 = vector.shape_cast %55 : vector<16x16x8xf32> to vector<256x8xf32>
    %c0_79 = arith.constant 0 : index
    %c16_80 = arith.constant 16 : index
    %57 = vector.load %arg10[%c0_79, %c16_80] : memref<256x72xf32, #tpu.memory_space<vmem>>, vector<256x8xf32>
    tpu.vector_store %arg10[%c0_79, %c16_80], %56 {strides = array<i32>} : memref<256x72xf32, #tpu.memory_space<vmem>>, vector<256x8xf32>,
    %c1_81 = arith.constant 1 : index
    %c0_82 = arith.constant 0 : index
    %c0_83 = arith.constant 0 : index
    %58 = vector.load %arg9[%c1_81, %c0_82, %c0_83] : memref<18x18x8xf32, #tpu.memory_space<vmem>>, vector<16x16x8xf32>
    %59 = vector.shape_cast %58 : vector<16x16x8xf32> to vector<256x8xf32>
    %c0_84 = arith.constant 0 : index
    %c24_85 = arith.constant 24 : index
    %60 = vector.load %arg10[%c0_84, %c24_85] : memref<256x72xf32, #tpu.memory_space<vmem>>, vector<256x8xf32>
    tpu.vector_store %arg10[%c0_84, %c24_85], %59 {strides = array<i32>} : memref<256x72xf32, #tpu.memory_space<vmem>>, vector<256x8xf32>,
    %c1_86 = arith.constant 1 : index
    %c1_87 = arith.constant 1 : index
    %c0_88 = arith.constant 0 : index
    %61 = vector.load %arg9[%c1_86, %c1_87, %c0_88] : memref<18x18x8xf32, #tpu.memory_space<vmem>>, vector<16x16x8xf32>
    %62 = vector.shape_cast %61 : vector<16x16x8xf32> to vector<256x8xf32>
    %c0_89 = arith.constant 0 : index
    %c32_90 = arith.constant 32 : index
    %63 = vector.load %arg10[%c0_89, %c32_90] : memref<256x72xf32, #tpu.memory_space<vmem>>, vector<256x8xf32>
    tpu.vector_store %arg10[%c0_89, %c32_90], %62 {strides = array<i32>} : memref<256x72xf32, #tpu.memory_space<vmem>>, vector<256x8xf32>,
    %c1_91 = arith.constant 1 : index
    %c2_92 = arith.constant 2 : index
    %c0_93 = arith.constant 0 : index
    %64 = vector.load %arg9[%c1_91, %c2_92, %c0_93] : memref<18x18x8xf32, #tpu.memory_space<vmem>>, vector<16x16x8xf32>
    %65 = vector.shape_cast %64 : vector<16x16x8xf32> to vector<256x8xf32>
    %c0_94 = arith.constant 0 : index
    %c40_95 = arith.constant 40 : index
    %66 = vector.load %arg10[%c0_94, %c40_95] : memref<256x72xf32, #tpu.memory_space<vmem>>, vector<256x8xf32>
    tpu.vector_store %arg10[%c0_94, %c40_95], %65 {strides = array<i32>} : memref<256x72xf32, #tpu.memory_space<vmem>>, vector<256x8xf32>,
    %c2_96 = arith.constant 2 : index
    %c0_97 = arith.constant 0 : index
    %c0_98 = arith.constant 0 : index
    %67 = vector.load %arg9[%c2_96, %c0_97, %c0_98] : memref<18x18x8xf32, #tpu.memory_space<vmem>>, vector<16x16x8xf32>
    %68 = vector.shape_cast %67 : vector<16x16x8xf32> to vector<256x8xf32>
    %c0_99 = arith.constant 0 : index
    %c48_100 = arith.constant 48 : index
    %69 = vector.load %arg10[%c0_99, %c48_100] : memref<256x72xf32, #tpu.memory_space<vmem>>, vector<256x8xf32>
    tpu.vector_store %arg10[%c0_99, %c48_100], %68 {strides = array<i32>} : memref<256x72xf32, #tpu.memory_space<vmem>>, vector<256x8xf32>,
    %c2_101 = arith.constant 2 : index
    %c1_102 = arith.constant 1 : index
    %c0_103 = arith.constant 0 : index
    %70 = vector.load %arg9[%c2_101, %c1_102, %c0_103] : memref<18x18x8xf32, #tpu.memory_space<vmem>>, vector<16x16x8xf32>
    %71 = vector.shape_cast %70 : vector<16x16x8xf32> to vector<256x8xf32>
    %c0_104 = arith.constant 0 : index
    %c56_105 = arith.constant 56 : index
    %72 = vector.load %arg10[%c0_104, %c56_105] : memref<256x72xf32, #tpu.memory_space<vmem>>, vector<256x8xf32>
    tpu.vector_store %arg10[%c0_104, %c56_105], %71 {strides = array<i32>} : memref<256x72xf32, #tpu.memory_space<vmem>>, vector<256x8xf32>,
    %c2_106 = arith.constant 2 : index
    %c2_107 = arith.constant 2 : index
    %c0_108 = arith.constant 0 : index
    %73 = vector.load %arg9[%c2_106, %c2_107, %c0_108] : memref<18x18x8xf32, #tpu.memory_space<vmem>>, vector<16x16x8xf32>
    %74 = vector.shape_cast %73 : vector<16x16x8xf32> to vector<256x8xf32>
    %c0_109 = arith.constant 0 : index
    %c64_110 = arith.constant 64 : index
    %75 = vector.load %arg10[%c0_109, %c64_110] : memref<256x72xf32, #tpu.memory_space<vmem>>, vector<256x8xf32>
    tpu.vector_store %arg10[%c0_109, %c64_110], %74 {strides = array<i32>} : memref<256x72xf32, #tpu.memory_space<vmem>>, vector<256x8xf32>,
    %c0_111 = arith.constant 0 : index
    %c0_112 = arith.constant 0 : index
    %76 = vector.load %arg10[%c0_111, %c0_112] : memref<256x72xf32, #tpu.memory_space<vmem>>, vector<256x72xf32>
    %c0_113 = arith.constant 0 : index
    %c0_114 = arith.constant 0 : index
    %77 = vector.load %arg3[%c0_113, %c0_114] : memref<72x8xf32, #tpu.memory_space<vmem>>, vector<72x8xf32>
    %cst_115 = arith.constant dense<0.000000e+00> : vector<256x8xf32>
    %78 = tpu.matmul %76, %77, %cst_115 {dimension_numbers = #tpu.dot_dimension_numbers<[1], [0], [0], [1], [0, 0, 1, 1], [], []>} : vector<256x72xf32>, vector<72x8xf32>, vector<256x8xf32> -> vector<256x8xf32>
    %c0_116 = arith.constant 0 : index
    %c0_117 = arith.constant 0 : index
    %79 = vector.load %arg6[%c0_116, %c0_117] : memref<1x8xf32, #tpu.memory_space<vmem>>, vector<1x8xf32>
    %80 = vector.broadcast %79 : vector<1x8xf32> to vector<256x8xf32>
    %81 = arith.mulf %78, %80 : vector<256x8xf32>
    %c0_118 = arith.constant 0 : index
    %c0_119 = arith.constant 0 : index
    %82 = vector.load %arg7[%c0_118, %c0_119] : memref<1x8xf32, #tpu.memory_space<vmem>>, vector<1x8xf32>
    %83 = vector.broadcast %82 : vector<1x8xf32> to vector<256x8xf32>
    %84 = arith.addf %81, %83 : vector<256x8xf32>
    %c0_120 = arith.constant 0 : index
    %c0_121 = arith.constant 0 : index
    %c0_122 = arith.constant 0 : index
    %c0_123 = arith.constant 0 : index
    %85 = vector.load %arg1[%c0_120, %c0_121, %c0_122, %c0_123] : memref<1x16x16x8xf32, #tpu.memory_space<vmem>>, vector<1x16x16x8xf32>
    %86 = vector.shape_cast %85 : vector<1x16x16x8xf32> to vector<16x16x8xf32>
    %87 = vector.shape_cast %86 : vector<16x16x8xf32> to vector<256x8xf32>
    %88 = arith.addf %84, %87 : vector<256x8xf32>
    %cst_124 = arith.constant 0.000000e+00 : f32
    %89 = vector.broadcast %cst_124 : f32 to vector<256x8xf32>
    %90 = arith.maximumf %88, %89 : vector<256x8xf32>
    %91 = vector.shape_cast %90 : vector<256x8xf32> to vector<16x16x8xf32>
    %c0_125 = arith.constant 0 : index
    %c0_126 = arith.constant 0 : index
    %c0_127 = arith.constant 0 : index
    %c0_128 = arith.constant 0 : index
    %92 = vector.load %arg8[%c0_125, %c0_126, %c0_127, %c0_128] : memref<1x16x16x8xf32, #tpu.memory_space<vmem>>, vector<1x16x16x8xf32>
    %93 = vector.shape_cast %92 : vector<1x16x16x8xf32> to vector<16x16x8xf32>
    %94 = vector.shape_cast %91 : vector<16x16x8xf32> to vector<1x16x16x8xf32>
    tpu.vector_store %arg8[%c0_125, %c0_126, %c0_127, %c0_128], %94 {strides = array<i32>} : memref<1x16x16x8xf32, #tpu.memory_space<vmem>>, vector<1x16x16x8xf32>,
    return
  }
  func.func @transform_0(%arg0: i32) -> (i32, i32, i32, i32) {
    %c0_i32 = arith.constant 0 : i32
    %c0_i32_0 = arith.constant 0 : i32
    %c0_i32_1 = arith.constant 0 : i32
    %c0_i32_2 = arith.constant 0 : i32
    return %arg0, %c0_i32, %c0_i32_0, %c0_i32_1 : i32, i32, i32, i32
  }
  func.func @transform_1(%arg0: i32) -> (i32, i32) {
    %c0_i32 = arith.constant 0 : i32
    %c0_i32_0 = arith.constant 0 : i32
    %c0_i32_1 = arith.constant 0 : i32
    return %c0_i32, %c0_i32_0 : i32, i32
  }
  func.func @transform_2(%arg0: i32) -> (i32, i32) {
    %c0_i32 = arith.constant 0 : i32
    %c0_i32_0 = arith.constant 0 : i32
    %c0_i32_1 = arith.constant 0 : i32
    return %c0_i32, %c0_i32_0 : i32, i32
  }
  func.func @transform_3(%arg0: i32) -> (i32, i32) {
    %c0_i32 = arith.constant 0 : i32
    %c0_i32_0 = arith.constant 0 : i32
    %c0_i32_1 = arith.constant 0 : i32
    return %c0_i32, %c0_i32_0 : i32, i32
  }
  func.func @transform_4(%arg0: i32) -> (i32, i32) {
    %c0_i32 = arith.constant 0 : i32
    %c0_i32_0 = arith.constant 0 : i32
    %c0_i32_1 = arith.constant 0 : i32
    return %c0_i32, %c0_i32_0 : i32, i32
  }
  func.func @transform_5(%arg0: i32) -> (i32, i32) {
    %c0_i32 = arith.constant 0 : i32
    %c0_i32_0 = arith.constant 0 : i32
    %c0_i32_1 = arith.constant 0 : i32
    return %c0_i32, %c0_i32_0 : i32, i32
  }
  func.func @transform_6(%arg0: i32) -> (i32, i32) {
    %c0_i32 = arith.constant 0 : i32
    %c0_i32_0 = arith.constant 0 : i32
    %c0_i32_1 = arith.constant 0 : i32
    return %c0_i32, %c0_i32_0 : i32, i32
  }
  func.func @transform_7(%arg0: i32) -> (i32, i32, i32, i32) {
    %c0_i32 = arith.constant 0 : i32
    %c0_i32_0 = arith.constant 0 : i32
    %c0_i32_1 = arith.constant 0 : i32
    %c0_i32_2 = arith.constant 0 : i32
    return %arg0, %c0_i32, %c0_i32_0, %c0_i32_1 : i32, i32, i32, i32
  }
}

</mosaic_0001>

<bundles_post_ra>
// kernel: tpu_custom_call.1
= control target key start
LH: loop header
LB: loop body
LE: loop exit
PB: predicated region body
PF: predicated region fallthrough
CT: control target
= control target key end

     0   :  { %s5124_s24 = smov 0   ;;  %s7391_s0 = inlined_call_operand.vmem [shape: f32[2,16,16,8], index: 0, kind: input, shape index: {}]   ;;  %s7392_s1 = inlined_call_operand.vmem [shape: f32[72,8], index: 1, kind: input, shape index: {}]   ;;  %s7393_s2 = inlined_call_operand.vmem [shape: f32[72,8], index: 2, kind: input, shape index: {}]   ;;  %s7394_s3 = inlined_call_operand.vmem [shape: f32[1,8], index: 3, kind: input, shape index: {}]   ;;  %s7395_s4 = inlined_call_operand.vmem [shape: f32[1,8], index: 4, kind: input, shape index: {}]   ;;  %s7396_s5 = inlined_call_operand.vmem [shape: f32[1,8], index: 5, kind: input, shape index: {}]   ;;  %s7397_s6 = inlined_call_operand.vmem [shape: f32[1,8], index: 6, kind: input, shape index: {}]   ;;  %s7398_s7 = inlined_call_operand.vmem [shape: f32[2,16,16,8], index: 7, kind: output, shape index: {}]  }
   0x1 LB: > { %s4723_s25 = sadd.s32 4294967295, %s5073_s24   ;;  %p4727_p0 = scmp.ge.s32.totalorder %s5073_s24, 1  ;;  %s5073_s24 = sphi %s5124_s24, %s17_s24  }
   0x2   : > { %p237_p1 = scmp.lt.s32.totalorder %s5073_s24, 3 }
   0x4   : > { %p238_p2 = pnand %p4727_p0, %p237_p1 }
   0x6   : > { %241 = sbr.rel (%p238_p2) target bundleno = 1681 (0x691), region = 48 }
   0xd   : > { %vm279_vm0 = vcmask 64512   ;;  %p5134_p3 = scmp.lt.s32.totalorder %s4723_s25, 1  ;;  %vm282_vm1 = vcmask 58368   ;;  %vm289_vm2 = vcmask 57344   ;;  %v5075_v0 = vmov 0.0   ;;  %s5076_s8 = smov 8  }
   0xe   : > { %280 = vst.msk [vmem:[#allocation2] sm:$0xff] %vm279_vm0, %v5075_v0  ;;  %281 = vst.msk [vmem:[#allocation2 + $0x8] sm:$0xff] %vm279_vm0, %v5075_v0  ;;  %s5077_s9 = smov 16   ;;  %vm610_vm3 = vcmask 130112   ;;  %s5078_s10 = smov 24   ;;  %vm803_vm4 = vcmask 195712  }
   0xf   : > { %285 = vst.msk [vmem:[#allocation2 + $0x198] sm:$0xff] %vm279_vm0, %v5075_v0  ;;  %286 = vst.msk [vmem:[#allocation2 + $0x1a0] sm:$0xff] %vm279_vm0, %v5075_v0  ;;  %s7491_s25 = smov (!%p5134_p3, %s4723_s25), 1  ;;  %s5079_s11 = smov 32   ;;  %vm996_vm5 = vcmask 261312   ;;  %vm1189_vm6 = vcmask 326912  }
  0x10   : > { %283 = vst.msk [vmem:[#allocation2 + $0x10] sm:$0x3] %vm282_vm1, %v5075_v0  ;;  %287 = vst.msk [vmem:[#allocation2 + $0x1a8] sm:$0x3] %vm282_vm1, %v5075_v0  ;;  %s4802_s27 = sshll.u32 %s7491_s25, 8  ;;  %s5080_s12 = smov 40  }
  0x11   : > { %306 = vst.msk [vmem:[#allocation2 + $0x29] sm:$0x1] %vm289_vm2, %v5075_v0  ;;  %290 = vst.msk [vmem:[#allocation2 + $0x18] sm:$0x1] %vm289_vm2, %v5075_v0  ;;  %s5186_s30 = scalar_lea.vmem %s7391_s0, %s4802_s27  ;;  %s5081_s13 = smov 48   ;;  %vm1382_vm7 = vcmask 392512  }
  0x12   : > { %291 = vst.msk [vmem:[#allocation2 + $0x30] sm:$0x1] %vm289_vm2, %v5075_v0  ;;  %292 = vst.msk [vmem:[#allocation2 + $0x48] sm:$0x1] %vm289_vm2, %v5075_v0  ;;  %v322_v1 = vld [vmem:[%s5186_s30] sm:$0xff]  ;;  %v323_v2 = vld [vmem:[%s5186_s30 + $0x8] sm:$0xff]  ;;  %s7172_s15 = scalar_lea.vmem %s7398_s7, %s4802_s27 }
  0x13   : > { %293 = vst.msk [vmem:[#allocation2 + $0x60] sm:$0x1] %vm289_vm2, %v5075_v0  ;;  %294 = vst.msk [vmem:[#allocation2 + $0x78] sm:$0x1] %vm289_vm2, %v5075_v0  ;;  %v324_v3 = vld [vmem:[%s5186_s30 + $0x10] sm:$0xff]  ;;  %v325_v4 = vld [vmem:[%s5186_s30 + $0x18] sm:$0xff] }
  0x14   : > { %295 = vst.msk [vmem:[#allocation2 + $0x90] sm:$0x1] %vm289_vm2, %v5075_v0  ;;  %296 = vst.msk [vmem:[#allocation2 + $0xa8] sm:$0x1] %vm289_vm2, %v5075_v0  ;;  %v326_v5 = vld [vmem:[%s5186_s30 + $0x20] sm:$0xff]  ;;  %v327_v6 = vld [vmem:[%s5186_s30 + $0x28] sm:$0xff] }
  0x15   : > { %297 = vst.msk [vmem:[#allocation2 + $0xc0] sm:$0x1] %vm289_vm2, %v5075_v0  ;;  %298 = vst.msk [vmem:[#allocation2 + $0xd8] sm:$0x1] %vm289_vm2, %v5075_v0  ;;  %v450_v7 = vld [vmem:[#allocation2 + $0x1] sm:$0xff]  ;;  %v328_v9 = vld [vmem:[%s5186_s30 + $0x30] sm:$0xff] }
  0x16   : > { %299 = vst.msk [vmem:[#allocation2 + $0xf0] sm:$0x1] %vm289_vm2, %v5075_v0  ;;  %300 = vst.msk [vmem:[#allocation2 + $0x108] sm:$0x1] %vm289_vm2, %v5075_v0  ;;  %514 = vrot.lane.b32.xlu0 %v450_v7, %s5076_s8  ;;  %v329_v10 = vld [vmem:[%s5186_s30 + $0x38] sm:$0xff]  ;;  %v330_v11 = vld [vmem:[%s5186_s30 + $0x40] sm:$0xff] }
  0x17   : > { %301 = vst.msk [vmem:[#allocation2 + $0x120] sm:$0x1] %vm289_vm2, %v5075_v0  ;;  %302 = vst.msk [vmem:[#allocation2 + $0x138] sm:$0x1] %vm289_vm2, %v5075_v0  ;;  %v451_v8 = vld [vmem:[#allocation2 + $0x9] sm:$0xff]  ;;  %v333_v14 = vld [vmem:[%s5186_s30 + $0x58] sm:$0xff] }
  0x18   : > { %303 = vst.msk [vmem:[#allocation2 + $0x150] sm:$0x1] %vm289_vm2, %v5075_v0  ;;  %304 = vst.msk [vmem:[#allocation2 + $0x168] sm:$0x1] %vm289_vm2, %v5075_v0  ;;  %v331_v12 = vld [vmem:[%s5186_s30 + $0x48] sm:$0xff]  ;;  %v332_v13 = vld [vmem:[%s5186_s30 + $0x50] sm:$0xff] }
  0x19   : > { %305 = vst.msk [vmem:[#allocation2 + $0x180] sm:$0x1] %vm289_vm2, %v5075_v0  ;;  %307 = vst.msk [vmem:[#allocation2 + $0x41] sm:$0x1] %vm289_vm2, %v5075_v0  ;;  %v334_v15 = vld [vmem:[%s5186_s30 + $0x60] sm:$0xff]  ;;  %v335_v16 = vld [vmem:[%s5186_s30 + $0x68] sm:$0xff] }
  0x1a   : > { %308 = vst.msk [vmem:[#allocation2 + $0x59] sm:$0x1] %vm289_vm2, %v5075_v0  ;;  %309 = vst.msk [vmem:[#allocation2 + $0x71] sm:$0x1] %vm289_vm2, %v5075_v0  ;;  %v336_v17 = vld [vmem:[%s5186_s30 + $0x70] sm:$0xff]  ;;  %v337_v18 = vld [vmem:[%s5186_s30 + $0x78] sm:$0xff]  ;;  %516 = vrot.lane.b32.xlu0 %v451_v8, %s5076_s8 }
  0x1b   : > { %310 = vst.msk [vmem:[#allocation2 + $0x89] sm:$0x1] %vm289_vm2, %v5075_v0  ;;  %311 = vst.msk [vmem:[#allocation2 + $0xa1] sm:$0x1] %vm289_vm2, %v5075_v0  ;;  %v338_v19 = vld [vmem:[%s5186_s30 + $0x80] sm:$0xff]  ;;  %v339_v20 = vld [vmem:[%s5186_s30 + $0x88] sm:$0xff] }
  0x1c   : > { %312 = vst.msk [vmem:[#allocation2 + $0xb9] sm:$0x1] %vm289_vm2, %v5075_v0  ;;  %313 = vst.msk [vmem:[#allocation2 + $0xd1] sm:$0x1] %vm289_vm2, %v5075_v0  ;;  %v340_v21 = vld [vmem:[%s5186_s30 + $0x90] sm:$0xff]  ;;  %v341_v22 = vld [vmem:[%s5186_s30 + $0x98] sm:$0xff] }
  0x1d   : > { %314 = vst.msk [vmem:[#allocation2 + $0xe9] sm:$0x1] %vm289_vm2, %v5075_v0  ;;  %315 = vst.msk [vmem:[#allocation2 + $0x101] sm:$0x1] %vm289_vm2, %v5075_v0  ;;  %v342_v23 = vld [vmem:[%s5186_s30 + $0xa0] sm:$0xff]  ;;  %v343_v24 = vld [vmem:[%s5186_s30 + $0xa8] sm:$0xff] }
  0x1e   : > { %316 = vst.msk [vmem:[#allocation2 + $0x119] sm:$0x1] %vm289_vm2, %v5075_v0  ;;  %317 = vst.msk [vmem:[#allocation2 + $0x131] sm:$0x1] %vm289_vm2, %v5075_v0  ;;  %v344_v28 = vld [vmem:[%s5186_s30 + $0xb0] sm:$0xff]  ;;  %v345_v29 = vld [vmem:[%s5186_s30 + $0xb8] sm:$0xff] }
  0x1f   : > { %318 = vst.msk [vmem:[#allocation2 + $0x149] sm:$0x1] %vm289_vm2, %v5075_v0  ;;  %319 = vst.msk [vmem:[#allocation2 + $0x161] sm:$0x1] %vm289_vm2, %v5075_v0  ;;  %v346_v33 = vld [vmem:[%s5186_s30 + $0xc0] sm:$0xff]  ;;  %v347_v34 = vld [vmem:[%s5186_s30 + $0xc8] sm:$0xff] }
  0x20   : > { %320 = vst.msk [vmem:[#allocation2 + $0x179] sm:$0x1] %vm289_vm2, %v5075_v0  ;;  %321 = vst.msk [vmem:[#allocation2 + $0x191] sm:$0x1] %vm289_vm2, %v5075_v0  ;;  %v348_v35 = vld [vmem:[%s5186_s30 + $0xd0] sm:$0xff]  ;;  %v349_v36 = vld [vmem:[%s5186_s30 + $0xd8] sm:$0xff] }
  0x21   : > { %354 = vst.msk [vmem:[#allocation2 + $0x19] sm:$0xff] %vm279_vm0, %v322_v1  ;;  %355 = vst.msk [vmem:[#allocation2 + $0x21] sm:$0xff] %vm279_vm0, %v323_v2  ;;  %v350_v37 = vld [vmem:[%s5186_s30 + $0xe0] sm:$0xff]  ;;  %v351_v38 = vld [vmem:[%s5186_s30 + $0xe8] sm:$0xff]  ;;  %s5082_s17 = smov 56   ;;  %s5083_s20 = smov 64  }
  0x22   : > { %356 = vst.msk [vmem:[#allocation2 + $0x31] sm:$0xff] %vm279_vm0, %v324_v3  ;;  %357 = vst.msk [vmem:[#allocation2 + $0x39] sm:$0xff] %vm279_vm0, %v325_v4  ;;  %v386_v45 = vld [vmem:[#allocation2] sm:$0xff]  ;;  %v387_v48 = vld [vmem:[#allocation2 + $0x8] sm:$0xff]  ;;  %vm1576_vm8 = vcmask 458112   ;;  %vm1769_vm9 = vcmask 523712  }
  0x23   : > { %358 = vst.msk [vmem:[#allocation2 + $0x49] sm:$0xff] %vm279_vm0, %v326_v5  ;;  %359 = vst.msk [vmem:[#allocation2 + $0x51] sm:$0xff] %vm279_vm0, %v327_v6  ;;  %vm1962_vm10 = vcmask 589312   ;;  %vm2036_vm11 = vcmask 588800  }
  0x24   : > { %360 = vst.msk [vmem:[#allocation2 + $0x61] sm:$0xff] %vm279_vm0, %v328_v9  ;;  %361 = vst.msk [vmem:[#allocation2 + $0x69] sm:$0xff] %vm279_vm0, %v329_v10 }
  0x25   : > { %362 = vst.msk [vmem:[#allocation2 + $0x79] sm:$0xff] %vm279_vm0, %v330_v11  ;;  %363 = vst.msk [vmem:[#allocation2 + $0x81] sm:$0xff] %vm279_vm0, %v331_v12 }
  0x26   : > { %364 = vst.msk [vmem:[#allocation2 + $0x91] sm:$0xff] %vm279_vm0, %v332_v13  ;;  %365 = vst.msk [vmem:[#allocation2 + $0x99] sm:$0xff] %vm279_vm0, %v333_v14 }
  0x27   : > { %366 = vst.msk [vmem:[#allocation2 + $0xa9] sm:$0xff] %vm279_vm0, %v334_v15  ;;  %367 = vst.msk [vmem:[#allocation2 + $0xb1] sm:$0xff] %vm279_vm0, %v335_v16 }
  0x28   : > { %368 = vst.msk [vmem:[#allocation2 + $0xc1] sm:$0xff] %vm279_vm0, %v336_v17  ;;  %369 = vst.msk [vmem:[#allocation2 + $0xc9] sm:$0xff] %vm279_vm0, %v337_v18  ;;  %v5231_v25 = vld [vmem:[#allocation2 + $0x19] sm:$0xff]  ;;  %v5240_v27 = vld [vmem:[#allocation2 + $0x21] sm:$0xff] }
  0x29   : > { %370 = vst.msk [vmem:[#allocation2 + $0xd9] sm:$0xff] %vm279_vm0, %v338_v19  ;;  %371 = vst.msk [vmem:[#allocation2 + $0xe1] sm:$0xff] %vm279_vm0, %v339_v20  ;;  %v5233_v26 = vld [vmem:[#allocation2 + $0x31] sm:$0xff]  ;;  %518 = vrot.lane.b32.xlu1 %v5231_v25, %s5076_s8  ;;  %v5252_v31 = vld [vmem:[#allocation2 + $0x39] sm:$0xff] }
  0x2a   : > { %372 = vst.msk [vmem:[#allocation2 + $0xf1] sm:$0xff] %vm279_vm0, %v340_v21  ;;  %373 = vst.msk [vmem:[#allocation2 + $0xf9] sm:$0xff] %vm279_vm0, %v341_v22  ;;  %522 = vrot.lane.b32.xlu0 %v5233_v26, %s5076_s8  ;;  %v5248_v30 = vld [vmem:[#allocation2 + $0x49] sm:$0xff]  ;;  %v5269_v39 = vld [vmem:[#allocation2 + $0x51] sm:$0xff] }
  0x2b   : > { %374 = vst.msk [vmem:[#allocation2 + $0x109] sm:$0xff] %vm279_vm0, %v342_v23  ;;  %375 = vst.msk [vmem:[#allocation2 + $0x111] sm:$0xff] %vm279_vm0, %v343_v24  ;;  %v5256_v32 = vld [vmem:[#allocation2 + $0x61] sm:$0xff]  ;;  %v5280_v41 = vld [vmem:[#allocation2 + $0x69] sm:$0xff] }
  0x2c   : > { %376 = vst.msk [vmem:[#allocation2 + $0x121] sm:$0xff] %vm279_vm0, %v344_v28  ;;  %377 = vst.msk [vmem:[#allocation2 + $0x129] sm:$0xff] %vm279_vm0, %v345_v29  ;;  %v5276_v40 = vld [vmem:[#allocation2 + $0x79] sm:$0xff]  ;;  %v5288_v43 = vld [vmem:[#allocation2 + $0x81] sm:$0xff] }
  0x2d   : > { %520 = vrot.lane.b32.xlu1 %v5240_v27, %s5076_s8  ;;  %378 = vst.msk [vmem:[#allocation2 + $0x139] sm:$0xff] %vm279_vm0, %v346_v33  ;;  %379 = vst.msk [vmem:[#allocation2 + $0x141] sm:$0xff] %vm279_vm0, %v347_v34  ;;  %v5284_v42 = vld [vmem:[#allocation2 + $0x91] sm:$0xff]  ;;  %v5298_v47 = vld [vmem:[#allocation2 + $0x99] sm:$0xff] }
  0x2e   : > { %526 = vrot.lane.b32.xlu0 %v5248_v30, %s5076_s8  ;;  %380 = vst.msk [vmem:[#allocation2 + $0x151] sm:$0xff] %vm279_vm0, %v348_v35  ;;  %381 = vst.msk [vmem:[#allocation2 + $0x159] sm:$0xff] %vm279_vm0, %v349_v36  ;;  %v5292_v44 = vld [vmem:[#allocation2 + $0xa9] sm:$0xff]  ;;  %v5296_v46 = vld [vmem:[#allocation2 + $0x18] sm:$0xff] }
  0x2f   : > { %382 = vst.msk [vmem:[#allocation2 + $0x169] sm:$0xff] %vm279_vm0, %v350_v37  ;;  %383 = vst.msk [vmem:[#allocation2 + $0x171] sm:$0xff] %vm279_vm0, %v351_v38  ;;  %v5306_v49 = vld [vmem:[#allocation2 + $0x20] sm:$0xff]  ;;  %v5312_v51 = vld [vmem:[#allocation2 + $0x30] sm:$0xff] }
  0x30   : > { %418 = vst.msk [vmem:[#allocation3] sm:$0xff] %vm279_vm0, %v386_v45  ;;  %420 = vst.msk [vmem:[#allocation3 + $0x10] sm:$0xff] %vm279_vm0, %v5296_v46  ;;  %v5308_v50 = vld [vmem:[#allocation2 + $0xc1] sm:$0xff]  ;;  %v5314_v52 = vld [vmem:[#allocation2 + $0x38] sm:$0xff] }
  0x31   : > { %524 = vrot.lane.b32.xlu1 %v5252_v31, %s5076_s8  ;;  %419 = vst.msk [vmem:[#allocation3 + $0x8] sm:$0xff] %vm279_vm0, %v387_v48  ;;  %421 = vst.msk [vmem:[#allocation3 + $0x18] sm:$0xff] %vm279_vm0, %v5306_v49  ;;  %v5318_v53 = vld [vmem:[#allocation2 + $0xb1] sm:$0xff]  ;;  %v5324_v54 = vld [vmem:[#allocation2 + $0x48] sm:$0xff] }
  0x32   : > { %530 = vrot.lane.b32.xlu0 %v5256_v32, %s5076_s8  ;;  %422 = vst.msk [vmem:[#allocation3 + $0x20] sm:$0xff] %vm279_vm0, %v5312_v51  ;;  %423 = vst.msk [vmem:[#allocation3 + $0x28] sm:$0xff] %vm279_vm0, %v5314_v52  ;;  %v5326_v55 = vld [vmem:[#allocation2 + $0x50] sm:$0xff]  ;;  %v5328_v56 = vld [vmem:[#allocation2 + $0xd9] sm:$0xff] }
  0x33   : > { %424 = vst.msk [vmem:[#allocation3 + $0x30] sm:$0xff] %vm279_vm0, %v5324_v54  ;;  %425 = vst.msk [vmem:[#allocation3 + $0x38] sm:$0xff] %vm279_vm0, %v5326_v55  ;;  %v5334_v57 = vld [vmem:[#allocation2 + $0x60] sm:$0xff]  ;;  %v5336_v58 = vld [vmem:[#allocation2 + $0x68] sm:$0xff] }
  0x34   : > { %v5338_v59 = vld [vmem:[#allocation2 + $0x78] sm:$0xff]  ;;  %426 = vst.msk [vmem:[#allocation3 + $0x40] sm:$0xff] %vm279_vm0, %v5334_v57  ;;  %427 = vst.msk [vmem:[#allocation3 + $0x48] sm:$0xff] %vm279_vm0, %v5336_v58  ;;  %v5348_v60 = vld [vmem:[#allocation2 + $0x80] sm:$0xff] }
  0x35   : > { %528 = vrot.lane.b32.xlu1 %v5269_v39, %s5076_s8  ;;  %428 = vst.msk [vmem:[#allocation3 + $0x50] sm:$0xff] %vm279_vm0, %v5338_v59  ;;  %v5350_v61 = vld [vmem:[#allocation2 + $0x90] sm:$0xff]  ;;  %v5352_v62 = vld [vmem:[#allocation2 + $0x98] sm:$0xff]  ;;  %429 = vst.msk [vmem:[#allocation3 + $0x58] sm:$0xff] %vm279_vm0, %v5348_v60 }
  0x36   : > { %534 = vrot.lane.b32.xlu0 %v5276_v40, %s5076_s8  ;;  %v5354_v63 = vld [vmem:[#allocation2 + $0xc9] sm:$0xff]  ;;  %430 = vst.msk [vmem:[#allocation3 + $0x60] sm:$0xff] %vm279_vm0, %v5350_v61  ;;  %431 = vst.msk [vmem:[#allocation3 + $0x68] sm:$0xff] %vm279_vm0, %v5352_v62  ;;  %v5366_v2 = vld [vmem:[#allocation2 + $0xc0] sm:$0xff] }
  0x37   : > { %v5362_v0 = vld [vmem:[#allocation2 + $0xa8] sm:$0xff]  ;;  %v5364_v1 = vld [vmem:[#allocation2 + $0xb0] sm:$0xff]  ;;  %434 = vst.msk [vmem:[#allocation3 + $0x80] sm:$0xff] %vm279_vm0, %v5366_v2  ;;  %v5378_v4 = vld [vmem:[#allocation2 + $0xd8] sm:$0xff] }
  0x38   : > { %432 = vst.msk [vmem:[#allocation3 + $0x70] sm:$0xff] %vm279_vm0, %v5362_v0  ;;  %433 = vst.msk [vmem:[#allocation3 + $0x78] sm:$0xff] %vm279_vm0, %v5364_v1  ;;  %v5376_v3 = vld [vmem:[#allocation2 + $0xc8] sm:$0xff]  ;;  %v5380_v5 = vld [vmem:[#allocation2 + $0xe0] sm:$0xff] }
  0x39   : > { %532 = vrot.lane.b32.xlu1 %v5280_v41, %s5076_s8  ;;  %435 = vst.msk [vmem:[#allocation3 + $0x88] sm:$0xff] %vm279_vm0, %v5376_v3  ;;  %436 = vst.msk [vmem:[#allocation3 + $0x90] sm:$0xff] %vm279_vm0, %v5378_v4  ;;  %v5388_v6 = vld [vmem:[#allocation2 + $0xf0] sm:$0xff]  ;;  %v5390_v7 = vld [vmem:[#allocation2 + $0xf8] sm:$0xff] }
  0x3a   : > { %538 = vrot.lane.b32.xlu0 %v5284_v42, %s5076_s8  ;;  %437 = vst.msk [vmem:[#allocation3 + $0x98] sm:$0xff] %vm279_vm0, %v5380_v5  ;;  %v5392_v8 = vld [vmem:[#allocation2 + $0x108] sm:$0xff]  ;;  %438 = vst.msk [vmem:[#allocation3 + $0xa0] sm:$0xff] %vm279_vm0, %v5388_v6  ;;  %v5402_v9 = vld [vmem:[#allocation2 + $0x110] sm:$0xff] }
  0x3b   : > { %439 = vst.msk [vmem:[#allocation3 + $0xa8] sm:$0xff] %vm279_vm0, %v5390_v7  ;;  %440 = vst.msk [vmem:[#allocation3 + $0xb0] sm:$0xff] %vm279_vm0, %v5392_v8  ;;  %v5404_v10 = vld [vmem:[#allocation2 + $0xf1] sm:$0xff]  ;;  %v5410_v11 = vld [vmem:[#allocation2 + $0x120] sm:$0xff] }
  0x3c   : > { %441 = vst.msk [vmem:[#allocation3 + $0xb8] sm:$0xff] %vm279_vm0, %v5402_v9  ;;  %v5412_v12 = vld [vmem:[#allocation2 + $0x128] sm:$0xff]  ;;  %442 = vst.msk [vmem:[#allocation3 + $0xc0] sm:$0xff] %vm279_vm0, %v5410_v11  ;;  %v5426_v15 = vld [vmem:[#allocation2 + $0x138] sm:$0xff] }
  0x3d   : > { %536 = vrot.lane.b32.xlu1 %v5288_v43, %s5076_s8  ;;  %v5414_v13 = vld [vmem:[#allocation2 + $0xe1] sm:$0xff]  ;;  %443 = vst.msk [vmem:[#allocation3 + $0xc8] sm:$0xff] %vm279_vm0, %v5412_v12  ;;  %v5422_v14 = vld [vmem:[#allocation2 + $0x109] sm:$0xff]  ;;  %v5430_v17 = vld [vmem:[#allocation2 + $0xf9] sm:$0xff] }
  0x3e   : > { %542 = vrot.lane.b32.xlu0 %v5292_v44, %s5076_s8  ;;  %v5428_v16 = vld [vmem:[#allocation2 + $0x140] sm:$0xff]  ;;  %444 = vst.msk [vmem:[#allocation3 + $0xd0] sm:$0xff] %vm279_vm0, %v5426_v15  ;;  %v5442_v19 = vld [vmem:[#allocation2 + $0x150] sm:$0xff]  ;;  %v5444_v20 = vld [vmem:[#allocation2 + $0x158] sm:$0xff] }
  0x3f   : > { %445 = vst.msk [vmem:[#allocation3 + $0xd8] sm:$0xff] %vm279_vm0, %v5428_v16  ;;  %v5438_v18 = vld [vmem:[#allocation2 + $0x121] sm:$0xff]  ;;  %v5446_v21 = vld [vmem:[#allocation2 + $0x111] sm:$0xff]  ;;  %446 = vst.msk [vmem:[#allocation3 + $0xe0] sm:$0xff] %vm279_vm0, %v5442_v19 }
  0x40   : > { %447 = vst.msk [vmem:[#allocation3 + $0xe8] sm:$0xff] %vm279_vm0, %v5444_v20  ;;  %v5454_v22 = vld [vmem:[#allocation2 + $0x139] sm:$0xff]  ;;  %v5458_v23 = vld [vmem:[#allocation2 + $0x168] sm:$0xff]  ;;  %v5460_v24 = vld [vmem:[#allocation2 + $0x170] sm:$0xff] }
  0x41   : > { %540 = vrot.lane.b32.xlu1 %v5298_v47, %s5076_s8  ;;  %v5462_v28 = vld [vmem:[#allocation2 + $0x129] sm:$0xff]  ;;  %448 = vst.msk [vmem:[#allocation3 + $0xf0] sm:$0xff] %vm279_vm0, %v5458_v23  ;;  %449 = vst.msk [vmem:[#allocation3 + $0xf8] sm:$0xff] %vm279_vm0, %v5460_v24  ;;  %v5470_v29 = vld [vmem:[#allocation2 + $0x151] sm:$0xff] }
  0x42   : > { %546 = vrot.lane.b32.xlu0 %v5308_v50, %s5076_s8  ;;  %v5474_v33 = vld [vmem:[#allocation2 + $0x141] sm:$0xff]  ;;  %v352_v34 = vld [vmem:[%s5186_s30 + $0xf0] sm:$0xff]  ;;  %v353_v36 = vld [vmem:[%s5186_s30 + $0xf8] sm:$0xff] }
  0x43   : > { %7430 = vst [vmem:[#allocation4_spill] sm:$0xff] %v5474_v33  ;;  %v5479_v35 = vld [vmem:[#allocation2 + $0x169] sm:$0xff]  ;;  %384 = vst.msk [vmem:[#allocation2 + $0x181] sm:$0xff] %vm279_vm0, %v352_v34  ;;  %v5486_v37 = vld [vmem:[#allocation2 + $0x159] sm:$0xff] }
  0x44   : > { %7431 = vst [vmem:[#allocation5_spill] sm:$0xff] %v5479_v35  ;;  %385 = vst.msk [vmem:[#allocation2 + $0x189] sm:$0xff] %vm279_vm0, %v353_v36  ;;  %v643_v38 = vld [vmem:[#allocation2 + $0x2] sm:$0xff]  ;;  %v5492_v45 = vld [vmem:[#allocation2 + $0x171] sm:$0xff] }
  0x45   : > { %544 = vrot.lane.b32.xlu1 %v5318_v53, %s5076_s8  ;;  %7432 = vst [vmem:[#allocation6_spill] sm:$0xff] %v5486_v37  ;;  %7433 = vst [vmem:[#allocation7_spill] sm:$0xff] %v5492_v45  ;;  %v5495_v48 = vld [vmem:[#allocation2 + $0x1a] sm:$0xff]  ;;  %v644_v34 = vld [vmem:[#allocation2 + $0xa] sm:$0xff] }
  0x46   : > { %550 = vrot.lane.b32.xlu0 %v5328_v56, %s5076_s8  ;;  %7434 = vst [vmem:[#allocation8_spill] sm:$0xff] %v5495_v48  ;;  %v5501_v36 = vld [vmem:[#allocation2 + $0x32] sm:$0xff] }
  0x47   : > { %7435 = vst [vmem:[#allocation9_spill] sm:$0xff] %v5501_v36 }
  0x49   : > { %548 = vrot.lane.b32.xlu1 %v5354_v63, %s5076_s8 }
  0x4a   : > { %554 = vrot.lane.b32.xlu0 %v5404_v10, %s5076_s8 }
  0x4d   : > { %552 = vrot.lane.b32.xlu1 %v5414_v13, %s5076_s8 }
  0x4e   : > { %558 = vrot.lane.b32.xlu0 %v5422_v14, %s5076_s8 }
  0x51   : > { %556 = vrot.lane.b32.xlu1 %v5430_v17, %s5076_s8 }
  0x52   : > { %562 = vrot.lane.b32.xlu0 %v5438_v18, %s5076_s8 }
  0x55   : > { %560 = vrot.lane.b32.xlu1 %v5446_v21, %s5076_s8 }
  0x56   : > { %566 = vrot.lane.b32.xlu0 %v5454_v22, %s5076_s8 }
  0x59   : > { %564 = vrot.lane.b32.xlu1 %v5462_v28, %s5076_s8 }
  0x5a   : > { %570 = vrot.lane.b32.xlu0 %v5470_v29, %s5076_s8 }
  0x5d   : > { %568 = vrot.lane.b32.xlu1 %v5474_v33, %s5076_s8 }
  0x5e   : > { %574 = vrot.lane.b32.xlu0 %v5479_v35, %s5076_s8  ;;  %v5504_v35 = vld [vmem:[#allocation2 + $0x22] sm:$0xff] }
  0x5f   : > { %7436 = vst [vmem:[#allocation10_spill] sm:$0xff] %v5504_v35 }
  0x61   : > { %572 = vrot.lane.b32.xlu1 %v5486_v37, %s5076_s8  ;;  %v5508_v37 = vld [vmem:[#allocation2 + $0x4a] sm:$0xff] }
  0x62   : > { %707 = vrot.lane.b32.xlu0 %v643_v38, %s5077_s9  ;;  %7437 = vst [vmem:[#allocation11_spill] sm:$0xff] %v5508_v37  ;;  %v5512_v38 = vld [vmem:[#allocation2 + $0x3a] sm:$0xff] }
  0x63   : > { %7438 = vst [vmem:[#allocation12_spill] sm:$0xff] %v5512_v38 }
  0x65   : > { %576 = vrot.lane.b32.xlu1 %v5492_v45, %s5076_s8  ;;  %v5592_v45 = vld [vmem:[#allocation2 + $0x12a] sm:$0xff] }
  0x66   : > { %711 = vrot.lane.b32.xlu0 %v5495_v48, %s5077_s9  ;;  %v5516_v48 = vld [vmem:[#allocation2 + $0x62] sm:$0xff]  ;;  %7458 = vst [vmem:[#allocation32_spill] sm:$0xff] %v5592_v45 }
  0x67   : > { %7439 = vst [vmem:[#allocation13_spill] sm:$0xff] %v5516_v48 }
  0x69   : > { %709 = vrot.lane.b32.xlu1 %v644_v34, %s5077_s9  ;;  %v5520_v34 = vld [vmem:[#allocation2 + $0x52] sm:$0xff] }
  0x6a   : > { %715 = vrot.lane.b32.xlu0 %v5501_v36, %s5077_s9  ;;  %7440 = vst [vmem:[#allocation14_spill] sm:$0xff] %v5520_v34  ;;  %v5524_v36 = vld [vmem:[#allocation2 + $0x7a] sm:$0xff] }
  0x6b   : > { %7441 = vst [vmem:[#allocation15_spill] sm:$0xff] %v5524_v36 }
  0x6d   : > { %713 = vrot.lane.b32.xlu1 %v5504_v35, %s5077_s9  ;;  %v5528_v35 = vld [vmem:[#allocation2 + $0x6a] sm:$0xff] }
  0x6e   : > { %719 = vrot.lane.b32.xlu0 %v5508_v37, %s5077_s9  ;;  %7442 = vst [vmem:[#allocation16_spill] sm:$0xff] %v5528_v35  ;;  %v5532_v37 = vld [vmem:[#allocation2 + $0x92] sm:$0xff] }
  0x6f   : > { %7443 = vst [vmem:[#allocation17_spill] sm:$0xff] %v5532_v37 }
  0x71   : > { %717 = vrot.lane.b32.xlu1 %v5512_v38, %s5077_s9  ;;  %v5536_v38 = vld [vmem:[#allocation2 + $0x82] sm:$0xff] }
  0x72   : > { %723 = vrot.lane.b32.xlu0 %v5516_v48, %s5077_s9  ;;  %7444 = vst [vmem:[#allocation18_spill] sm:$0xff] %v5536_v38  ;;  %v5540_v48 = vld [vmem:[#allocation2 + $0xaa] sm:$0xff] }
  0x73   : > { %7445 = vst [vmem:[#allocation19_spill] sm:$0xff] %v5540_v48 }
  0x75   : > { %721 = vrot.lane.b32.xlu1 %v5520_v34, %s5077_s9  ;;  %v5544_v34 = vld [vmem:[#allocation2 + $0x9a] sm:$0xff] }
  0x76   : > { %727 = vrot.lane.b32.xlu0 %v5524_v36, %s5077_s9  ;;  %7446 = vst [vmem:[#allocation20_spill] sm:$0xff] %v5544_v34  ;;  %v5548_v36 = vld [vmem:[#allocation2 + $0xc2] sm:$0xff] }
  0x77   : > { %7447 = vst [vmem:[#allocation21_spill] sm:$0xff] %v5548_v36 }
  0x79   : > { %725 = vrot.lane.b32.xlu1 %v5528_v35, %s5077_s9  ;;  %v5552_v35 = vld [vmem:[#allocation2 + $0xb2] sm:$0xff] }
  0x7a   : > { %731 = vrot.lane.b32.xlu0 %v5532_v37, %s5077_s9  ;;  %7448 = vst [vmem:[#allocation22_spill] sm:$0xff] %v5552_v35  ;;  %v5556_v37 = vld [vmem:[#allocation2 + $0xda] sm:$0xff] }
  0x7b   : > { %7449 = vst [vmem:[#allocation23_spill] sm:$0xff] %v5556_v37 }
  0x7d   : > { %729 = vrot.lane.b32.xlu1 %v5536_v38, %s5077_s9  ;;  %v5560_v38 = vld [vmem:[#allocation2 + $0xca] sm:$0xff] }
  0x7e   : > { %735 = vrot.lane.b32.xlu0 %v5540_v48, %s5077_s9  ;;  %7450 = vst [vmem:[#allocation24_spill] sm:$0xff] %v5560_v38  ;;  %v5564_v48 = vld [vmem:[#allocation2 + $0xf2] sm:$0xff] }
  0x7f   : > { %7451 = vst [vmem:[#allocation25_spill] sm:$0xff] %v5564_v48 }
  0x81   : > { %733 = vrot.lane.b32.xlu1 %v5544_v34, %s5077_s9  ;;  %v5568_v34 = vld [vmem:[#allocation2 + $0xe2] sm:$0xff] }
  0x82   : > { %739 = vrot.lane.b32.xlu0 %v5548_v36, %s5077_s9  ;;  %7452 = vst [vmem:[#allocation26_spill] sm:$0xff] %v5568_v34  ;;  %v5572_v36 = vld [vmem:[#allocation2 + $0x10a] sm:$0xff] }
  0x83   : > { %7453 = vst [vmem:[#allocation27_spill] sm:$0xff] %v5572_v36 }
  0x85   : > { %737 = vrot.lane.b32.xlu1 %v5552_v35, %s5077_s9  ;;  %v5576_v35 = vld [vmem:[#allocation2 + $0xfa] sm:$0xff] }
  0x86   : > { %743 = vrot.lane.b32.xlu0 %v5556_v37, %s5077_s9  ;;  %7454 = vst [vmem:[#allocation28_spill] sm:$0xff] %v5576_v35  ;;  %v5580_v37 = vld [vmem:[#allocation2 + $0x122] sm:$0xff] }
  0x87   : > { %7455 = vst [vmem:[#allocation29_spill] sm:$0xff] %v5580_v37 }
  0x89   : > { %741 = vrot.lane.b32.xlu1 %v5560_v38, %s5077_s9  ;;  %v5584_v38 = vld [vmem:[#allocation2 + $0x112] sm:$0xff] }
  0x8a   : > { %747 = vrot.lane.b32.xlu0 %v5564_v48, %s5077_s9  ;;  %7456 = vst [vmem:[#allocation30_spill] sm:$0xff] %v5584_v38  ;;  %v5588_v48 = vld [vmem:[#allocation2 + $0x13a] sm:$0xff] }
  0x8b   : > { %7457 = vst [vmem:[#allocation31_spill] sm:$0xff] %v5588_v48 }
  0x8d   : > { %745 = vrot.lane.b32.xlu1 %v5568_v34, %s5077_s9  ;;  %v515_v34 = vpop.permute.xlu0 %514 }
  0x8e   : > { %751 = vrot.lane.b32.xlu0 %v5572_v36, %s5077_s9  ;;  %611 = vst.msk [vmem:[#allocation3] sm:$0xff] %vm610_vm3, %v515_v34  ;;  %v5601_v36 = vld [vmem:[#allocation2 + $0x142] sm:$0xff]  ;;  %v5607_v34 = vld [vmem:[#allocation2 + $0x16a] sm:$0xff] }
  0x8f   : > { %7459 = vst [vmem:[#allocation33_spill] sm:$0xff] %v5601_v36 }
  0x91   : > { %749 = vrot.lane.b32.xlu1 %v5576_v35, %s5077_s9  ;;  %v5597_v35 = vld [vmem:[#allocation2 + $0x152] sm:$0xff] }
  0x92   : > { %755 = vrot.lane.b32.xlu0 %v5580_v37, %s5077_s9  ;;  %v517_v37 = vpop.permute.xlu0 %516 }
  0x93   : > { %612 = vst.msk [vmem:[#allocation3 + $0x8] sm:$0xff] %vm610_vm3, %v517_v37  ;;  %v5619_v37 = vld [vmem:[#allocation2 + $0x172] sm:$0xff] }
  0x95   : > { %753 = vrot.lane.b32.xlu1 %v5584_v38, %s5077_s9  ;;  %v5611_v38 = vld [vmem:[#allocation2 + $0x15a] sm:$0xff] }
  0x96   : > { %759 = vrot.lane.b32.xlu0 %v5588_v48, %s5077_s9 }
  0x99   : > { %757 = vrot.lane.b32.xlu1 %v5592_v45, %s5077_s9 }
  0x9a   : > { %763 = vrot.lane.b32.xlu0 %v5597_v35, %s5077_s9 }
  0x9b   : > { %v519_v33 = vpop.permute.xlu1 %518 }
  0x9c   : > { %613 = vst.msk [vmem:[#allocation3 + $0x10] sm:$0xff] %vm610_vm3, %v519_v33  ;;  %v523_v48 = vpop.permute.xlu0 %522 }
  0x9d   : > { %761 = vrot.lane.b32.xlu1 %v5601_v36, %s5077_s9  ;;  %615 = vst.msk [vmem:[#allocation3 + $0x20] sm:$0xff] %vm610_vm3, %v523_v48 }
  0x9e   : > { %767 = vrot.lane.b32.xlu0 %v5607_v34, %s5077_s9 }
  0x9f   : > { %v521_v45 = vpop.permute.xlu1 %520 }
  0xa0   : > { %614 = vst.msk [vmem:[#allocation3 + $0x18] sm:$0xff] %vm610_vm3, %v521_v45  ;;  %v527_v33 = vpop.permute.xlu0 %526 }
  0xa1   : > { %765 = vrot.lane.b32.xlu1 %v5611_v38, %s5077_s9  ;;  %617 = vst.msk [vmem:[#allocation3 + $0x30] sm:$0xff] %vm610_vm3, %v527_v33 }
  0xa2   : > { %900 = vrot.lane.b32.xlu0 %v5296_v46, %s5078_s10 }
  0xa3   : > { %v525_v36 = vpop.permute.xlu1 %524 }
  0xa4   : > { %616 = vst.msk [vmem:[#allocation3 + $0x28] sm:$0xff] %vm610_vm3, %v525_v36  ;;  %v531_v48 = vpop.permute.xlu0 %530 }
  0xa5   : > { %769 = vrot.lane.b32.xlu1 %v5619_v37, %s5077_s9  ;;  %619 = vst.msk [vmem:[#allocation3 + $0x40] sm:$0xff] %vm610_vm3, %v531_v48 }
  0xa6   : > { %904 = vrot.lane.b32.xlu0 %v5312_v51, %s5078_s10 }
  0xa7   : > { %v529_v45 = vpop.permute.xlu1 %528 }
  0xa8   : > { %618 = vst.msk [vmem:[#allocation3 + $0x38] sm:$0xff] %vm610_vm3, %v529_v45  ;;  %v535_v33 = vpop.permute.xlu0 %534 }
  0xa9   : > { %902 = vrot.lane.b32.xlu1 %v5306_v49, %s5078_s10  ;;  %621 = vst.msk [vmem:[#allocation3 + $0x50] sm:$0xff] %vm610_vm3, %v535_v33 }
  0xaa   : > { %908 = vrot.lane.b32.xlu0 %v5324_v54, %s5078_s10 }
  0xab   : > { %v533_v46 = vpop.permute.xlu1 %532 }
  0xac   : > { %620 = vst.msk [vmem:[#allocation3 + $0x48] sm:$0xff] %vm610_vm3, %v533_v46  ;;  %v539_v36 = vpop.permute.xlu0 %538 }
  0xad   : > { %906 = vrot.lane.b32.xlu1 %v5314_v52, %s5078_s10  ;;  %623 = vst.msk [vmem:[#allocation3 + $0x60] sm:$0xff] %vm610_vm3, %v539_v36 }
  0xae   : > { %912 = vrot.lane.b32.xlu0 %v5334_v57, %s5078_s10 }
  0xaf   : > { %v537_v48 = vpop.permute.xlu1 %536 }
  0xb0   : > { %622 = vst.msk [vmem:[#allocation3 + $0x58] sm:$0xff] %vm610_vm3, %v537_v48  ;;  %v543_v49 = vpop.permute.xlu0 %542 }
  0xb1   : > { %910 = vrot.lane.b32.xlu1 %v5326_v55, %s5078_s10  ;;  %625 = vst.msk [vmem:[#allocation3 + $0x70] sm:$0xff] %vm610_vm3, %v543_v49 }
  0xb2   : > { %916 = vrot.lane.b32.xlu0 %v5338_v59, %s5078_s10 }
  0xb3   : > { %v541_v45 = vpop.permute.xlu1 %540 }
  0xb4   : > { %624 = vst.msk [vmem:[#allocation3 + $0x68] sm:$0xff] %vm610_vm3, %v541_v45  ;;  %v547_v33 = vpop.permute.xlu0 %546 }
  0xb5   : > { %914 = vrot.lane.b32.xlu1 %v5336_v58, %s5078_s10  ;;  %627 = vst.msk [vmem:[#allocation3 + $0x80] sm:$0xff] %vm610_vm3, %v547_v33 }
  0xb6   : > { %920 = vrot.lane.b32.xlu0 %v5350_v61, %s5078_s10 }
  0xb7   : > { %v545_v46 = vpop.permute.xlu1 %544 }
  0xb8   : > { %626 = vst.msk [vmem:[#allocation3 + $0x78] sm:$0xff] %vm610_vm3, %v545_v46  ;;  %v551_v36 = vpop.permute.xlu0 %550 }
  0xb9   : > { %918 = vrot.lane.b32.xlu1 %v5348_v60, %s5078_s10  ;;  %629 = vst.msk [vmem:[#allocation3 + $0x90] sm:$0xff] %vm610_vm3, %v551_v36 }
  0xba   : > { %924 = vrot.lane.b32.xlu0 %v5362_v0, %s5078_s10 }
  0xbb   : > { %v549_v48 = vpop.permute.xlu1 %548 }
  0xbc   : > { %628 = vst.msk [vmem:[#allocation3 + $0x88] sm:$0xff] %vm610_vm3, %v549_v48  ;;  %v555_v49 = vpop.permute.xlu0 %554 }
  0xbd   : > { %922 = vrot.lane.b32.xlu1 %v5352_v62, %s5078_s10  ;;  %631 = vst.msk [vmem:[#allocation3 + $0xa0] sm:$0xff] %vm610_vm3, %v555_v49 }
  0xbe   : > { %928 = vrot.lane.b32.xlu0 %v5366_v2, %s5078_s10 }
  0xbf   : > { %v553_v45 = vpop.permute.xlu1 %552 }
  0xc0   : > { %630 = vst.msk [vmem:[#allocation3 + $0x98] sm:$0xff] %vm610_vm3, %v553_v45  ;;  %v559_v33 = vpop.permute.xlu0 %558 }
  0xc1   : > { %926 = vrot.lane.b32.xlu1 %v5364_v1, %s5078_s10  ;;  %633 = vst.msk [vmem:[#allocation3 + $0xb0] sm:$0xff] %vm610_vm3, %v559_v33 }
  0xc2   : > { %932 = vrot.lane.b32.xlu0 %v5378_v4, %s5078_s10 }
  0xc3   : > { %v557_v46 = vpop.permute.xlu1 %556 }
  0xc4   : > { %632 = vst.msk [vmem:[#allocation3 + $0xa8] sm:$0xff] %vm610_vm3, %v557_v46  ;;  %v563_v36 = vpop.permute.xlu0 %562 }
  0xc5   : > { %930 = vrot.lane.b32.xlu1 %v5376_v3, %s5078_s10  ;;  %635 = vst.msk [vmem:[#allocation3 + $0xc0] sm:$0xff] %vm610_vm3, %v563_v36 }
  0xc6   : > { %936 = vrot.lane.b32.xlu0 %v5388_v6, %s5078_s10 }
  0xc7   : > { %v561_v48 = vpop.permute.xlu1 %560 }
  0xc8   : > { %634 = vst.msk [vmem:[#allocation3 + $0xb8] sm:$0xff] %vm610_vm3, %v561_v48  ;;  %v567_v49 = vpop.permute.xlu0 %566 }
  0xc9   : > { %934 = vrot.lane.b32.xlu1 %v5380_v5, %s5078_s10  ;;  %637 = vst.msk [vmem:[#allocation3 + $0xd0] sm:$0xff] %vm610_vm3, %v567_v49 }
  0xca   : > { %940 = vrot.lane.b32.xlu0 %v5392_v8, %s5078_s10 }
  0xcb   : > { %v565_v45 = vpop.permute.xlu1 %564 }
  0xcc   : > { %636 = vst.msk [vmem:[#allocation3 + $0xc8] sm:$0xff] %vm610_vm3, %v565_v45  ;;  %v571_v33 = vpop.permute.xlu0 %570 }
  0xcd   : > { %938 = vrot.lane.b32.xlu1 %v5390_v7, %s5078_s10  ;;  %639 = vst.msk [vmem:[#allocation3 + $0xe0] sm:$0xff] %vm610_vm3, %v571_v33 }
  0xce   : > { %944 = vrot.lane.b32.xlu0 %v5410_v11, %s5078_s10 }
  0xcf   : > { %v569_v46 = vpop.permute.xlu1 %568 }
  0xd0   : > { %638 = vst.msk [vmem:[#allocation3 + $0xd8] sm:$0xff] %vm610_vm3, %v569_v46  ;;  %v575_v36 = vpop.permute.xlu0 %574 }
  0xd1   : > { %942 = vrot.lane.b32.xlu1 %v5402_v9, %s5078_s10  ;;  %641 = vst.msk [vmem:[#allocation3 + $0xf0] sm:$0xff] %vm610_vm3, %v575_v36  ;;  %v866_v36 = vld [vmem:[#allocation2 + $0x180] sm:$0xff] }
  0xd2   : > { %948 = vrot.lane.b32.xlu0 %v5426_v15, %s5078_s10 }
  0xd3   : > { %v573_v48 = vpop.permute.xlu1 %572 }
  0xd4   : > { %640 = vst.msk [vmem:[#allocation3 + $0xe8] sm:$0xff] %vm610_vm3, %v573_v48  ;;  %v708_v49 = vpop.permute.xlu0 %707 }
  0xd5   : > { %946 = vrot.lane.b32.xlu1 %v5412_v12, %s5078_s10  ;;  %804 = vst.msk [vmem:[#allocation3] sm:$0xff] %vm803_vm4, %v708_v49 }
  0xd6   : > { %952 = vrot.lane.b32.xlu0 %v5442_v19, %s5078_s10 }
  0xd7   : > { %v577_v45 = vpop.permute.xlu1 %576 }
  0xd8   : > { %642 = vst.msk [vmem:[#allocation3 + $0xf8] sm:$0xff] %vm610_vm3, %v577_v45  ;;  %v712_v33 = vpop.permute.xlu0 %711 }
  0xd9   : > { %950 = vrot.lane.b32.xlu1 %v5428_v16, %s5078_s10  ;;  %806 = vst.msk [vmem:[#allocation3 + $0x10] sm:$0xff] %vm803_vm4, %v712_v33  ;;  %v867_v33 = vld [vmem:[#allocation2 + $0x188] sm:$0xff] }
  0xda   : > { %956 = vrot.lane.b32.xlu0 %v5458_v23, %s5078_s10 }
  0xdb   : > { %v710_v46 = vpop.permute.xlu1 %709 }
  0xdc   : > { %805 = vst.msk [vmem:[#allocation3 + $0x8] sm:$0xff] %vm803_vm4, %v710_v46  ;;  %v716_v48 = vpop.permute.xlu0 %715 }
  0xdd   : > { %954 = vrot.lane.b32.xlu1 %v5444_v20, %s5078_s10  ;;  %808 = vst.msk [vmem:[#allocation3 + $0x20] sm:$0xff] %vm803_vm4, %v716_v48 }
  0xde   : > { %960 = vrot.lane.b32.xlu0 %v866_v36, %s5078_s10 }
  0xdf   : > { %v714_v49 = vpop.permute.xlu1 %713 }
  0xe0   : > { %807 = vst.msk [vmem:[#allocation3 + $0x18] sm:$0xff] %vm803_vm4, %v714_v49  ;;  %v720_v45 = vpop.permute.xlu0 %719 }
  0xe1   : > { %958 = vrot.lane.b32.xlu1 %v5460_v24, %s5078_s10  ;;  %810 = vst.msk [vmem:[#allocation3 + $0x30] sm:$0xff] %vm803_vm4, %v720_v45 }
  0xe2   : > { %1093 = vrot.lane.b32.xlu0 %v5231_v25, %s5079_s11 }
  0xe3   : > { %v718_v46 = vpop.permute.xlu1 %717 }
  0xe4   : > { %809 = vst.msk [vmem:[#allocation3 + $0x28] sm:$0xff] %vm803_vm4, %v718_v46  ;;  %v724_v48 = vpop.permute.xlu0 %723  ;;  %v7461_v46 = vld [vmem:[#allocation5_spill] sm:$0xff] }
  0xe5   : > { %962 = vrot.lane.b32.xlu1 %v867_v33, %s5078_s10  ;;  %812 = vst.msk [vmem:[#allocation3 + $0x40] sm:$0xff] %vm803_vm4, %v724_v48  ;;  %v7462_v48 = vld [vmem:[#allocation6_spill] sm:$0xff] }
  0xe6   : > { %1097 = vrot.lane.b32.xlu0 %v5233_v26, %s5079_s11 }
  0xe7   : > { %v722_v36 = vpop.permute.xlu1 %721 }
  0xe8   : > { %811 = vst.msk [vmem:[#allocation3 + $0x38] sm:$0xff] %vm803_vm4, %v722_v36  ;;  %v728_v49 = vpop.permute.xlu0 %727 }
  0xe9   : > { %1095 = vrot.lane.b32.xlu1 %v5240_v27, %s5079_s11  ;;  %814 = vst.msk [vmem:[#allocation3 + $0x50] sm:$0xff] %vm803_vm4, %v728_v49  ;;  %v7463_v49 = vld [vmem:[#allocation7_spill] sm:$0xff] }
  0xea   : > { %1101 = vrot.lane.b32.xlu0 %v5248_v30, %s5079_s11 }
  0xeb   : > { %v726_v25 = vpop.permute.xlu1 %725 }
  0xec   : > { %813 = vst.msk [vmem:[#allocation3 + $0x48] sm:$0xff] %vm803_vm4, %v726_v25  ;;  %v732_v45 = vpop.permute.xlu0 %731 }
  0xed   : > { %1099 = vrot.lane.b32.xlu1 %v5252_v31, %s5079_s11  ;;  %816 = vst.msk [vmem:[#allocation3 + $0x60] sm:$0xff] %vm803_vm4, %v732_v45  ;;  %v5813_v45 = vld [vmem:[#allocation2 + $0x189] sm:$0xff] }
  0xee   : > { %1105 = vrot.lane.b32.xlu0 %v5256_v32, %s5079_s11 }
  0xef   : > { %v730_v26 = vpop.permute.xlu1 %729 }
  0xf0   : > { %815 = vst.msk [vmem:[#allocation3 + $0x58] sm:$0xff] %vm803_vm4, %v730_v26  ;;  %v736_v27 = vpop.permute.xlu0 %735 }
  0xf1   : > { %1103 = vrot.lane.b32.xlu1 %v5269_v39, %s5079_s11  ;;  %818 = vst.msk [vmem:[#allocation3 + $0x70] sm:$0xff] %vm803_vm4, %v736_v27  ;;  %v7464_v27 = vld [vmem:[#allocation8_spill] sm:$0xff] }
  0xf2   : > { %1109 = vrot.lane.b32.xlu0 %v5276_v40, %s5079_s11 }
  0xf3   : > { %v734_v30 = vpop.permute.xlu1 %733 }
  0xf4   : > { %817 = vst.msk [vmem:[#allocation3 + $0x68] sm:$0xff] %vm803_vm4, %v734_v30  ;;  %v740_v31 = vpop.permute.xlu0 %739 }
  0xf5   : > { %1107 = vrot.lane.b32.xlu1 %v5280_v41, %s5079_s11  ;;  %820 = vst.msk [vmem:[#allocation3 + $0x80] sm:$0xff] %vm803_vm4, %v740_v31 }
  0xf6   : > { %1113 = vrot.lane.b32.xlu0 %v5284_v42, %s5079_s11 }
  0xf7   : > { %v738_v32 = vpop.permute.xlu1 %737 }
  0xf8   : > { %819 = vst.msk [vmem:[#allocation3 + $0x78] sm:$0xff] %vm803_vm4, %v738_v32  ;;  %v744_v39 = vpop.permute.xlu0 %743  ;;  %v7465_v32 = vld [vmem:[#allocation9_spill] sm:$0xff] }
  0xf9   : > { %1111 = vrot.lane.b32.xlu1 %v5288_v43, %s5079_s11  ;;  %822 = vst.msk [vmem:[#allocation3 + $0x90] sm:$0xff] %vm803_vm4, %v744_v39  ;;  %v7466_v39 = vld [vmem:[#allocation10_spill] sm:$0xff] }
  0xfa   : > { %1117 = vrot.lane.b32.xlu0 %v5292_v44, %s5079_s11 }
  0xfb   : > { %v742_v40 = vpop.permute.xlu1 %741 }
  0xfc   : > { %821 = vst.msk [vmem:[#allocation3 + $0x88] sm:$0xff] %vm803_vm4, %v742_v40  ;;  %v748_v41 = vpop.permute.xlu0 %747 }
  0xfd   : > { %1115 = vrot.lane.b32.xlu1 %v5298_v47, %s5079_s11  ;;  %824 = vst.msk [vmem:[#allocation3 + $0xa0] sm:$0xff] %vm803_vm4, %v748_v41 }
  0xfe   : > { %1121 = vrot.lane.b32.xlu0 %v5308_v50, %s5079_s11 }
  0xff   : > { %v746_v42 = vpop.permute.xlu1 %745 }
 0x100   : > { %823 = vst.msk [vmem:[#allocation3 + $0x98] sm:$0xff] %vm803_vm4, %v746_v42  ;;  %v752_v43 = vpop.permute.xlu0 %751  ;;  %v7467_v42 = vld [vmem:[#allocation11_spill] sm:$0xff] }
 0x101   : > { %1119 = vrot.lane.b32.xlu1 %v5318_v53, %s5079_s11  ;;  %826 = vst.msk [vmem:[#allocation3 + $0xb0] sm:$0xff] %vm803_vm4, %v752_v43  ;;  %v7468_v43 = vld [vmem:[#allocation12_spill] sm:$0xff] }
 0x102   : > { %1125 = vrot.lane.b32.xlu0 %v5328_v56, %s5079_s11 }
 0x103   : > { %v750_v44 = vpop.permute.xlu1 %749 }
 0x104   : > { %825 = vst.msk [vmem:[#allocation3 + $0xa8] sm:$0xff] %vm803_vm4, %v750_v44  ;;  %v756_v47 = vpop.permute.xlu0 %755 }
 0x105   : > { %1123 = vrot.lane.b32.xlu1 %v5354_v63, %s5079_s11  ;;  %828 = vst.msk [vmem:[#allocation3 + $0xc0] sm:$0xff] %vm803_vm4, %v756_v47 }
 0x106   : > { %1129 = vrot.lane.b32.xlu0 %v5404_v10, %s5079_s11 }
 0x107   : > { %v754_v50 = vpop.permute.xlu1 %753 }
 0x108   : > { %827 = vst.msk [vmem:[#allocation3 + $0xb8] sm:$0xff] %vm803_vm4, %v754_v50  ;;  %v760_v53 = vpop.permute.xlu0 %759  ;;  %v7469_v50 = vld [vmem:[#allocation13_spill] sm:$0xff] }
 0x109   : > { %1127 = vrot.lane.b32.xlu1 %v5414_v13, %s5079_s11  ;;  %830 = vst.msk [vmem:[#allocation3 + $0xd0] sm:$0xff] %vm803_vm4, %v760_v53  ;;  %v7470_v53 = vld [vmem:[#allocation14_spill] sm:$0xff] }
 0x10a   : > { %1133 = vrot.lane.b32.xlu0 %v5422_v14, %s5079_s11 }
 0x10b   : > { %v758_v56 = vpop.permute.xlu1 %757 }
 0x10c   : > { %829 = vst.msk [vmem:[#allocation3 + $0xc8] sm:$0xff] %vm803_vm4, %v758_v56  ;;  %v764_v63 = vpop.permute.xlu0 %763 }
 0x10d   : > { %1131 = vrot.lane.b32.xlu1 %v5430_v17, %s5079_s11  ;;  %832 = vst.msk [vmem:[#allocation3 + $0xe0] sm:$0xff] %vm803_vm4, %v764_v63 }
 0x10e   : > { %1137 = vrot.lane.b32.xlu0 %v5438_v18, %s5079_s11 }
 0x10f   : > { %v762_v10 = vpop.permute.xlu1 %761 }
 0x110   : > { %831 = vst.msk [vmem:[#allocation3 + $0xd8] sm:$0xff] %vm803_vm4, %v762_v10  ;;  %v768_v13 = vpop.permute.xlu0 %767  ;;  %v7471_v10 = vld [vmem:[#allocation15_spill] sm:$0xff] }
 0x111   : > { %1135 = vrot.lane.b32.xlu1 %v5446_v21, %s5079_s11  ;;  %834 = vst.msk [vmem:[#allocation3 + $0xf0] sm:$0xff] %vm803_vm4, %v768_v13  ;;  %v7460_v21 = vld [vmem:[#allocation4_spill] sm:$0xff] }
 0x112   : > { %1141 = vrot.lane.b32.xlu0 %v5454_v22, %s5079_s11  ;;  %v7472_v13 = vld [vmem:[#allocation16_spill] sm:$0xff] }
 0x113   : > { %v766_v14 = vpop.permute.xlu1 %765 }
 0x114   : > { %833 = vst.msk [vmem:[#allocation3 + $0xe8] sm:$0xff] %vm803_vm4, %v766_v14  ;;  %v901_v17 = vpop.permute.xlu0 %900 }
 0x115   : > { %1139 = vrot.lane.b32.xlu1 %v5462_v28, %s5079_s11  ;;  %997 = vst.msk [vmem:[#allocation3] sm:$0xff] %vm996_vm5, %v901_v17  ;;  %v5803_v28 = vld [vmem:[#allocation2 + $0x181] sm:$0xff] }
 0x116   : > { %1145 = vrot.lane.b32.xlu0 %v5470_v29, %s5079_s11 }
 0x117   : > { %v770_v18 = vpop.permute.xlu1 %769 }
 0x118   : > { %835 = vst.msk [vmem:[#allocation3 + $0xf8] sm:$0xff] %vm803_vm4, %v770_v18  ;;  %v905_v33 = vpop.permute.xlu0 %904  ;;  %v7473_v18 = vld [vmem:[#allocation17_spill] sm:$0xff] }
 0x119   : > { %1143 = vrot.lane.b32.xlu1 %v7460_v21, %s5079_s11  ;;  %999 = vst.msk [vmem:[#allocation3 + $0x10] sm:$0xff] %vm996_vm5, %v905_v33  ;;  %v7474_v21 = vld [vmem:[#allocation18_spill] sm:$0xff] }
 0x11a   : > { %1149 = vrot.lane.b32.xlu0 %v7461_v46, %s5079_s11  ;;  %v7475_v46 = vld [vmem:[#allocation19_spill] sm:$0xff] }
 0x11b   : > { %v903_v22 = vpop.permute.xlu1 %902 }
 0x11c   : > { %998 = vst.msk [vmem:[#allocation3 + $0x8] sm:$0xff] %vm996_vm5, %v903_v22  ;;  %v909_v29 = vpop.permute.xlu0 %908 }
 0x11d   : > { %1147 = vrot.lane.b32.xlu1 %v7462_v48, %s5079_s11  ;;  %1001 = vst.msk [vmem:[#allocation3 + $0x20] sm:$0xff] %vm996_vm5, %v909_v29  ;;  %v7476_v48 = vld [vmem:[#allocation20_spill] sm:$0xff] }
 0x11e   : > { %1153 = vrot.lane.b32.xlu0 %v5803_v28, %s5079_s11 }
 0x11f   : > { %v907_v36 = vpop.permute.xlu1 %906 }
 0x120   : > { %1000 = vst.msk [vmem:[#allocation3 + $0x18] sm:$0xff] %vm996_vm5, %v907_v36  ;;  %v913_v25 = vpop.permute.xlu0 %912 }
 0x121   : > { %1151 = vrot.lane.b32.xlu1 %v7463_v49, %s5079_s11  ;;  %1003 = vst.msk [vmem:[#allocation3 + $0x30] sm:$0xff] %vm996_vm5, %v913_v25  ;;  %v7477_v49 = vld [vmem:[#allocation21_spill] sm:$0xff]  ;;  %v7478_v25 = vld [vmem:[#allocation22_spill] sm:$0xff] }
 0x122   : > { %1286 = vrot.lane.b32.xlu0 %v7464_v27, %s5080_s12 }
 0x123   : > { %v911_v26 = vpop.permute.xlu1 %910 }
 0x124   : > { %1002 = vst.msk [vmem:[#allocation3 + $0x28] sm:$0xff] %vm996_vm5, %v911_v26  ;;  %v917_v30 = vpop.permute.xlu0 %916 }
 0x125   : > { %1155 = vrot.lane.b32.xlu1 %v5813_v45, %s5079_s11  ;;  %1005 = vst.msk [vmem:[#allocation3 + $0x40] sm:$0xff] %vm996_vm5, %v917_v30  ;;  %v7479_v30 = vld [vmem:[#allocation23_spill] sm:$0xff] }
 0x126   : > { %1290 = vrot.lane.b32.xlu0 %v7465_v32, %s5080_s12 }
 0x127   : > { %v915_v31 = vpop.permute.xlu1 %914 }
 0x128   : > { %1004 = vst.msk [vmem:[#allocation3 + $0x38] sm:$0xff] %vm996_vm5, %v915_v31  ;;  %v921_v40 = vpop.permute.xlu0 %920  ;;  %v7480_v31 = vld [vmem:[#allocation24_spill] sm:$0xff] }
 0x129   : > { %1288 = vrot.lane.b32.xlu1 %v7466_v39, %s5080_s12  ;;  %1007 = vst.msk [vmem:[#allocation3 + $0x50] sm:$0xff] %vm996_vm5, %v921_v40  ;;  %v7481_v40 = vld [vmem:[#allocation25_spill] sm:$0xff] }
 0x12a   : > { %1294 = vrot.lane.b32.xlu0 %v7467_v42, %s5080_s12 }
 0x12b   : > { %v919_v41 = vpop.permute.xlu1 %918 }
 0x12c   : > { %1006 = vst.msk [vmem:[#allocation3 + $0x48] sm:$0xff] %vm996_vm5, %v919_v41  ;;  %v925_v44 = vpop.permute.xlu0 %924  ;;  %v7482_v41 = vld [vmem:[#allocation26_spill] sm:$0xff] }
 0x12d   : > { %1292 = vrot.lane.b32.xlu1 %v7468_v43, %s5080_s12  ;;  %1009 = vst.msk [vmem:[#allocation3 + $0x60] sm:$0xff] %vm996_vm5, %v925_v44  ;;  %v7483_v44 = vld [vmem:[#allocation27_spill] sm:$0xff] }
 0x12e   : > { %1298 = vrot.lane.b32.xlu0 %v7469_v50, %s5080_s12 }
 0x12f   : > { %v923_v47 = vpop.permute.xlu1 %922 }
 0x130   : > { %1008 = vst.msk [vmem:[#allocation3 + $0x58] sm:$0xff] %vm996_vm5, %v923_v47  ;;  %v929_v56 = vpop.permute.xlu0 %928  ;;  %v7484_v47 = vld [vmem:[#allocation28_spill] sm:$0xff] }
 0x131   : > { %1296 = vrot.lane.b32.xlu1 %v7470_v53, %s5080_s12  ;;  %1011 = vst.msk [vmem:[#allocation3 + $0x70] sm:$0xff] %vm996_vm5, %v929_v56  ;;  %v7485_v56 = vld [vmem:[#allocation29_spill] sm:$0xff] }
 0x132   : > { %1302 = vrot.lane.b32.xlu0 %v7471_v10, %s5080_s12 }
 0x133   : > { %v927_v63 = vpop.permute.xlu1 %926 }
 0x134   : > { %1010 = vst.msk [vmem:[#allocation3 + $0x68] sm:$0xff] %vm996_vm5, %v927_v63  ;;  %v933_v14 = vpop.permute.xlu0 %932  ;;  %v7486_v63 = vld [vmem:[#allocation30_spill] sm:$0xff] }
 0x135   : > { %1300 = vrot.lane.b32.xlu1 %v7472_v13, %s5080_s12  ;;  %1013 = vst.msk [vmem:[#allocation3 + $0x80] sm:$0xff] %vm996_vm5, %v933_v14  ;;  %v7487_v14 = vld [vmem:[#allocation31_spill] sm:$0xff] }
 0x136   : > { %1306 = vrot.lane.b32.xlu0 %v7473_v18, %s5080_s12 }
 0x137   : > { %v931_v17 = vpop.permute.xlu1 %930 }
 0x138   : > { %1012 = vst.msk [vmem:[#allocation3 + $0x78] sm:$0xff] %vm996_vm5, %v931_v17  ;;  %v937_v33 = vpop.permute.xlu0 %936  ;;  %v7488_v17 = vld [vmem:[#allocation32_spill] sm:$0xff] }
 0x139   : > { %1304 = vrot.lane.b32.xlu1 %v7474_v21, %s5080_s12  ;;  %1015 = vst.msk [vmem:[#allocation3 + $0x90] sm:$0xff] %vm996_vm5, %v937_v33  ;;  %v7489_v33 = vld [vmem:[#allocation33_spill] sm:$0xff] }
 0x13a   : > { %1310 = vrot.lane.b32.xlu0 %v7475_v46, %s5080_s12 }
 0x13b   : > { %v935_v22 = vpop.permute.xlu1 %934 }
 0x13c   : > { %1014 = vst.msk [vmem:[#allocation3 + $0x88] sm:$0xff] %vm996_vm5, %v935_v22  ;;  %v941_v29 = vpop.permute.xlu0 %940 }
 0x13d   : > { %1308 = vrot.lane.b32.xlu1 %v7476_v48, %s5080_s12  ;;  %1017 = vst.msk [vmem:[#allocation3 + $0xa0] sm:$0xff] %vm996_vm5, %v941_v29  ;;  %v5903_v48 = vld [vmem:[#allocation2 + $0x182] sm:$0xff] }
 0x13e   : > { %1314 = vrot.lane.b32.xlu0 %v7477_v49, %s5080_s12 }
 0x13f   : > { %v939_v36 = vpop.permute.xlu1 %938 }
 0x140   : > { %1016 = vst.msk [vmem:[#allocation3 + $0x98] sm:$0xff] %vm996_vm5, %v939_v36  ;;  %v945_v26 = vpop.permute.xlu0 %944  ;;  %v5913_v36 = vld [vmem:[#allocation2 + $0x18a] sm:$0xff] }
 0x141   : > { %1312 = vrot.lane.b32.xlu1 %v7478_v25, %s5080_s12  ;;  %1019 = vst.msk [vmem:[#allocation3 + $0xb0] sm:$0xff] %vm996_vm5, %v945_v26 }
 0x142   : > { %1318 = vrot.lane.b32.xlu0 %v7479_v30, %s5080_s12 }
 0x143   : > { %v943_v27 = vpop.permute.xlu1 %942 }
 0x144   : > { %1018 = vst.msk [vmem:[#allocation3 + $0xa8] sm:$0xff] %vm996_vm5, %v943_v27  ;;  %v949_v32 = vpop.permute.xlu0 %948 }
 0x145   : > { %1316 = vrot.lane.b32.xlu1 %v7480_v31, %s5080_s12  ;;  %1021 = vst.msk [vmem:[#allocation3 + $0xc0] sm:$0xff] %vm996_vm5, %v949_v32  ;;  %v2030_v31 = vld [vmem:[%s7392_s1 + $0x18] sm:$0xff] }
 0x146   : > { %1322 = vrot.lane.b32.xlu0 %v7481_v40, %s5080_s12  ;;  %v2032_v40 = vld [vmem:[%s7392_s1 + $0x28] sm:$0xff] }
 0x147   : > { %v947_v39 = vpop.permute.xlu1 %946 }
 0x148   : > { %1020 = vst.msk [vmem:[#allocation3 + $0xb8] sm:$0xff] %vm996_vm5, %v947_v39  ;;  %v953_v42 = vpop.permute.xlu0 %952  ;;  %v2031_v39 = vld [vmem:[%s7392_s1 + $0x20] sm:$0xff] }
 0x149   : > { %1320 = vrot.lane.b32.xlu1 %v7482_v41, %s5080_s12  ;;  %1023 = vst.msk [vmem:[#allocation3 + $0xd0] sm:$0xff] %vm996_vm5, %v953_v42  ;;  %v2033_v42 = vld [vmem:[%s7392_s1 + $0x30] sm:$0xff] }
 0x14a   : > { %1326 = vrot.lane.b32.xlu0 %v7483_v44, %s5080_s12 }
 0x14b   : > { %v951_v43 = vpop.permute.xlu1 %950 }
 0x14c   : > { %1022 = vst.msk [vmem:[#allocation3 + $0xc8] sm:$0xff] %vm996_vm5, %v951_v43  ;;  %v957_v50 = vpop.permute.xlu0 %956  ;;  %v2034_v43 = vld [vmem:[%s7392_s1 + $0x38] sm:$0xff] }
 0x14d   : > { %1324 = vrot.lane.b32.xlu1 %v7484_v47, %s5080_s12  ;;  %1025 = vst.msk [vmem:[#allocation3 + $0xe0] sm:$0xff] %vm996_vm5, %v957_v50  ;;  %v5030_v44 = vpack.c.bf16 %v2034_v43, %v2033_v42  ;;  %v1802_v50 = vld [vmem:[#allocation2 + $0x32] sm:$0xff]  ;;  %v1815_v43 = vld [vmem:[#allocation2 + $0xca] sm:$0xff] }
 0x14e   : > { %1330 = vrot.lane.b32.xlu0 %v7485_v56, %s5080_s12  ;;  %v1610_v56 = vld [vmem:[#allocation2 + $0x39] sm:$0xff] }
 0x14f   : > { %v955_v53 = vpop.permute.xlu1 %954 }
 0x150   : > { %1024 = vst.msk [vmem:[#allocation3 + $0xd8] sm:$0xff] %vm996_vm5, %v955_v53  ;;  %v961_v10 = vpop.permute.xlu0 %960  ;;  %v2035_v53 = vld [vmem:[%s7392_s1 + $0x40] sm:$0xff] }
 0x151   : > { %1328 = vrot.lane.b32.xlu1 %v7486_v63, %s5080_s12  ;;  %1027 = vst.msk [vmem:[#allocation3 + $0xf0] sm:$0xff] %vm996_vm5, %v961_v10  ;;  %v1611_v10 = vld [vmem:[#allocation2 + $0x49] sm:$0xff] }
 0x152   : > { %1334 = vrot.lane.b32.xlu0 %v7487_v14, %s5080_s12  ;;  %v1803_v14 = vld [vmem:[#allocation2 + $0x3a] sm:$0xff] }
 0x153   : > { %v959_v13 = vpop.permute.xlu1 %958 }
 0x154   : > { %1026 = vst.msk [vmem:[#allocation3 + $0xe8] sm:$0xff] %vm996_vm5, %v959_v13  ;;  %v1094_v18 = vpop.permute.xlu0 %1093 }
 0x155   : > { %1332 = vrot.lane.b32.xlu1 %v7488_v17, %s5080_s12  ;;  %1190 = vst.msk [vmem:[#allocation3] sm:$0xff] %vm1189_vm6, %v1094_v18  ;;  %v1804_v17 = vld [vmem:[#allocation2 + $0x4a] sm:$0xff] }
 0x156   : > { %1338 = vrot.lane.b32.xlu0 %v5597_v35, %s5080_s12 }
 0x157   : > { %v963_v21 = vpop.permute.xlu1 %962 }
 0x158   : > { %1028 = vst.msk [vmem:[#allocation3 + $0xf8] sm:$0xff] %vm996_vm5, %v963_v21  ;;  %v1098_v22 = vpop.permute.xlu0 %1097  ;;  %v1612_v21 = vld [vmem:[#allocation2 + $0x51] sm:$0xff] }
 0x159   : > { %1336 = vrot.lane.b32.xlu1 %v7489_v33, %s5080_s12  ;;  %1192 = vst.msk [vmem:[#allocation3 + $0x10] sm:$0xff] %vm1189_vm6, %v1098_v22  ;;  %v1613_v22 = vld [vmem:[#allocation2 + $0x61] sm:$0xff] }
 0x15a   : > { %1342 = vrot.lane.b32.xlu0 %v5607_v34, %s5080_s12 }
 0x15b   : > { %v1096_v46 = vpop.permute.xlu1 %1095 }
 0x15c   : > { %1191 = vst.msk [vmem:[#allocation3 + $0x8] sm:$0xff] %vm1189_vm6, %v1096_v46  ;;  %v1102_v35 = vpop.permute.xlu0 %1101 }
 0x15d   : > { %1340 = vrot.lane.b32.xlu1 %v5611_v38, %s5080_s12  ;;  %1194 = vst.msk [vmem:[#allocation3 + $0x20] sm:$0xff] %vm1189_vm6, %v1102_v35  ;;  %v1805_v35 = vld [vmem:[#allocation2 + $0x52] sm:$0xff] }
 0x15e   : > { %1346 = vrot.lane.b32.xlu0 %v5903_v48, %s5080_s12 }
 0x15f   : > { %v1100_v29 = vpop.permute.xlu1 %1099 }
 0x160   : > { %1193 = vst.msk [vmem:[#allocation3 + $0x18] sm:$0xff] %vm1189_vm6, %v1100_v29  ;;  %v1106_v34 = vpop.permute.xlu0 %1105 }
 0x161   : > { %1344 = vrot.lane.b32.xlu1 %v5619_v37, %s5080_s12  ;;  %1196 = vst.msk [vmem:[#allocation3 + $0x30] sm:$0xff] %vm1189_vm6, %v1106_v34  ;;  %v1806_v34 = vld [vmem:[#allocation2 + $0x62] sm:$0xff] }
 0x162   : > { %1480 = vrot.lane.b32.xlu0 %v5312_v51, %s5081_s13 }
 0x163   : > { %v1104_v49 = vpop.permute.xlu1 %1103 }
 0x164   : > { %1195 = vst.msk [vmem:[#allocation3 + $0x28] sm:$0xff] %vm1189_vm6, %v1104_v49  ;;  %v1110_v38 = vpop.permute.xlu0 %1109 }
 0x165   : > { %1348 = vrot.lane.b32.xlu1 %v5913_v36, %s5080_s12  ;;  %1198 = vst.msk [vmem:[#allocation3 + $0x40] sm:$0xff] %vm1189_vm6, %v1110_v38  ;;  %v1614_v38 = vld [vmem:[#allocation2 + $0x69] sm:$0xff] }
 0x166   : > { %1484 = vrot.lane.b32.xlu0 %v5324_v54, %s5081_s13 }
 0x167   : > { %v1108_v25 = vpop.permute.xlu1 %1107 }
 0x168   : > { %1197 = vst.msk [vmem:[#allocation3 + $0x38] sm:$0xff] %vm1189_vm6, %v1108_v25  ;;  %v1114_v37 = vpop.permute.xlu0 %1113 }
 0x169   : > { %1482 = vrot.lane.b32.xlu1 %v5314_v52, %s5081_s13  ;;  %1200 = vst.msk [vmem:[#allocation3 + $0x50] sm:$0xff] %vm1189_vm6, %v1114_v37  ;;  %v1615_v37 = vld [vmem:[#allocation2 + $0x79] sm:$0xff] }
 0x16a   : > { %1488 = vrot.lane.b32.xlu0 %v5334_v57, %s5081_s13 }
 0x16b   : > { %v1112_v51 = vpop.permute.xlu1 %1111 }
 0x16c   : > { %1199 = vst.msk [vmem:[#allocation3 + $0x48] sm:$0xff] %vm1189_vm6, %v1112_v51  ;;  %v1118_v26 = vpop.permute.xlu0 %1117 }
 0x16d   : > { %1486 = vrot.lane.b32.xlu1 %v5326_v55, %s5081_s13  ;;  %1202 = vst.msk [vmem:[#allocation3 + $0x60] sm:$0xff] %vm1189_vm6, %v1118_v26  ;;  %v1807_v26 = vld [vmem:[#allocation2 + $0x6a] sm:$0xff] }
 0x16e   : > { %1492 = vrot.lane.b32.xlu0 %v5338_v59, %s5081_s13 }
 0x16f   : > { %v1116_v54 = vpop.permute.xlu1 %1115 }
 0x170   : > { %1201 = vst.msk [vmem:[#allocation3 + $0x58] sm:$0xff] %vm1189_vm6, %v1116_v54  ;;  %v1122_v52 = vpop.permute.xlu0 %1121 }
 0x171   : > { %1490 = vrot.lane.b32.xlu1 %v5336_v58, %s5081_s13  ;;  %1204 = vst.msk [vmem:[#allocation3 + $0x70] sm:$0xff] %vm1189_vm6, %v1122_v52  ;;  %v1808_v52 = vld [vmem:[#allocation2 + $0x7a] sm:$0xff] }
 0x172   : > { %1496 = vrot.lane.b32.xlu0 %v5350_v61, %s5081_s13 }
 0x173   : > { %v1120_v57 = vpop.permute.xlu1 %1119 }
 0x174   : > { %1203 = vst.msk [vmem:[#allocation3 + $0x68] sm:$0xff] %vm1189_vm6, %v1120_v57  ;;  %v1126_v55 = vpop.permute.xlu0 %1125 }
 0x175   : > { %1494 = vrot.lane.b32.xlu1 %v5348_v60, %s5081_s13  ;;  %1206 = vst.msk [vmem:[#allocation3 + $0x80] sm:$0xff] %vm1189_vm6, %v1126_v55  ;;  %v1616_v55 = vld [vmem:[#allocation2 + $0x81] sm:$0xff] }
 0x176   : > { %1500 = vrot.lane.b32.xlu0 %v5362_v0, %s5081_s13 }
 0x177   : > { %v1124_v59 = vpop.permute.xlu1 %1123 }
 0x178   : > { %1205 = vst.msk [vmem:[#allocation3 + $0x78] sm:$0xff] %vm1189_vm6, %v1124_v59  ;;  %v1130_v58 = vpop.permute.xlu0 %1129 }
 0x179   : > { %1498 = vrot.lane.b32.xlu1 %v5352_v62, %s5081_s13  ;;  %1208 = vst.msk [vmem:[#allocation3 + $0x90] sm:$0xff] %vm1189_vm6, %v1130_v58  ;;  %v1617_v58 = vld [vmem:[#allocation2 + $0x91] sm:$0xff] }
 0x17a   : > { %1504 = vrot.lane.b32.xlu0 %v5366_v2, %s5081_s13 }
 0x17b   : > { %v1128_v61 = vpop.permute.xlu1 %1127 }
 0x17c   : > { %1207 = vst.msk [vmem:[#allocation3 + $0x88] sm:$0xff] %vm1189_vm6, %v1128_v61  ;;  %v1134_v60 = vpop.permute.xlu0 %1133 }
 0x17d   : > { %1502 = vrot.lane.b32.xlu1 %v5364_v1, %s5081_s13  ;;  %1210 = vst.msk [vmem:[#allocation3 + $0xa0] sm:$0xff] %vm1189_vm6, %v1134_v60  ;;  %v1809_v60 = vld [vmem:[#allocation2 + $0x82] sm:$0xff] }
 0x17e   : > { %1508 = vrot.lane.b32.xlu0 %v5378_v4, %s5081_s13 }
 0x17f   : > { %v1132_v0 = vpop.permute.xlu1 %1131 }
 0x180   : > { %1209 = vst.msk [vmem:[#allocation3 + $0x98] sm:$0xff] %vm1189_vm6, %v1132_v0  ;;  %v1138_v62 = vpop.permute.xlu0 %1137 }
 0x181   : > { %1506 = vrot.lane.b32.xlu1 %v5376_v3, %s5081_s13  ;;  %1212 = vst.msk [vmem:[#allocation3 + $0xb0] sm:$0xff] %vm1189_vm6, %v1138_v62  ;;  %v1810_v62 = vld [vmem:[#allocation2 + $0x92] sm:$0xff] }
 0x182   : > { %1512 = vrot.lane.b32.xlu0 %v5388_v6, %s5081_s13 }
 0x183   : > { %v1136_v2 = vpop.permute.xlu1 %1135 }
 0x184   : > { %1211 = vst.msk [vmem:[#allocation3 + $0xa8] sm:$0xff] %vm1189_vm6, %v1136_v2  ;;  %v1142_v1 = vpop.permute.xlu0 %1141 }
 0x185   : > { %1510 = vrot.lane.b32.xlu1 %v5380_v5, %s5081_s13  ;;  %1214 = vst.msk [vmem:[#allocation3 + $0xc0] sm:$0xff] %vm1189_vm6, %v1142_v1  ;;  %v2027_v5 = vld [vmem:[%s7392_s1] sm:$0xff] }
 0x186   : > { %1516 = vrot.lane.b32.xlu0 %v5392_v8, %s5081_s13  ;;  %v2028_v8 = vld [vmem:[%s7392_s1 + $0x8] sm:$0xff]  ;;  %v1618_v1 = vld [vmem:[#allocation2 + $0x99] sm:$0xff] }
 0x187   : > { %v1140_v4 = vpop.permute.xlu1 %1139  ;;  %v5018_v27 = vpack.c.bf16 %v2028_v8, %v2027_v5  ;;  %v1811_v5 = vld [vmem:[#allocation2 + $0x9a] sm:$0xff] }
 0x188   : > { %1213 = vst.msk [vmem:[#allocation3 + $0xb8] sm:$0xff] %vm1189_vm6, %v1140_v4  ;;  %v1146_v3 = vpop.permute.xlu0 %1145 }
 0x189   : > { %1514 = vrot.lane.b32.xlu1 %v5390_v7, %s5081_s13  ;;  %1216 = vst.msk [vmem:[#allocation3 + $0xd0] sm:$0xff] %vm1189_vm6, %v1146_v3  ;;  %5019 = vmatprep.subr.bf16.mxu0 %v5018_v27  ;;  %v1619_v3 = vld [vmem:[#allocation2 + $0xa9] sm:$0xff] }
 0x18a   : > { %1520 = vrot.lane.b32.xlu0 %v5410_v11, %s5081_s13  ;;  %5021 = vmatpush3.bf16.msra.mxu0 %v5018_v27  ;;  %v2029_v11 = vld [vmem:[%s7392_s1 + $0x10] sm:$0xff] }
 0x18b   : > { %v1144_v6 = vpop.permute.xlu1 %1143  ;;  %v1812_v27 = vld [vmem:[#allocation2 + $0xaa] sm:$0xff] }
 0x18c   : > { %1215 = vst.msk [vmem:[#allocation3 + $0xc8] sm:$0xff] %vm1189_vm6, %v1144_v6  ;;  %v1150_v7 = vpop.permute.xlu0 %1149 }
 0x18d   : > { %1518 = vrot.lane.b32.xlu1 %v5402_v9, %s5081_s13  ;;  %1218 = vst.msk [vmem:[#allocation3 + $0xe0] sm:$0xff] %vm1189_vm6, %v1150_v7  ;;  %v5022_v9 = vpack.c.bf16 %v2030_v31, %v2029_v11  ;;  %v1621_v31 = vld [vmem:[#allocation2 + $0xc1] sm:$0xff] }
 0x18e   : > { %1524 = vrot.lane.b32.xlu0 %v5426_v15, %s5081_s13 }
 0x18f   : > { %v1148_v30 = vpop.permute.xlu1 %1147  ;;  %5023 = vmatprep.subr.bf16.mxu0 %v5022_v9 }
 0x190   : > { %1217 = vst.msk [vmem:[#allocation3 + $0xd8] sm:$0xff] %vm1189_vm6, %v1148_v30  ;;  %v1154_v32 = vpop.permute.xlu0 %1153  ;;  %5025 = vmatpush3.bf16.msra.mxu0 %v5022_v9  ;;  %v1620_v30 = vld [vmem:[#allocation2 + $0xb1] sm:$0xff] }
 0x191   : > { %1522 = vrot.lane.b32.xlu1 %v5412_v12, %s5081_s13  ;;  %1220 = vst.msk [vmem:[#allocation3 + $0xf0] sm:$0xff] %vm1189_vm6, %v1154_v32  ;;  %v5026_v12 = vpack.c.bf16 %v2032_v40, %v2031_v39  ;;  %v1813_v32 = vld [vmem:[#allocation2 + $0xb2] sm:$0xff]  ;;  %v1814_v39 = vld [vmem:[#allocation2 + $0xc2] sm:$0xff] }
 0x192   : > { %1528 = vrot.lane.b32.xlu0 %v5442_v19, %s5081_s13 }
 0x193   : > { %v1152_v15 = vpop.permute.xlu1 %1151  ;;  %5027 = vmatprep.subr.bf16.mxu0 %v5026_v12 }
 0x194   : > { %1219 = vst.msk [vmem:[#allocation3 + $0xe8] sm:$0xff] %vm1189_vm6, %v1152_v15  ;;  %v1287_v41 = vpop.permute.xlu0 %1286  ;;  %5029 = vmatpush3.bf16.msra.mxu0 %v5026_v12  ;;  %v1622_v12 = vld [vmem:[#allocation2 + $0xc9] sm:$0xff] }
 0x195   : > { %1526 = vrot.lane.b32.xlu1 %v5428_v16, %s5081_s13  ;;  %1383 = vst.msk [vmem:[#allocation3] sm:$0xff] %vm1382_vm7, %v1287_v41  ;;  %v1609_v16 = vld [vmem:[#allocation2 + $0x31] sm:$0xff]  ;;  %5031 = vmatprep.subr.bf16.mxu0 %v5030_v44 }
 0x196   : > { %1532 = vrot.lane.b32.xlu0 %v5458_v23, %s5081_s13 }
 0x197   : > { %v1156_v19 = vpop.permute.xlu1 %1155 }
 0x198   : > { %1221 = vst.msk [vmem:[#allocation3 + $0xf8] sm:$0xff] %vm1189_vm6, %v1156_v19  ;;  %v1291_v47 = vpop.permute.xlu0 %1290  ;;  %5033 = vmatpush3.bf16.msra.mxu0 %v5030_v44  ;;  %v1623_v19 = vld [vmem:[#allocation2 + $0xd9] sm:$0xff] }
 0x199   : > { %1530 = vrot.lane.b32.xlu1 %v5444_v20, %s5081_s13  ;;  %1385 = vst.msk [vmem:[#allocation3 + $0x10] sm:$0xff] %vm1382_vm7, %v1291_v47  ;;  %4902 = vmatprep.subr.mxu0 %v2035_v53  ;;  %v1816_v44 = vld [vmem:[#allocation2 + $0xda] sm:$0xff] }
 0x19a   : > { %1673 = vrot.lane.b32.xlu0 %v1609_v16, %s5082_s17 }
 0x19b   : > { %v1289_v23 = vpop.permute.xlu1 %1288 }
 0x19c   : > { %1384 = vst.msk [vmem:[#allocation3 + $0x8] sm:$0xff] %vm1382_vm7, %v1289_v23  ;;  %v1295_v20 = vpop.permute.xlu0 %1294  ;;  %4903 = vmatpush3.msra.mxu0 %v2035_v53  ;;  %v1624_v23 = vld [vmem:[#allocation2 + $0xe1] sm:$0xff]  ;;  %v1625_v53 = vld [vmem:[#allocation2 + $0xf1] sm:$0xff] }
 0x19d   : > { %1534 = vrot.lane.b32.xlu1 %v5460_v24, %s5081_s13  ;;  %1387 = vst.msk [vmem:[#allocation3 + $0x20] sm:$0xff] %vm1382_vm7, %v1295_v20 }
 0x19e   : > { %1866 = vrot.lane.b32.xlu0 %v1802_v50, %s5083_s20 }
 0x19f   : > { %v1293_v63 = vpop.permute.xlu1 %1292 }
 0x1a0   : > { %1386 = vst.msk [vmem:[#allocation3 + $0x18] sm:$0xff] %vm1382_vm7, %v1293_v63  ;;  %v1299_v13 = vpop.permute.xlu0 %1298 }
 0x1a1   : > { %1675 = vrot.lane.b32.xlu1 %v1610_v56, %s5082_s17  ;;  %1389 = vst.msk [vmem:[#allocation3 + $0x30] sm:$0xff] %vm1382_vm7, %v1299_v13  ;;  %v1817_v56 = vld [vmem:[#allocation2 + $0xe2] sm:$0xff] }
 0x1a2   : > { %1677 = vrot.lane.b32.xlu0 %v1611_v10, %s5082_s17  ;;  %v1818_v10 = vld [vmem:[#allocation2 + $0xf2] sm:$0xff] }
 0x1a3   : > { %v1297_v24 = vpop.permute.xlu1 %1296 }
 0x1a4   : > { %1388 = vst.msk [vmem:[#allocation3 + $0x28] sm:$0xff] %vm1382_vm7, %v1297_v24  ;;  %v1303_v18 = vpop.permute.xlu0 %1302 }
 0x1a5   : > { %1868 = vrot.lane.b32.xlu1 %v1803_v14, %s5083_s20  ;;  %1391 = vst.msk [vmem:[#allocation3 + $0x40] sm:$0xff] %vm1382_vm7, %v1303_v18  ;;  %v1626_v14 = vld [vmem:[#allocation2 + $0xf9] sm:$0xff] }
 0x1a6   : > { %1870 = vrot.lane.b32.xlu0 %v1804_v17, %s5083_s20  ;;  %v1627_v17 = vld [vmem:[#allocation2 + $0x109] sm:$0xff] }
 0x1a7   : > { %v1301_v33 = vpop.permute.xlu1 %1300 }
 0x1a8   : > { %1390 = vst.msk [vmem:[#allocation3 + $0x38] sm:$0xff] %vm1382_vm7, %v1301_v33  ;;  %v1307_v46 = vpop.permute.xlu0 %1306 }
 0x1a9   : > { %1679 = vrot.lane.b32.xlu1 %v1612_v21, %s5082_s17  ;;  %1393 = vst.msk [vmem:[#allocation3 + $0x50] sm:$0xff] %vm1382_vm7, %v1307_v46  ;;  %v1819_v21 = vld [vmem:[#allocation2 + $0xfa] sm:$0xff] }
 0x1aa   : > { %1681 = vrot.lane.b32.xlu0 %v1613_v22, %s5082_s17  ;;  %v1820_v22 = vld [vmem:[#allocation2 + $0x10a] sm:$0xff] }
 0x1ab   : > { %v1305_v29 = vpop.permute.xlu1 %1304 }
 0x1ac   : > { %1392 = vst.msk [vmem:[#allocation3 + $0x48] sm:$0xff] %vm1382_vm7, %v1305_v29  ;;  %v1311_v49 = vpop.permute.xlu0 %1310 }
 0x1ad   : > { %1872 = vrot.lane.b32.xlu1 %v1805_v35, %s5083_s20  ;;  %1395 = vst.msk [vmem:[#allocation3 + $0x60] sm:$0xff] %vm1382_vm7, %v1311_v49  ;;  %v1628_v35 = vld [vmem:[#allocation2 + $0x111] sm:$0xff] }
 0x1ae   : > { %1874 = vrot.lane.b32.xlu0 %v1806_v34, %s5083_s20  ;;  %v1629_v34 = vld [vmem:[#allocation2 + $0x121] sm:$0xff] }
 0x1af   : > { %v1309_v25 = vpop.permute.xlu1 %1308 }
 0x1b0   : > { %1394 = vst.msk [vmem:[#allocation3 + $0x58] sm:$0xff] %vm1382_vm7, %v1309_v25  ;;  %v1315_v51 = vpop.permute.xlu0 %1314 }
 0x1b1   : > { %1683 = vrot.lane.b32.xlu1 %v1614_v38, %s5082_s17  ;;  %1397 = vst.msk [vmem:[#allocation3 + $0x70] sm:$0xff] %vm1382_vm7, %v1315_v51  ;;  %v1821_v38 = vld [vmem:[#allocation2 + $0x112] sm:$0xff] }
 0x1b2   : > { %1685 = vrot.lane.b32.xlu0 %v1615_v37, %s5082_s17  ;;  %v1822_v37 = vld [vmem:[#allocation2 + $0x122] sm:$0xff] }
 0x1b3   : > { %v1313_v54 = vpop.permute.xlu1 %1312 }
 0x1b4   : > { %1396 = vst.msk [vmem:[#allocation3 + $0x68] sm:$0xff] %vm1382_vm7, %v1313_v54  ;;  %v1319_v57 = vpop.permute.xlu0 %1318 }
 0x1b5   : > { %1876 = vrot.lane.b32.xlu1 %v1807_v26, %s5083_s20  ;;  %1399 = vst.msk [vmem:[#allocation3 + $0x80] sm:$0xff] %vm1382_vm7, %v1319_v57  ;;  %v1630_v26 = vld [vmem:[#allocation2 + $0x129] sm:$0xff] }
 0x1b6   : > { %1878 = vrot.lane.b32.xlu0 %v1808_v52, %s5083_s20  ;;  %v1631_v52 = vld [vmem:[#allocation2 + $0x139] sm:$0xff] }
 0x1b7   : > { %v1317_v59 = vpop.permute.xlu1 %1316 }
 0x1b8   : > { %1398 = vst.msk [vmem:[#allocation3 + $0x78] sm:$0xff] %vm1382_vm7, %v1317_v59  ;;  %v1323_v61 = vpop.permute.xlu0 %1322 }
 0x1b9   : > { %1687 = vrot.lane.b32.xlu1 %v1616_v55, %s5082_s17  ;;  %1401 = vst.msk [vmem:[#allocation3 + $0x90] sm:$0xff] %vm1382_vm7, %v1323_v61  ;;  %v1823_v55 = vld [vmem:[#allocation2 + $0x12a] sm:$0xff] }
 0x1ba   : > { %1689 = vrot.lane.b32.xlu0 %v1617_v58, %s5082_s17  ;;  %v1824_v58 = vld [vmem:[#allocation2 + $0x13a] sm:$0xff] }
 0x1bb   : > { %v1321_v0 = vpop.permute.xlu1 %1320 }
 0x1bc   : > { %1400 = vst.msk [vmem:[#allocation3 + $0x88] sm:$0xff] %vm1382_vm7, %v1321_v0  ;;  %v1327_v2 = vpop.permute.xlu0 %1326 }
 0x1bd   : > { %1880 = vrot.lane.b32.xlu1 %v1809_v60, %s5083_s20  ;;  %1403 = vst.msk [vmem:[#allocation3 + $0xa0] sm:$0xff] %vm1382_vm7, %v1327_v2  ;;  %v1632_v60 = vld [vmem:[#allocation2 + $0x141] sm:$0xff] }
 0x1be   : > { %1882 = vrot.lane.b32.xlu0 %v1810_v62, %s5083_s20  ;;  %v1633_v62 = vld [vmem:[#allocation2 + $0x151] sm:$0xff] }
 0x1bf   : > { %v1325_v4 = vpop.permute.xlu1 %1324 }
 0x1c0   : > { %1402 = vst.msk [vmem:[#allocation3 + $0x98] sm:$0xff] %vm1382_vm7, %v1325_v4  ;;  %v1331_v6 = vpop.permute.xlu0 %1330 }
 0x1c1   : > { %1691 = vrot.lane.b32.xlu1 %v1618_v1, %s5082_s17  ;;  %1405 = vst.msk [vmem:[#allocation3 + $0xb0] sm:$0xff] %vm1382_vm7, %v1331_v6  ;;  %v1825_v1 = vld [vmem:[#allocation2 + $0x142] sm:$0xff] }
 0x1c2   : > { %1693 = vrot.lane.b32.xlu0 %v1619_v3, %s5082_s17  ;;  %v1826_v3 = vld [vmem:[#allocation2 + $0x152] sm:$0xff] }
 0x1c3   : > { %v1329_v8 = vpop.permute.xlu1 %1328 }
 0x1c4   : > { %1404 = vst.msk [vmem:[#allocation3 + $0xa8] sm:$0xff] %vm1382_vm7, %v1329_v8  ;;  %v1335_v7 = vpop.permute.xlu0 %1334 }
 0x1c5   : > { %1884 = vrot.lane.b32.xlu1 %v1811_v5, %s5083_s20  ;;  %1407 = vst.msk [vmem:[#allocation3 + $0xc0] sm:$0xff] %vm1382_vm7, %v1335_v7  ;;  %v1634_v5 = vld [vmem:[#allocation2 + $0x159] sm:$0xff] }
 0x1c6   : > { %1886 = vrot.lane.b32.xlu0 %v1812_v27, %s5083_s20  ;;  %v1635_v27 = vld [vmem:[#allocation2 + $0x169] sm:$0xff] }
 0x1c7   : > { %v1333_v11 = vpop.permute.xlu1 %1332 }
 0x1c8   : > { %1406 = vst.msk [vmem:[#allocation3 + $0xb8] sm:$0xff] %vm1382_vm7, %v1333_v11  ;;  %v1339_v9 = vpop.permute.xlu0 %1338 }
 0x1c9   : > { %1695 = vrot.lane.b32.xlu1 %v1620_v30, %s5082_s17  ;;  %1409 = vst.msk [vmem:[#allocation3 + $0xd0] sm:$0xff] %vm1382_vm7, %v1339_v9  ;;  %v1827_v30 = vld [vmem:[#allocation2 + $0x15a] sm:$0xff] }
 0x1ca   : > { %1697 = vrot.lane.b32.xlu0 %v1621_v31, %s5082_s17  ;;  %v1828_v31 = vld [vmem:[#allocation2 + $0x16a] sm:$0xff] }
 0x1cb   : > { %v1337_v15 = vpop.permute.xlu1 %1336 }
 0x1cc   : > { %1408 = vst.msk [vmem:[#allocation3 + $0xc8] sm:$0xff] %vm1382_vm7, %v1337_v15  ;;  %v1343_v40 = vpop.permute.xlu0 %1342 }
 0x1cd   : > { %1888 = vrot.lane.b32.xlu1 %v1813_v32, %s5083_s20  ;;  %1411 = vst.msk [vmem:[#allocation3 + $0xe0] sm:$0xff] %vm1382_vm7, %v1343_v40  ;;  %v1636_v32 = vld [vmem:[#allocation2 + $0x171] sm:$0xff] }
 0x1ce   : > { %1890 = vrot.lane.b32.xlu0 %v1814_v39, %s5083_s20  ;;  %v1444_v39 = vld [vmem:[#allocation2 + $0x180] sm:$0xff] }
 0x1cf   : > { %v1341_v41 = vpop.permute.xlu1 %1340 }
 0x1d0   : > { %1410 = vst.msk [vmem:[#allocation3 + $0xd8] sm:$0xff] %vm1382_vm7, %v1341_v41  ;;  %v1347_v42 = vpop.permute.xlu0 %1346 }
 0x1d1   : > { %1699 = vrot.lane.b32.xlu1 %v1622_v12, %s5082_s17  ;;  %1413 = vst.msk [vmem:[#allocation3 + $0xf0] sm:$0xff] %vm1382_vm7, %v1347_v42  ;;  %v1829_v12 = vld [vmem:[#allocation2 + $0x172] sm:$0xff]  ;;  %v1445_v42 = vld [vmem:[#allocation2 + $0x188] sm:$0xff] }
 0x1d2   : > { %1701 = vrot.lane.b32.xlu0 %v1623_v19, %s5082_s17 }
 0x1d3   : > { %v1345_v16 = vpop.permute.xlu1 %1344 }
 0x1d4   : > { %1412 = vst.msk [vmem:[#allocation3 + $0xe8] sm:$0xff] %vm1382_vm7, %v1345_v16  ;;  %v1481_v47 = vpop.permute.xlu0 %1480 }
 0x1d5   : > { %1892 = vrot.lane.b32.xlu1 %v1815_v43, %s5083_s20  ;;  %1577 = vst.msk [vmem:[#allocation3] sm:$0xff] %vm1576_vm8, %v1481_v47  ;;  %v1446_v47 = vld [vmem:[#allocation2 + $0x198] sm:$0xff] }
 0x1d6   : > { %1894 = vrot.lane.b32.xlu0 %v1816_v44, %s5083_s20 }
 0x1d7   : > { %v1349_v50 = vpop.permute.xlu1 %1348 }
 0x1d8   : > { %1414 = vst.msk [vmem:[#allocation3 + $0xf8] sm:$0xff] %vm1382_vm7, %v1349_v50  ;;  %v1485_v20 = vpop.permute.xlu0 %1484 }
 0x1d9   : > { %1703 = vrot.lane.b32.xlu1 %v1624_v23, %s5082_s17  ;;  %1579 = vst.msk [vmem:[#allocation3 + $0x10] sm:$0xff] %vm1576_vm8, %v1485_v20 }
 0x1da   : > { %1705 = vrot.lane.b32.xlu0 %v1625_v53, %s5082_s17  ;;  %v1447_v53 = vld [vmem:[#allocation2 + $0x1a0] sm:$0xff] }
 0x1db   : > { %v1483_v63 = vpop.permute.xlu1 %1482 }
 0x1dc   : > { %1578 = vst.msk [vmem:[#allocation3 + $0x8] sm:$0xff] %vm1576_vm8, %v1483_v63  ;;  %v1489_v13 = vpop.permute.xlu0 %1488 }
 0x1dd   : > { %1896 = vrot.lane.b32.xlu1 %v1817_v56, %s5083_s20  ;;  %1581 = vst.msk [vmem:[#allocation3 + $0x20] sm:$0xff] %vm1576_vm8, %v1489_v13 }
 0x1de   : > { %1898 = vrot.lane.b32.xlu0 %v1818_v10, %s5083_s20 }
 0x1df   : > { %v1487_v24 = vpop.permute.xlu1 %1486 }
 0x1e0   : > { %1580 = vst.msk [vmem:[#allocation3 + $0x18] sm:$0xff] %vm1576_vm8, %v1487_v24  ;;  %v1493_v18 = vpop.permute.xlu0 %1492 }
 0x1e1   : > { %1707 = vrot.lane.b32.xlu1 %v1626_v14, %s5082_s17  ;;  %1583 = vst.msk [vmem:[#allocation3 + $0x30] sm:$0xff] %vm1576_vm8, %v1493_v18 }
 0x1e2   : > { %1709 = vrot.lane.b32.xlu0 %v1627_v17, %s5082_s17 }
 0x1e3   : > { %v1491_v33 = vpop.permute.xlu1 %1490 }
 0x1e4   : > { %1582 = vst.msk [vmem:[#allocation3 + $0x28] sm:$0xff] %vm1576_vm8, %v1491_v33  ;;  %v1497_v46 = vpop.permute.xlu0 %1496 }
 0x1e5   : > { %1900 = vrot.lane.b32.xlu1 %v1819_v21, %s5083_s20  ;;  %1585 = vst.msk [vmem:[#allocation3 + $0x40] sm:$0xff] %vm1576_vm8, %v1497_v46 }
 0x1e6   : > { %1902 = vrot.lane.b32.xlu0 %v1820_v22, %s5083_s20 }
 0x1e7   : > { %v1495_v29 = vpop.permute.xlu1 %1494 }
 0x1e8   : > { %1584 = vst.msk [vmem:[#allocation3 + $0x38] sm:$0xff] %vm1576_vm8, %v1495_v29  ;;  %v1501_v49 = vpop.permute.xlu0 %1500 }
 0x1e9   : > { %1711 = vrot.lane.b32.xlu1 %v1628_v35, %s5082_s17  ;;  %1587 = vst.msk [vmem:[#allocation3 + $0x50] sm:$0xff] %vm1576_vm8, %v1501_v49 }
 0x1ea   : > { %1713 = vrot.lane.b32.xlu0 %v1629_v34, %s5082_s17 }
 0x1eb   : > { %v1499_v25 = vpop.permute.xlu1 %1498 }
 0x1ec   : > { %1586 = vst.msk [vmem:[#allocation3 + $0x48] sm:$0xff] %vm1576_vm8, %v1499_v25  ;;  %v1505_v51 = vpop.permute.xlu0 %1504 }
 0x1ed   : > { %1904 = vrot.lane.b32.xlu1 %v1821_v38, %s5083_s20  ;;  %1589 = vst.msk [vmem:[#allocation3 + $0x60] sm:$0xff] %vm1576_vm8, %v1505_v51 }
 0x1ee   : > { %1906 = vrot.lane.b32.xlu0 %v1822_v37, %s5083_s20 }
 0x1ef   : > { %v1503_v54 = vpop.permute.xlu1 %1502 }
 0x1f0   : > { %1588 = vst.msk [vmem:[#allocation3 + $0x58] sm:$0xff] %vm1576_vm8, %v1503_v54  ;;  %v1509_v57 = vpop.permute.xlu0 %1508 }
 0x1f1   : > { %1715 = vrot.lane.b32.xlu1 %v1630_v26, %s5082_s17  ;;  %1591 = vst.msk [vmem:[#allocation3 + $0x70] sm:$0xff] %vm1576_vm8, %v1509_v57 }
 0x1f2   : > { %1717 = vrot.lane.b32.xlu0 %v1631_v52, %s5082_s17 }
 0x1f3   : > { %v1507_v59 = vpop.permute.xlu1 %1506 }
 0x1f4   : > { %1590 = vst.msk [vmem:[#allocation3 + $0x68] sm:$0xff] %vm1576_vm8, %v1507_v59  ;;  %v1513_v61 = vpop.permute.xlu0 %1512 }
 0x1f5   : > { %1908 = vrot.lane.b32.xlu1 %v1823_v55, %s5083_s20  ;;  %1593 = vst.msk [vmem:[#allocation3 + $0x80] sm:$0xff] %vm1576_vm8, %v1513_v61 }
 0x1f6   : > { %1910 = vrot.lane.b32.xlu0 %v1824_v58, %s5083_s20 }
 0x1f7   : > { %v1511_v0 = vpop.permute.xlu1 %1510 }
 0x1f8   : > { %1592 = vst.msk [vmem:[#allocation3 + $0x78] sm:$0xff] %vm1576_vm8, %v1511_v0  ;;  %v1517_v2 = vpop.permute.xlu0 %1516 }
 0x1f9   : > { %1719 = vrot.lane.b32.xlu1 %v1632_v60, %s5082_s17  ;;  %1595 = vst.msk [vmem:[#allocation3 + $0x90] sm:$0xff] %vm1576_vm8, %v1517_v2 }
 0x1fa   : > { %1721 = vrot.lane.b32.xlu0 %v1633_v62, %s5082_s17 }
 0x1fb   : > { %v1515_v4 = vpop.permute.xlu1 %1514 }
 0x1fc   : > { %1594 = vst.msk [vmem:[#allocation3 + $0x88] sm:$0xff] %vm1576_vm8, %v1515_v4  ;;  %v1521_v6 = vpop.permute.xlu0 %1520 }
 0x1fd   : > { %1912 = vrot.lane.b32.xlu1 %v1825_v1, %s5083_s20  ;;  %1597 = vst.msk [vmem:[#allocation3 + $0xa0] sm:$0xff] %vm1576_vm8, %v1521_v6 }
 0x1fe   : > { %1914 = vrot.lane.b32.xlu0 %v1826_v3, %s5083_s20 }
 0x1ff   : > { %v1519_v8 = vpop.permute.xlu1 %1518 }
 0x200   : > { %1596 = vst.msk [vmem:[#allocation3 + $0x98] sm:$0xff] %vm1576_vm8, %v1519_v8  ;;  %v1525_v7 = vpop.permute.xlu0 %1524 }
 0x201   : > { %1723 = vrot.lane.b32.xlu1 %v1634_v5, %s5082_s17  ;;  %1599 = vst.msk [vmem:[#allocation3 + $0xb0] sm:$0xff] %vm1576_vm8, %v1525_v7 }
 0x202   : > { %1725 = vrot.lane.b32.xlu0 %v1635_v27, %s5082_s17 }
 0x203   : > { %v1523_v11 = vpop.permute.xlu1 %1522 }
 0x204   : > { %1598 = vst.msk [vmem:[#allocation3 + $0xa8] sm:$0xff] %vm1576_vm8, %v1523_v11  ;;  %v1529_v9 = vpop.permute.xlu0 %1528 }
 0x205   : > { %1916 = vrot.lane.b32.xlu1 %v1827_v30, %s5083_s20  ;;  %1601 = vst.msk [vmem:[#allocation3 + $0xc0] sm:$0xff] %vm1576_vm8, %v1529_v9 }
 0x206   : > { %1918 = vrot.lane.b32.xlu0 %v1828_v31, %s5083_s20 }
 0x207   : > { %v1527_v15 = vpop.permute.xlu1 %1526 }
 0x208   : > { %1600 = vst.msk [vmem:[#allocation3 + $0xb8] sm:$0xff] %vm1576_vm8, %v1527_v15  ;;  %v1533_v40 = vpop.permute.xlu0 %1532 }
 0x209   : > { %1727 = vrot.lane.b32.xlu1 %v1636_v32, %s5082_s17  ;;  %1603 = vst.msk [vmem:[#allocation3 + $0xd0] sm:$0xff] %vm1576_vm8, %v1533_v40 }
 0x20a   : > { %1536 = vrot.lane.b32.xlu0 %v1444_v39, %s5081_s13 }
 0x20b   : > { %v1531_v41 = vpop.permute.xlu1 %1530 }
 0x20c   : > { %1602 = vst.msk [vmem:[#allocation3 + $0xc8] sm:$0xff] %vm1576_vm8, %v1531_v41  ;;  %v1674_v19 = vpop.permute.xlu0 %1673 }
 0x20d   : > { %1920 = vrot.lane.b32.xlu1 %v1829_v12, %s5083_s20  ;;  %1770 = vst.msk [vmem:[#allocation3] sm:$0xff] %vm1769_vm9, %v1674_v19 }
 0x20e   : > { %1729 = vrot.lane.b32.xlu0 %v5803_v28, %s5082_s17 }
 0x20f   : > { %v1535_v43 = vpop.permute.xlu1 %1534 }
 0x210   : > { %1604 = vst.msk [vmem:[#allocation3 + $0xd8] sm:$0xff] %vm1576_vm8, %v1535_v43  ;;  %v1867_v16 = vpop.permute.xlu0 %1866 }
 0x211   : > { %1538 = vrot.lane.b32.xlu1 %v1445_v42, %s5081_s13  ;;  %1963 = vst.msk [vmem:[#allocation3] sm:$0xff] %vm1962_vm10, %v1867_v16 }
 0x212   : > { %1922 = vrot.lane.b32.xlu0 %v5903_v48, %s5083_s20 }
 0x213   : > { %v1676_v44 = vpop.permute.xlu1 %1675 }
 0x214   : > { %1771 = vst.msk [vmem:[#allocation3 + $0x8] sm:$0xff] %vm1769_vm9, %v1676_v44  ;;  %v1678_v23 = vpop.permute.xlu0 %1677 }
 0x215   : > { %1731 = vrot.lane.b32.xlu1 %v5813_v45, %s5082_s17  ;;  %1772 = vst.msk [vmem:[#allocation3 + $0x10] sm:$0xff] %vm1769_vm9, %v1678_v23 }
 0x216   : > { %1540 = vrot.lane.b32.xlu0 %v1446_v47, %s5081_s13 }
 0x217   : > { %v1869_v28 = vpop.permute.xlu1 %1868 }
 0x218   : > { %1964 = vst.msk [vmem:[#allocation3 + $0x8] sm:$0xff] %vm1962_vm10, %v1869_v28  ;;  %v1871_v50 = vpop.permute.xlu0 %1870  ;;  %v1995_v48 = vld [vmem:[#allocation3] sm:$0xff] }
 0x219   : > { %1924 = vrot.lane.b32.xlu1 %v5913_v36, %s5083_s20  ;;  %1965 = vst.msk [vmem:[#allocation3 + $0x10] sm:$0xff] %vm1962_vm10, %v1871_v50  ;;  %4904 = vmatprep.mubr.msk.f32.mxu0 %vm2036_vm11, %v1995_v48 }
 0x21b   : > { %v1680_v45 = vpop.permute.xlu1 %1679 }
 0x21c   : > { %1773 = vst.msk [vmem:[#allocation3 + $0x18] sm:$0xff] %vm1769_vm9, %v1680_v45  ;;  %v1682_v20 = vpop.permute.xlu0 %1681 }
 0x21d   : > { %1542 = vrot.lane.b32.xlu1 %v1447_v53, %s5081_s13  ;;  %1774 = vst.msk [vmem:[#allocation3 + $0x20] sm:$0xff] %vm1769_vm9, %v1682_v20 }
 0x21f   : > { %v1873_v56 = vpop.permute.xlu1 %1872  ;;  %v1996_v63 = vld [vmem:[#allocation3 + $0x8] sm:$0xff] }
 0x220   : > { %1966 = vst.msk [vmem:[#allocation3 + $0x18] sm:$0xff] %vm1962_vm10, %v1873_v56  ;;  %4905 = vmatmul.mubr.msk.f32.vlgmr.msra.gmra.mrb[0].mxu0 %vm2036_vm11, %v1996_v63  ;;  %v1875_v36 = vpop.permute.xlu0 %1874  ;;  %v1997_v10 = vld [vmem:[#allocation3 + $0x10] sm:$0xff] }
 0x221   : > { %1967 = vst.msk [vmem:[#allocation3 + $0x20] sm:$0xff] %vm1962_vm10, %v1875_v36  ;;  %4907 = vmatprep.mubr.msk.f32.mxu0 %vm2036_vm11, %v1997_v10  ;;  %v1640_v36 = vld [vmem:[#allocation2 + $0x1a1] sm:$0xff]  ;;  %v1639_v10 = vld [vmem:[#allocation2 + $0x199] sm:$0xff] }
 0x222   : > { %1735 = vrot.lane.b32.xlu1 %v1640_v36, %s5082_s17  ;;  %1733 = vrot.lane.b32.xlu0 %v1639_v10, %s5082_s17 }
 0x223   : > { %v1684_v13 = vpop.permute.xlu1 %1683 }
 0x224   : > { %1775 = vst.msk [vmem:[#allocation3 + $0x28] sm:$0xff] %vm1769_vm9, %v1684_v13  ;;  %v1686_v14 = vpop.permute.xlu0 %1685 }
 0x225   : > { %1776 = vst.msk [vmem:[#allocation3 + $0x30] sm:$0xff] %vm1769_vm9, %v1686_v14 }
 0x227   : > { %v1877_v24 = vpop.permute.xlu1 %1876  ;;  %v1998_v17 = vld [vmem:[#allocation3 + $0x18] sm:$0xff] }
 0x228   : > { %1968 = vst.msk [vmem:[#allocation3 + $0x28] sm:$0xff] %vm1962_vm10, %v1877_v24  ;;  %4908 = vmatmul.mubr.msk.f32.gmra.mrb[2].mxu0 %vm2036_vm11, %v1998_v17  ;;  %v1879_v18 = vpop.permute.xlu0 %1878  ;;  %v1999_v21 = vld [vmem:[#allocation3 + $0x20] sm:$0xff] }
 0x229   : > { %1969 = vst.msk [vmem:[#allocation3 + $0x30] sm:$0xff] %vm1962_vm10, %v1879_v18  ;;  %4910 = vmatprep.mubr.msk.f32.mxu0 %vm2036_vm11, %v1999_v21  ;;  %v1833_v18 = vld [vmem:[#allocation2 + $0x1a2] sm:$0xff]  ;;  %v1832_v21 = vld [vmem:[#allocation2 + $0x19a] sm:$0xff] }
 0x22a   : > { %1928 = vrot.lane.b32.xlu1 %v1833_v18, %s5083_s20  ;;  %1926 = vrot.lane.b32.xlu0 %v1832_v21, %s5083_s20 }
 0x22b   : > { %v1688_v33 = vpop.permute.xlu1 %1687 }
 0x22c   : > { %1777 = vst.msk [vmem:[#allocation3 + $0x38] sm:$0xff] %vm1769_vm9, %v1688_v33  ;;  %v1690_v22 = vpop.permute.xlu0 %1689 }
 0x22d   : > { %1778 = vst.msk [vmem:[#allocation3 + $0x40] sm:$0xff] %vm1769_vm9, %v1690_v22 }
 0x22f   : > { %v1881_v46 = vpop.permute.xlu1 %1880  ;;  %v2000_v35 = vld [vmem:[#allocation3 + $0x28] sm:$0xff] }
 0x230   : > { %1970 = vst.msk [vmem:[#allocation3 + $0x38] sm:$0xff] %vm1962_vm10, %v1881_v46  ;;  %4911 = vmatmul.mubr.msk.f32.gmra.mrb[4].mxu0 %vm2036_vm11, %v2000_v35  ;;  %v1883_v29 = vpop.permute.xlu0 %1882  ;;  %v2001_v34 = vld [vmem:[#allocation3 + $0x30] sm:$0xff]  ;;  %v2565_v46 = vld [vmem:[#allocation2 + $0x9] sm:$0xff] }
 0x231   : > { %1971 = vst.msk [vmem:[#allocation3 + $0x40] sm:$0xff] %vm1962_vm10, %v1883_v29  ;;  %4913 = vmatprep.mubr.msk.f32.mxu0 %vm2036_vm11, %v2001_v34  ;;  %2630 = vrot.lane.b32.xlu1 %v2565_v46, %s5076_s8  ;;  %v2564_v35 = vld [vmem:[#allocation2 + $0x1] sm:$0xff] }
 0x232   : > { %2628 = vrot.lane.b32.xlu0 %v2564_v35, %s5076_s8 }
 0x233   : > { %v1692_v49 = vpop.permute.xlu1 %1691 }
 0x234   : > { %1779 = vst.msk [vmem:[#allocation3 + $0x48] sm:$0xff] %vm1769_vm9, %v1692_v49  ;;  %v1694_v38 = vpop.permute.xlu0 %1693 }
 0x235   : > { %1780 = vst.msk [vmem:[#allocation3 + $0x50] sm:$0xff] %vm1769_vm9, %v1694_v38 }
 0x237   : > { %v1885_v25 = vpop.permute.xlu1 %1884  ;;  %v2002_v37 = vld [vmem:[#allocation3 + $0x38] sm:$0xff] }
 0x238   : > { %1972 = vst.msk [vmem:[#allocation3 + $0x48] sm:$0xff] %vm1962_vm10, %v1885_v25  ;;  %4914 = vmatmul.mubr.msk.f32.gmra.mrb[6].mxu0 %vm2036_vm11, %v2002_v37  ;;  %v1887_v51 = vpop.permute.xlu0 %1886  ;;  %v2003_v26 = vld [vmem:[#allocation3 + $0x40] sm:$0xff] }
 0x239   : > { %1973 = vst.msk [vmem:[#allocation3 + $0x50] sm:$0xff] %vm1962_vm10, %v1887_v51  ;;  %4916 = vmatprep.mubr.msk.f32.mxu0 %vm2036_vm11, %v2003_v26 }
 0x23b   : > { %v1696_v54 = vpop.permute.xlu1 %1695 }
 0x23c   : > { %1781 = vst.msk [vmem:[#allocation3 + $0x58] sm:$0xff] %vm1769_vm9, %v1696_v54  ;;  %v1698_v52 = vpop.permute.xlu0 %1697 }
 0x23d   : > { %1782 = vst.msk [vmem:[#allocation3 + $0x60] sm:$0xff] %vm1769_vm9, %v1698_v52 }
 0x23f   : > { %v1889_v57 = vpop.permute.xlu1 %1888  ;;  %v2004_v55 = vld [vmem:[#allocation3 + $0x48] sm:$0xff] }
 0x240   : > { %1974 = vst.msk [vmem:[#allocation3 + $0x58] sm:$0xff] %vm1962_vm10, %v1889_v57  ;;  %4917 = vmatmul.mubr.msk.f32.gmra.mrb[8].mxu0 %vm2036_vm11, %v2004_v55  ;;  %v1891_v59 = vpop.permute.xlu0 %1890  ;;  %v2005_v58 = vld [vmem:[#allocation3 + $0x50] sm:$0xff] }
 0x241   : > { %1975 = vst.msk [vmem:[#allocation3 + $0x60] sm:$0xff] %vm1962_vm10, %v1891_v59  ;;  %4919 = vmatprep.mubr.msk.f32.mxu0 %vm2036_vm11, %v2005_v58 }
 0x243   : > { %v1700_v61 = vpop.permute.xlu1 %1699 }
 0x244   : > { %1783 = vst.msk [vmem:[#allocation3 + $0x68] sm:$0xff] %vm1769_vm9, %v1700_v61  ;;  %v1702_v60 = vpop.permute.xlu0 %1701 }
 0x245   : > { %1784 = vst.msk [vmem:[#allocation3 + $0x70] sm:$0xff] %vm1769_vm9, %v1702_v60 }
 0x247   : > { %v1893_v0 = vpop.permute.xlu1 %1892  ;;  %v2006_v62 = vld [vmem:[#allocation3 + $0x58] sm:$0xff] }
 0x248   : > { %1976 = vst.msk [vmem:[#allocation3 + $0x68] sm:$0xff] %vm1962_vm10, %v1893_v0  ;;  %4920 = vmatmul.mubr.msk.f32.gmra.mrb[10].mxu0 %vm2036_vm11, %v2006_v62  ;;  %v1895_v2 = vpop.permute.xlu0 %1894  ;;  %v2007_v1 = vld [vmem:[#allocation3 + $0x60] sm:$0xff]  ;;  %v2501_v62 = vld [vmem:[#allocation2 + $0x8] sm:$0xff] }
 0x249   : > { %1977 = vst.msk [vmem:[#allocation3 + $0x70] sm:$0xff] %vm1962_vm10, %v1895_v2  ;;  %4922 = vmatprep.mubr.msk.f32.mxu0 %vm2036_vm11, %v2007_v1  ;;  %v2500_v2 = vld [vmem:[#allocation2] sm:$0xff] }
 0x24a   : > { %2533 = vst.msk [vmem:[#allocation3 + $0x8] sm:$0xff] %vm279_vm0, %v2501_v62  ;;  %2532 = vst.msk [vmem:[#allocation3] sm:$0xff] %vm279_vm0, %v2500_v2 }
 0x24b   : > { %v1704_v4 = vpop.permute.xlu1 %1703 }
 0x24c   : > { %1785 = vst.msk [vmem:[#allocation3 + $0x78] sm:$0xff] %vm1769_vm9, %v1704_v4  ;;  %v1706_v3 = vpop.permute.xlu0 %1705  ;;  %v6264_v4 = vld [vmem:[%s7394_s3] ss:$0 sm:$0xff] }
 0x24d   : > { %1786 = vst.msk [vmem:[#allocation3 + $0x80] sm:$0xff] %vm1769_vm9, %v1706_v3 }
 0x24f   : > { %v1897_v6 = vpop.permute.xlu1 %1896  ;;  %v2008_v5 = vld [vmem:[#allocation3 + $0x68] sm:$0xff] }
 0x250   : > { %1978 = vst.msk [vmem:[#allocation3 + $0x78] sm:$0xff] %vm1962_vm10, %v1897_v6  ;;  %4923 = vmatmul.mubr.msk.f32.gmra.mrb[12].mxu0 %vm2036_vm11, %v2008_v5  ;;  %v1899_v8 = vpop.permute.xlu0 %1898  ;;  %v2009_v27 = vld [vmem:[#allocation3 + $0x70] sm:$0xff] }
 0x251   : > { %1979 = vst.msk [vmem:[#allocation3 + $0x80] sm:$0xff] %vm1962_vm10, %v1899_v8  ;;  %4925 = vmatprep.mubr.msk.f32.mxu0 %vm2036_vm11, %v2009_v27  ;;  %v6271_v5 = vld [vmem:[%s7395_s4] ss:$0 sm:$0xff] }
 0x253   : > { %v1708_v7 = vpop.permute.xlu1 %1707 }
 0x254   : > { %1787 = vst.msk [vmem:[#allocation3 + $0x88] sm:$0xff] %vm1769_vm9, %v1708_v7  ;;  %v1710_v30 = vpop.permute.xlu0 %1709 }
 0x255   : > { %1788 = vst.msk [vmem:[#allocation3 + $0x90] sm:$0xff] %vm1769_vm9, %v1710_v30 }
 0x257   : > { %v1901_v11 = vpop.permute.xlu1 %1900  ;;  %v2010_v31 = vld [vmem:[#allocation3 + $0x78] sm:$0xff] }
 0x258   : > { %1980 = vst.msk [vmem:[#allocation3 + $0x88] sm:$0xff] %vm1962_vm10, %v1901_v11  ;;  %4926 = vmatmul.mubr.msk.f32.gmra.mrb[14].mxu0 %vm2036_vm11, %v2010_v31  ;;  %v1903_v9 = vpop.permute.xlu0 %1902  ;;  %v2011_v32 = vld [vmem:[#allocation3 + $0x80] sm:$0xff] }
 0x259   : > { %1981 = vst.msk [vmem:[#allocation3 + $0x90] sm:$0xff] %vm1962_vm10, %v1903_v9  ;;  %4928 = vmatprep.mubr.msk.f32.mxu0 %vm2036_vm11, %v2011_v32 }
 0x25b   : > { %v1712_v15 = vpop.permute.xlu1 %1711 }
 0x25c   : > { %1789 = vst.msk [vmem:[#allocation3 + $0x98] sm:$0xff] %vm1769_vm9, %v1712_v15  ;;  %v1714_v39 = vpop.permute.xlu0 %1713 }
 0x25d   : > { %1790 = vst.msk [vmem:[#allocation3 + $0xa0] sm:$0xff] %vm1769_vm9, %v1714_v39 }
 0x25f   : > { %v1905_v40 = vpop.permute.xlu1 %1904  ;;  %v2012_v12 = vld [vmem:[#allocation3 + $0x88] sm:$0xff] }
 0x260   : > { %1982 = vst.msk [vmem:[#allocation3 + $0x98] sm:$0xff] %vm1962_vm10, %v1905_v40  ;;  %4929 = vmatmul.mubr.msk.f32.gmra.mrb[16].mxu0 %vm2036_vm11, %v2012_v12  ;;  %v1907_v41 = vpop.permute.xlu0 %1906  ;;  %v2013_v19 = vld [vmem:[#allocation3 + $0x90] sm:$0xff] }
 0x261   : > { %1983 = vst.msk [vmem:[#allocation3 + $0xa0] sm:$0xff] %vm1962_vm10, %v1907_v41  ;;  %4931 = vmatprep.mubr.msk.f32.mxu0 %vm2036_vm11, %v2013_v19 }
 0x263   : > { %v1716_v42 = vpop.permute.xlu1 %1715 }
 0x264   : > { %1791 = vst.msk [vmem:[#allocation3 + $0xa8] sm:$0xff] %vm1769_vm9, %v1716_v42  ;;  %v1718_v43 = vpop.permute.xlu0 %1717 }
 0x265   : > { %1792 = vst.msk [vmem:[#allocation3 + $0xb0] sm:$0xff] %vm1769_vm9, %v1718_v43 }
 0x267   : > { %v1909_v16 = vpop.permute.xlu1 %1908  ;;  %v2014_v44 = vld [vmem:[#allocation3 + $0x98] sm:$0xff] }
 0x268   : > { %1984 = vst.msk [vmem:[#allocation3 + $0xa8] sm:$0xff] %vm1962_vm10, %v1909_v16  ;;  %4932 = vmatmul.mubr.msk.f32.gmra.mrb[18].mxu0 %vm2036_vm11, %v2014_v44  ;;  %v1911_v47 = vpop.permute.xlu0 %1910  ;;  %v2015_v23 = vld [vmem:[#allocation3 + $0xa0] sm:$0xff] }
 0x269   : > { %1985 = vst.msk [vmem:[#allocation3 + $0xb0] sm:$0xff] %vm1962_vm10, %v1911_v47  ;;  %4934 = vmatprep.mubr.msk.f32.mxu0 %vm2036_vm11, %v2015_v23 }
 0x26b   : > { %v1720_v28 = vpop.permute.xlu1 %1719 }
 0x26c   : > { %1793 = vst.msk [vmem:[#allocation3 + $0xb8] sm:$0xff] %vm1769_vm9, %v1720_v28  ;;  %v1722_v50 = vpop.permute.xlu0 %1721 }
 0x26d   : > { %1794 = vst.msk [vmem:[#allocation3 + $0xc0] sm:$0xff] %vm1769_vm9, %v1722_v50 }
 0x26f   : > { %v1913_v48 = vpop.permute.xlu1 %1912  ;;  %v2016_v53 = vld [vmem:[#allocation3 + $0xa8] sm:$0xff] }
 0x270   : > { %1986 = vst.msk [vmem:[#allocation3 + $0xb8] sm:$0xff] %vm1962_vm10, %v1913_v48  ;;  %4935 = vmatmul.mubr.msk.f32.gmra.mrb[20].mxu0 %vm2036_vm11, %v2016_v53  ;;  %v1915_v45 = vpop.permute.xlu0 %1914  ;;  %v2017_v20 = vld [vmem:[#allocation3 + $0xb0] sm:$0xff] }
 0x271   : > { %1987 = vst.msk [vmem:[#allocation3 + $0xc0] sm:$0xff] %vm1962_vm10, %v1915_v45  ;;  %4937 = vmatprep.mubr.msk.f32.mxu0 %vm2036_vm11, %v2017_v20 }
 0x273   : > { %v1724_v56 = vpop.permute.xlu1 %1723 }
 0x274   : > { %1795 = vst.msk [vmem:[#allocation3 + $0xc8] sm:$0xff] %vm1769_vm9, %v1724_v56  ;;  %v1726_v63 = vpop.permute.xlu0 %1725 }
 0x275   : > { %1796 = vst.msk [vmem:[#allocation3 + $0xd0] sm:$0xff] %vm1769_vm9, %v1726_v63 }
 0x277   : > { %v1917_v13 = vpop.permute.xlu1 %1916  ;;  %v2018_v14 = vld [vmem:[#allocation3 + $0xb8] sm:$0xff] }
 0x278   : > { %1988 = vst.msk [vmem:[#allocation3 + $0xc8] sm:$0xff] %vm1962_vm10, %v1917_v13  ;;  %4938 = vmatmul.mubr.msk.f32.gmra.mrb[22].mxu0 %vm2036_vm11, %v2018_v14  ;;  %v1919_v24 = vpop.permute.xlu0 %1918  ;;  %v2019_v17 = vld [vmem:[#allocation3 + $0xc0] sm:$0xff] }
 0x279   : > { %1989 = vst.msk [vmem:[#allocation3 + $0xd0] sm:$0xff] %vm1962_vm10, %v1919_v24  ;;  %4940 = vmatprep.mubr.msk.f32.mxu0 %vm2036_vm11, %v2019_v17 }
 0x27b   : > { %v1728_v33 = vpop.permute.xlu1 %1727 }
 0x27c   : > { %1797 = vst.msk [vmem:[#allocation3 + $0xd8] sm:$0xff] %vm1769_vm9, %v1728_v33  ;;  %v1537_v22 = vpop.permute.xlu0 %1536 }
 0x27d   : > { %1605 = vst.msk [vmem:[#allocation3 + $0xe0] sm:$0xff] %vm1576_vm8, %v1537_v22 }
 0x27f   : > { %v1921_v29 = vpop.permute.xlu1 %1920  ;;  %v2020_v34 = vld [vmem:[#allocation3 + $0xc8] sm:$0xff] }
 0x280   : > { %1990 = vst.msk [vmem:[#allocation3 + $0xd8] sm:$0xff] %vm1962_vm10, %v1921_v29  ;;  %4941 = vmatmul.mubr.msk.f32.gmra.mrb[24].mxu0 %vm2036_vm11, %v2020_v34  ;;  %v1730_v49 = vpop.permute.xlu0 %1729  ;;  %v2021_v38 = vld [vmem:[#allocation3 + $0xd0] sm:$0xff] }
 0x281   : > { %1798 = vst.msk [vmem:[#allocation3 + $0xe0] sm:$0xff] %vm1769_vm9, %v1730_v49  ;;  %4943 = vmatprep.mubr.msk.f32.mxu0 %vm2036_vm11, %v2021_v38 }
 0x283   : > { %v1539_v25 = vpop.permute.xlu1 %1538 }
 0x284   : > { %1606 = vst.msk [vmem:[#allocation3 + $0xe8] sm:$0xff] %vm1576_vm8, %v1539_v25  ;;  %v1923_v37 = vpop.permute.xlu0 %1922 }
 0x285   : > { %1991 = vst.msk [vmem:[#allocation3 + $0xe0] sm:$0xff] %vm1962_vm10, %v1923_v37 }
 0x287   : > { %v1732_v51 = vpop.permute.xlu1 %1731  ;;  %v2022_v26 = vld [vmem:[#allocation3 + $0xd8] sm:$0xff] }
 0x288   : > { %1799 = vst.msk [vmem:[#allocation3 + $0xe8] sm:$0xff] %vm1769_vm9, %v1732_v51  ;;  %4944 = vmatmul.mubr.msk.f32.gmra.mrb[26].mxu0 %vm2036_vm11, %v2022_v26  ;;  %v1541_v59 = vpop.permute.xlu0 %1540 }
 0x289   : > { %1607 = vst.msk [vmem:[#allocation3 + $0xf0] sm:$0xff] %vm1576_vm8, %v1541_v59 }
 0x28b   : > { %v1925_v54 = vpop.permute.xlu1 %1924 }
 0x28c   : > { %1992 = vst.msk [vmem:[#allocation3 + $0xe8] sm:$0xff] %vm1962_vm10, %v1925_v54  ;;  %v2023_v52 = vld [vmem:[#allocation3 + $0xe0] sm:$0xff] }
 0x28d   : > { %4946 = vmatprep.mubr.msk.f32.mxu0 %vm2036_vm11, %v2023_v52 }
 0x28f   : > { %v1543_v55 = vpop.permute.xlu1 %1542 }
 0x290   : > { %1608 = vst.msk [vmem:[#allocation3 + $0xf8] sm:$0xff] %vm1576_vm8, %v1543_v55 }
 0x293   : > { %v2024_v57 = vld [vmem:[#allocation3 + $0xe8] sm:$0xff] }
 0x294   : > { %4947 = vmatmul.mubr.msk.f32.gmra.mrb[28].mxu0 %vm2036_vm11, %v2024_v57  ;;  %v1736_v58 = vpop.permute.xlu1 %1735  ;;  %v1734_v61 = vpop.permute.xlu0 %1733 }
 0x295   : > { %1801 = vst.msk [vmem:[#allocation3 + $0xf8] sm:$0xff] %vm1769_vm9, %v1736_v58  ;;  %1800 = vst.msk [vmem:[#allocation3 + $0xf0] sm:$0xff] %vm1769_vm9, %v1734_v61 }
 0x29c   : > { %v1929_v60 = vpop.permute.xlu1 %1928  ;;  %v1927_v0 = vpop.permute.xlu0 %1926 }
 0x29d   : > { %1994 = vst.msk [vmem:[#allocation3 + $0xf8] sm:$0xff] %vm1962_vm10, %v1929_v60  ;;  %1993 = vst.msk [vmem:[#allocation3 + $0xf0] sm:$0xff] %vm1962_vm10, %v1927_v0 }
 0x2a3   : > { %v2631_v1 = vpop.permute.xlu1 %2630 }
 0x2a4   : > { %2725 = vst.msk [vmem:[#allocation3 + $0x8] sm:$0xff] %vm610_vm3, %v2631_v1  ;;  %v2629_v3 = vpop.permute.xlu0 %2628  ;;  %v2025_v31 = vld [vmem:[#allocation3 + $0xf0] sm:$0xff]  ;;  %v2026_v32 = vld [vmem:[#allocation3 + $0xf8] sm:$0xff] }
 0x2a5   : > { %2724 = vst.msk [vmem:[#allocation3] sm:$0xff] %vm610_vm3, %v2629_v3  ;;  %4949 = vmatprep.mubr.msk.f32.mxu0 %vm2036_vm11, %v2025_v31 }
 0x2a6   : > { %4950 = vmatmul.mubr.msk.f32.gmra.mrb[30].mxu0 %vm2036_vm11, %v2026_v32 }
 0x2f3   : > { %v4906_v6 = vpop.f32.mrb[0].mxu0 }
 0x2f4   : > { %v2366_v8 = vmul.f32 %v4906_v6, %v6264_v4  ;;  %v2199_v27 = vpop.f32.mrb[1].mxu0 }
 0x2f5   : > { %v2365_v7 = vmul.f32 %v6264_v4, %v2199_v27 }
 0x2f6   : > { %v2405_v30 = vadd.f32 %v6271_v5, %v2366_v8 }
 0x2f7   : > { %v2404_v11 = vadd.f32 %v6271_v5, %v2365_v7 }
 0x2f8   : > { %v2437_v9 = vmax.f32 %v2405_v30, 0.0 }
 0x2f9   : > { %v2436_v15 = vmax.f32 %v2404_v11, 0.0 }
 0x2fa   : > { %2469 = vst.msk [vmem:[#allocation2 + $0x21] sm:$0xff] %vm279_vm0, %v2437_v9 }
 0x2fb   : > { %2468 = vst.msk [vmem:[#allocation2 + $0x19] sm:$0xff] %vm279_vm0, %v2436_v15  ;;  %v4909_v39 = vpop.f32.mrb[2].mxu0 }
 0x2fc   : > { %v2368_v40 = vmul.f32 %v4909_v39, %v6264_v4  ;;  %v2209_v12 = vpop.f32.mrb[3].mxu0 }
 0x2fd   : > { %v2367_v41 = vmul.f32 %v6264_v4, %v2209_v12 }
 0x2fe   : > { %v2407_v19 = vadd.f32 %v6271_v5, %v2368_v40 }
 0x2ff   : > { %v2406_v42 = vadd.f32 %v6271_v5, %v2367_v41 }
 0x300   : > { %v2439_v43 = vmax.f32 %v2407_v19, 0.0 }
 0x301   : > { %v2438_v16 = vmax.f32 %v2406_v42, 0.0  ;;  %v6285_v44 = vld [vmem:[#allocation2 + $0x21] sm:$0xff] }
 0x302   : > { %2471 = vst.msk [vmem:[#allocation2 + $0x39] sm:$0xff] %vm279_vm0, %v2439_v43  ;;  %2634 = vrot.lane.b32.xlu1 %v6285_v44, %s5076_s8  ;;  %v6290_v47 = vld [vmem:[#allocation2 + $0x19] sm:$0xff] }
 0x303   : > { %v6292_v23 = vld [vmem:[#allocation2 + $0x20] sm:$0xff]  ;;  %v6294_v28 = vld [vmem:[#allocation2 + $0x18] sm:$0xff]  ;;  %2470 = vst.msk [vmem:[#allocation2 + $0x31] sm:$0xff] %vm279_vm0, %v2438_v16  ;;  %2632 = vrot.lane.b32.xlu0 %v6290_v47, %s5076_s8  ;;  %v4912_v50 = vpop.f32.mrb[4].mxu0 }
 0x304   : > { %2535 = vst.msk [vmem:[#allocation3 + $0x18] sm:$0xff] %vm279_vm0, %v6292_v23  ;;  %2534 = vst.msk [vmem:[#allocation3 + $0x10] sm:$0xff] %vm279_vm0, %v6294_v28  ;;  %v2370_v48 = vmul.f32 %v4912_v50, %v6264_v4  ;;  %v2219_v53 = vpop.f32.mrb[5].mxu0 }
 0x305   : > { %v2369_v45 = vmul.f32 %v6264_v4, %v2219_v53 }
 0x306   : > { %v2409_v20 = vadd.f32 %v6271_v5, %v2370_v48 }
 0x307   : > { %v2408_v56 = vadd.f32 %v6271_v5, %v2369_v45 }
 0x308   : > { %v2441_v63 = vmax.f32 %v2409_v20, 0.0 }
 0x309   : > { %v2440_v36 = vmax.f32 %v2408_v56, 0.0  ;;  %v6307_v10 = vld [vmem:[#allocation2 + $0x39] sm:$0xff] }
 0x30a   : > { %2473 = vst.msk [vmem:[#allocation2 + $0x51] sm:$0xff] %vm279_vm0, %v2441_v63  ;;  %2638 = vrot.lane.b32.xlu1 %v6307_v10, %s5076_s8  ;;  %v6312_v13 = vld [vmem:[#allocation2 + $0x31] sm:$0xff] }
 0x30b   : > { %v6314_v14 = vld [vmem:[#allocation2 + $0x38] sm:$0xff]  ;;  %v6316_v24 = vld [vmem:[#allocation2 + $0x30] sm:$0xff]  ;;  %2472 = vst.msk [vmem:[#allocation2 + $0x49] sm:$0xff] %vm279_vm0, %v2440_v36  ;;  %2636 = vrot.lane.b32.xlu0 %v6312_v13, %s5076_s8  ;;  %v4915_v17 = vpop.f32.mrb[6].mxu0 }
 0x30c   : > { %2537 = vst.msk [vmem:[#allocation3 + $0x28] sm:$0xff] %vm279_vm0, %v6314_v14  ;;  %2536 = vst.msk [vmem:[#allocation3 + $0x20] sm:$0xff] %vm279_vm0, %v6316_v24  ;;  %v2372_v18 = vmul.f32 %v4915_v17, %v6264_v4  ;;  %v2229_v21 = vpop.f32.mrb[7].mxu0 }
 0x30d   : > { %v2371_v33 = vmul.f32 %v6264_v4, %v2229_v21 }
 0x30e   : > { %v2411_v22 = vadd.f32 %v6271_v5, %v2372_v18 }
 0x30f   : > { %v2410_v46 = vadd.f32 %v6271_v5, %v2371_v33 }
 0x310   : > { %v2443_v35 = vmax.f32 %v2411_v22, 0.0 }
 0x311   : > { %v2442_v29 = vmax.f32 %v2410_v46, 0.0  ;;  %v6329_v34 = vld [vmem:[#allocation2 + $0x51] sm:$0xff] }
 0x312   : > { %2475 = vst.msk [vmem:[#allocation2 + $0x69] sm:$0xff] %vm279_vm0, %v2443_v35  ;;  %2642 = vrot.lane.b32.xlu1 %v6329_v34, %s5076_s8  ;;  %v6334_v49 = vld [vmem:[#allocation2 + $0x49] sm:$0xff] }
 0x313   : > { %v6336_v38 = vld [vmem:[#allocation2 + $0x50] sm:$0xff]  ;;  %v6338_v25 = vld [vmem:[#allocation2 + $0x48] sm:$0xff]  ;;  %2474 = vst.msk [vmem:[#allocation2 + $0x61] sm:$0xff] %vm279_vm0, %v2442_v29  ;;  %2640 = vrot.lane.b32.xlu0 %v6334_v49, %s5076_s8  ;;  %v4918_v37 = vpop.f32.mrb[8].mxu0 }
 0x314   : > { %2539 = vst.msk [vmem:[#allocation3 + $0x38] sm:$0xff] %vm279_vm0, %v6336_v38  ;;  %2538 = vst.msk [vmem:[#allocation3 + $0x30] sm:$0xff] %vm279_vm0, %v6338_v25  ;;  %v2374_v51 = vmul.f32 %v4918_v37, %v6264_v4  ;;  %v2239_v26 = vpop.f32.mrb[9].mxu0 }
 0x315   : > { %v2373_v54 = vmul.f32 %v6264_v4, %v2239_v26 }
 0x316   : > { %v2413_v52 = vadd.f32 %v6271_v5, %v2374_v51 }
 0x317   : > { %v2412_v57 = vadd.f32 %v6271_v5, %v2373_v54 }
 0x318   : > { %v2445_v55 = vmax.f32 %v2413_v52, 0.0 }
 0x319   : > { %v2444_v59 = vmax.f32 %v2412_v57, 0.0  ;;  %v6351_v58 = vld [vmem:[#allocation2 + $0x69] sm:$0xff] }
 0x31a   : > { %2477 = vst.msk [vmem:[#allocation2 + $0x81] sm:$0xff] %vm279_vm0, %v2445_v55  ;;  %2646 = vrot.lane.b32.xlu1 %v6351_v58, %s5076_s8  ;;  %v6356_v61 = vld [vmem:[#allocation2 + $0x61] sm:$0xff] }
 0x31b   : > { %v6358_v60 = vld [vmem:[#allocation2 + $0x68] sm:$0xff]  ;;  %2476 = vst.msk [vmem:[#allocation2 + $0x79] sm:$0xff] %vm279_vm0, %v2444_v59  ;;  %2644 = vrot.lane.b32.xlu0 %v6356_v61, %s5076_s8  ;;  %v4921_v0 = vpop.f32.mrb[10].mxu0  ;;  %v6365_v62 = vld [vmem:[#allocation2 + $0x60] sm:$0xff] }
 0x31c   : > { %2541 = vst.msk [vmem:[#allocation3 + $0x48] sm:$0xff] %vm279_vm0, %v6358_v60  ;;  %v2376_v2 = vmul.f32 %v4921_v0, %v6264_v4  ;;  %v2249_v1 = vpop.f32.mrb[11].mxu0  ;;  %2540 = vst.msk [vmem:[#allocation3 + $0x40] sm:$0xff] %vm279_vm0, %v6365_v62 }
 0x31d   : > { %v2375_v3 = vmul.f32 %v6264_v4, %v2249_v1 }
 0x31e   : > { %v2415_v6 = vadd.f32 %v6271_v5, %v2376_v2 }
 0x31f   : > { %v2414_v8 = vadd.f32 %v6271_v5, %v2375_v3 }
 0x320   : > { %v2447_v27 = vmax.f32 %v2415_v6, 0.0 }
 0x321   : > { %v2446_v7 = vmax.f32 %v2414_v8, 0.0  ;;  %v6373_v30 = vld [vmem:[#allocation2 + $0x81] sm:$0xff] }
 0x322   : > { %2479 = vst.msk [vmem:[#allocation2 + $0x99] sm:$0xff] %vm279_vm0, %v2447_v27  ;;  %2650 = vrot.lane.b32.xlu1 %v6373_v30, %s5076_s8  ;;  %v6378_v11 = vld [vmem:[#allocation2 + $0x79] sm:$0xff] }
 0x323   : > { %v6380_v31 = vld [vmem:[#allocation2 + $0x80] sm:$0xff]  ;;  %2478 = vst.msk [vmem:[#allocation2 + $0x91] sm:$0xff] %vm279_vm0, %v2446_v7  ;;  %2648 = vrot.lane.b32.xlu0 %v6378_v11, %s5076_s8  ;;  %v4924_v9 = vpop.f32.mrb[12].mxu0  ;;  %v6387_v32 = vld [vmem:[#allocation2 + $0x78] sm:$0xff] }
 0x324   : > { %2543 = vst.msk [vmem:[#allocation3 + $0x58] sm:$0xff] %vm279_vm0, %v6380_v31  ;;  %v2378_v15 = vmul.f32 %v4924_v9, %v6264_v4  ;;  %v2259_v39 = vpop.f32.mrb[13].mxu0  ;;  %2542 = vst.msk [vmem:[#allocation3 + $0x50] sm:$0xff] %vm279_vm0, %v6387_v32 }
 0x325   : > { %v2377_v40 = vmul.f32 %v6264_v4, %v2259_v39 }
 0x326   : > { %v2417_v12 = vadd.f32 %v6271_v5, %v2378_v15 }
 0x327   : > { %v2416_v41 = vadd.f32 %v6271_v5, %v2377_v40 }
 0x328   : > { %v2449_v19 = vmax.f32 %v2417_v12, 0.0 }
 0x329   : > { %v2448_v42 = vmax.f32 %v2416_v41, 0.0  ;;  %v2577_v43 = vld [vmem:[#allocation2 + $0x99] sm:$0xff] }
 0x32a   : > { %2481 = vst.msk [vmem:[#allocation2 + $0xb1] sm:$0xff] %vm279_vm0, %v2449_v19  ;;  %2654 = vrot.lane.b32.xlu1 %v2577_v43, %s5076_s8  ;;  %v2576_v16 = vld [vmem:[#allocation2 + $0x91] sm:$0xff] }
 0x32b   : > { %v6397_v50 = vld [vmem:[#allocation2 + $0x98] sm:$0xff]  ;;  %2480 = vst.msk [vmem:[#allocation2 + $0xa9] sm:$0xff] %vm279_vm0, %v2448_v42  ;;  %2652 = vrot.lane.b32.xlu0 %v2576_v16, %s5076_s8  ;;  %v4927_v48 = vpop.f32.mrb[14].mxu0  ;;  %v6403_v53 = vld [vmem:[#allocation2 + $0x90] sm:$0xff] }
 0x32c   : > { %2545 = vst.msk [vmem:[#allocation3 + $0x68] sm:$0xff] %vm279_vm0, %v6397_v50  ;;  %v2380_v45 = vmul.f32 %v4927_v48, %v6264_v4  ;;  %v2269_v20 = vpop.f32.mrb[15].mxu0  ;;  %2544 = vst.msk [vmem:[#allocation3 + $0x60] sm:$0xff] %vm279_vm0, %v6403_v53 }
 0x32d   : > { %v2379_v56 = vmul.f32 %v6264_v4, %v2269_v20 }
 0x32e   : > { %v2419_v63 = vadd.f32 %v6271_v5, %v2380_v45 }
 0x32f   : > { %v2418_v36 = vadd.f32 %v6271_v5, %v2379_v56 }
 0x330   : > { %v2451_v17 = vmax.f32 %v2419_v63, 0.0 }
 0x331   : > { %v2450_v18 = vmax.f32 %v2418_v36, 0.0  ;;  %v2579_v21 = vld [vmem:[#allocation2 + $0xb1] sm:$0xff] }
 0x332   : > { %2483 = vst.msk [vmem:[#allocation2 + $0xc9] sm:$0xff] %vm279_vm0, %v2451_v17  ;;  %2658 = vrot.lane.b32.xlu1 %v2579_v21, %s5076_s8  ;;  %v2578_v33 = vld [vmem:[#allocation2 + $0xa9] sm:$0xff] }
 0x333   : > { %v6413_v22 = vld [vmem:[#allocation2 + $0xb0] sm:$0xff]  ;;  %2482 = vst.msk [vmem:[#allocation2 + $0xc1] sm:$0xff] %vm279_vm0, %v2450_v18  ;;  %2656 = vrot.lane.b32.xlu0 %v2578_v33, %s5076_s8  ;;  %v4930_v46 = vpop.f32.mrb[16].mxu0  ;;  %v6419_v35 = vld [vmem:[#allocation2 + $0xa8] sm:$0xff] }
 0x334   : > { %2547 = vst.msk [vmem:[#allocation3 + $0x78] sm:$0xff] %vm279_vm0, %v6413_v22  ;;  %v2382_v29 = vmul.f32 %v4930_v46, %v6264_v4  ;;  %v2279_v37 = vpop.f32.mrb[17].mxu0  ;;  %2546 = vst.msk [vmem:[#allocation3 + $0x70] sm:$0xff] %vm279_vm0, %v6419_v35 }
 0x335   : > { %v2381_v51 = vmul.f32 %v6264_v4, %v2279_v37 }
 0x336   : > { %v2421_v26 = vadd.f32 %v6271_v5, %v2382_v29 }
 0x337   : > { %v2420_v54 = vadd.f32 %v6271_v5, %v2381_v51 }
 0x338   : > { %v2453_v52 = vmax.f32 %v2421_v26, 0.0 }
 0x339   : > { %v2452_v57 = vmax.f32 %v2420_v54, 0.0  ;;  %v2581_v55 = vld [vmem:[#allocation2 + $0xc9] sm:$0xff] }
 0x33a   : > { %2485 = vst.msk [vmem:[#allocation2 + $0xe1] sm:$0xff] %vm279_vm0, %v2453_v52  ;;  %2662 = vrot.lane.b32.xlu1 %v2581_v55, %s5076_s8  ;;  %v2580_v59 = vld [vmem:[#allocation2 + $0xc1] sm:$0xff] }
 0x33b   : > { %v6429_v0 = vld [vmem:[#allocation2 + $0xc8] sm:$0xff]  ;;  %2484 = vst.msk [vmem:[#allocation2 + $0xd9] sm:$0xff] %vm279_vm0, %v2452_v57  ;;  %2660 = vrot.lane.b32.xlu0 %v2580_v59, %s5076_s8  ;;  %v4933_v2 = vpop.f32.mrb[18].mxu0  ;;  %v6435_v1 = vld [vmem:[#allocation2 + $0xc0] sm:$0xff] }
 0x33c   : > { %2549 = vst.msk [vmem:[#allocation3 + $0x88] sm:$0xff] %vm279_vm0, %v6429_v0  ;;  %v2384_v3 = vmul.f32 %v4933_v2, %v6264_v4  ;;  %v2289_v6 = vpop.f32.mrb[19].mxu0  ;;  %2548 = vst.msk [vmem:[#allocation3 + $0x80] sm:$0xff] %vm279_vm0, %v6435_v1 }
 0x33d   : > { %v2383_v8 = vmul.f32 %v6264_v4, %v2289_v6 }
 0x33e   : > { %v2423_v27 = vadd.f32 %v6271_v5, %v2384_v3 }
 0x33f   : > { %v2422_v7 = vadd.f32 %v6271_v5, %v2383_v8 }
 0x340   : > { %v2455_v9 = vmax.f32 %v2423_v27, 0.0 }
 0x341   : > { %v2454_v15 = vmax.f32 %v2422_v7, 0.0  ;;  %v2583_v39 = vld [vmem:[#allocation2 + $0xe1] sm:$0xff] }
 0x342   : > { %2487 = vst.msk [vmem:[#allocation2 + $0xf9] sm:$0xff] %vm279_vm0, %v2455_v9  ;;  %2666 = vrot.lane.b32.xlu1 %v2583_v39, %s5076_s8  ;;  %v2582_v40 = vld [vmem:[#allocation2 + $0xd9] sm:$0xff] }
 0x343   : > { %v6445_v12 = vld [vmem:[#allocation2 + $0xe0] sm:$0xff]  ;;  %2486 = vst.msk [vmem:[#allocation2 + $0xf1] sm:$0xff] %vm279_vm0, %v2454_v15  ;;  %2664 = vrot.lane.b32.xlu0 %v2582_v40, %s5076_s8  ;;  %v4936_v41 = vpop.f32.mrb[20].mxu0  ;;  %v6451_v19 = vld [vmem:[#allocation2 + $0xd8] sm:$0xff] }
 0x344   : > { %2551 = vst.msk [vmem:[#allocation3 + $0x98] sm:$0xff] %vm279_vm0, %v6445_v12  ;;  %v2386_v42 = vmul.f32 %v4936_v41, %v6264_v4  ;;  %v2299_v43 = vpop.f32.mrb[21].mxu0  ;;  %2550 = vst.msk [vmem:[#allocation3 + $0x90] sm:$0xff] %vm279_vm0, %v6451_v19 }
 0x345   : > { %v2385_v16 = vmul.f32 %v6264_v4, %v2299_v43 }
 0x346   : > { %v2425_v48 = vadd.f32 %v6271_v5, %v2386_v42 }
 0x347   : > { %v2424_v45 = vadd.f32 %v6271_v5, %v2385_v16 }
 0x348   : > { %v2457_v20 = vmax.f32 %v2425_v48, 0.0 }
 0x349   : > { %v2456_v56 = vmax.f32 %v2424_v45, 0.0  ;;  %v2585_v63 = vld [vmem:[#allocation2 + $0xf9] sm:$0xff] }
 0x34a   : > { %2489 = vst.msk [vmem:[#allocation2 + $0x111] sm:$0xff] %vm279_vm0, %v2457_v20  ;;  %2670 = vrot.lane.b32.xlu1 %v2585_v63, %s5076_s8  ;;  %v2584_v36 = vld [vmem:[#allocation2 + $0xf1] sm:$0xff] }
 0x34b   : > { %v6461_v17 = vld [vmem:[#allocation2 + $0xf8] sm:$0xff]  ;;  %2488 = vst.msk [vmem:[#allocation2 + $0x109] sm:$0xff] %vm279_vm0, %v2456_v56  ;;  %2668 = vrot.lane.b32.xlu0 %v2584_v36, %s5076_s8  ;;  %v4939_v18 = vpop.f32.mrb[22].mxu0  ;;  %v6467_v21 = vld [vmem:[#allocation2 + $0xf0] sm:$0xff] }
 0x34c   : > { %2553 = vst.msk [vmem:[#allocation3 + $0xa8] sm:$0xff] %vm279_vm0, %v6461_v17  ;;  %v2388_v33 = vmul.f32 %v4939_v18, %v6264_v4  ;;  %v2309_v46 = vpop.f32.mrb[23].mxu0  ;;  %2552 = vst.msk [vmem:[#allocation3 + $0xa0] sm:$0xff] %vm279_vm0, %v6467_v21 }
 0x34d   : > { %v2387_v29 = vmul.f32 %v6264_v4, %v2309_v46 }
 0x34e   : > { %v2427_v37 = vadd.f32 %v6271_v5, %v2388_v33 }
 0x34f   : > { %v2426_v51 = vadd.f32 %v6271_v5, %v2387_v29 }
 0x350   : > { %v2459_v26 = vmax.f32 %v2427_v37, 0.0 }
 0x351   : > { %v2458_v54 = vmax.f32 %v2426_v51, 0.0  ;;  %v2587_v52 = vld [vmem:[#allocation2 + $0x111] sm:$0xff] }
 0x352   : > { %2491 = vst.msk [vmem:[#allocation2 + $0x129] sm:$0xff] %vm279_vm0, %v2459_v26  ;;  %2674 = vrot.lane.b32.xlu1 %v2587_v52, %s5076_s8  ;;  %v2586_v57 = vld [vmem:[#allocation2 + $0x109] sm:$0xff] }
 0x353   : > { %v6477_v55 = vld [vmem:[#allocation2 + $0x110] sm:$0xff]  ;;  %2490 = vst.msk [vmem:[#allocation2 + $0x121] sm:$0xff] %vm279_vm0, %v2458_v54  ;;  %2672 = vrot.lane.b32.xlu0 %v2586_v57, %s5076_s8  ;;  %v4942_v59 = vpop.f32.mrb[24].mxu0  ;;  %v6483_v2 = vld [vmem:[#allocation2 + $0x108] sm:$0xff] }
 0x354   : > { %2555 = vst.msk [vmem:[#allocation3 + $0xb8] sm:$0xff] %vm279_vm0, %v6477_v55  ;;  %v2390_v3 = vmul.f32 %v4942_v59, %v6264_v4  ;;  %v2319_v6 = vpop.f32.mrb[25].mxu0  ;;  %2554 = vst.msk [vmem:[#allocation3 + $0xb0] sm:$0xff] %vm279_vm0, %v6483_v2 }
 0x355   : > { %v2389_v8 = vmul.f32 %v6264_v4, %v2319_v6 }
 0x356   : > { %v2429_v27 = vadd.f32 %v6271_v5, %v2390_v3 }
 0x357   : > { %v2428_v7 = vadd.f32 %v6271_v5, %v2389_v8 }
 0x358   : > { %v2461_v9 = vmax.f32 %v2429_v27, 0.0 }
 0x359   : > { %v2460_v15 = vmax.f32 %v2428_v7, 0.0  ;;  %v2589_v39 = vld [vmem:[#allocation2 + $0x129] sm:$0xff] }
 0x35a   : > { %2493 = vst.msk [vmem:[#allocation2 + $0x141] sm:$0xff] %vm279_vm0, %v2461_v9  ;;  %2678 = vrot.lane.b32.xlu1 %v2589_v39, %s5076_s8  ;;  %v2588_v40 = vld [vmem:[#allocation2 + $0x121] sm:$0xff] }
 0x35b   : > { %v2525_v41 = vld [vmem:[#allocation2 + $0x128] sm:$0xff]  ;;  %2492 = vst.msk [vmem:[#allocation2 + $0x139] sm:$0xff] %vm279_vm0, %v2460_v15  ;;  %2676 = vrot.lane.b32.xlu0 %v2588_v40, %s5076_s8  ;;  %v4945_v42 = vpop.f32.mrb[26].mxu0  ;;  %v2524_v43 = vld [vmem:[#allocation2 + $0x120] sm:$0xff] }
 0x35c   : > { %2557 = vst.msk [vmem:[#allocation3 + $0xc8] sm:$0xff] %vm279_vm0, %v2525_v41  ;;  %v2392_v16 = vmul.f32 %v4945_v42, %v6264_v4  ;;  %v2329_v48 = vpop.f32.mrb[27].mxu0  ;;  %2556 = vst.msk [vmem:[#allocation3 + $0xc0] sm:$0xff] %vm279_vm0, %v2524_v43  ;;  %v2757_v42 = vld [vmem:[#allocation2 + $0xa] sm:$0xff] }
 0x35d   : > { %v2391_v45 = vmul.f32 %v6264_v4, %v2329_v48 }
 0x35e   : > { %v2431_v20 = vadd.f32 %v6271_v5, %v2392_v16  ;;  %v2756_v16 = vld [vmem:[#allocation2 + $0x2] sm:$0xff] }
 0x35f   : > { %v2430_v56 = vadd.f32 %v6271_v5, %v2391_v45 }
 0x360   : > { %v2463_v63 = vmax.f32 %v2431_v20, 0.0  ;;  %v6526_v20 = vld [vmem:[#allocation2 + $0x22] sm:$0xff] }
 0x361   : > { %v2462_v36 = vmax.f32 %v2430_v56, 0.0  ;;  %v2591_v18 = vld [vmem:[#allocation2 + $0x141] sm:$0xff] }
 0x362   : > { %2495 = vst.msk [vmem:[#allocation2 + $0x159] sm:$0xff] %vm279_vm0, %v2463_v63  ;;  %2682 = vrot.lane.b32.xlu1 %v2591_v18, %s5076_s8  ;;  %v2590_v33 = vld [vmem:[#allocation2 + $0x139] sm:$0xff] }
 0x363   : > { %v2527_v46 = vld [vmem:[#allocation2 + $0x140] sm:$0xff]  ;;  %2494 = vst.msk [vmem:[#allocation2 + $0x151] sm:$0xff] %vm279_vm0, %v2462_v36  ;;  %2680 = vrot.lane.b32.xlu0 %v2590_v33, %s5076_s8  ;;  %v2526_v29 = vld [vmem:[#allocation2 + $0x138] sm:$0xff] }
 0x364   : > { %2559 = vst.msk [vmem:[#allocation3 + $0xd8] sm:$0xff] %vm279_vm0, %v2527_v46  ;;  %2558 = vst.msk [vmem:[#allocation3 + $0xd0] sm:$0xff] %vm279_vm0, %v2526_v29  ;;  %v6531_v56 = vld [vmem:[#allocation2 + $0x1a] sm:$0xff]  ;;  %v6539_v36 = vld [vmem:[#allocation2 + $0x32] sm:$0xff] }
 0x365   : > { %v6535_v63 = vld [vmem:[#allocation2 + $0x3a] sm:$0xff]  ;;  %v6544_v46 = vld [vmem:[#allocation2 + $0x52] sm:$0xff]  ;;  %v6549_v29 = vld [vmem:[#allocation2 + $0x4a] sm:$0xff] }
 0x367   : > { %v4948_v37 = vpop.f32.mrb[28].mxu0 }
 0x368   : > { %v2394_v51 = vmul.f32 %v4948_v37, %v6264_v4  ;;  %v2339_v26 = vpop.f32.mrb[29].mxu0  ;;  %v6553_v37 = vld [vmem:[#allocation2 + $0x6a] sm:$0xff] }
 0x369   : > { %v2393_v54 = vmul.f32 %v6264_v4, %v2339_v26  ;;  %v2593_v52 = vld [vmem:[#allocation2 + $0x159] sm:$0xff] }
 0x36a   : > { %v2433_v57 = vadd.f32 %v6271_v5, %v2394_v51  ;;  %2686 = vrot.lane.b32.xlu1 %v2593_v52, %s5076_s8  ;;  %v2592_v59 = vld [vmem:[#allocation2 + $0x151] sm:$0xff]  ;;  %v6557_v51 = vld [vmem:[#allocation2 + $0x62] sm:$0xff] }
 0x36b   : > { %v2529_v3 = vld [vmem:[#allocation2 + $0x158] sm:$0xff]  ;;  %v2432_v6 = vadd.f32 %v6271_v5, %v2393_v54  ;;  %2684 = vrot.lane.b32.xlu0 %v2592_v59, %s5076_s8  ;;  %v2528_v8 = vld [vmem:[#allocation2 + $0x150] sm:$0xff]  ;;  %v6562_v52 = vld [vmem:[#allocation2 + $0x82] sm:$0xff] }
 0x36c   : > { %2561 = vst.msk [vmem:[#allocation3 + $0xe8] sm:$0xff] %vm279_vm0, %v2529_v3  ;;  %v2465_v27 = vmax.f32 %v2433_v57, 0.0  ;;  %2560 = vst.msk [vmem:[#allocation3 + $0xe0] sm:$0xff] %vm279_vm0, %v2528_v8  ;;  %v6567_v57 = vld [vmem:[#allocation2 + $0x7a] sm:$0xff]  ;;  %v6575_v3 = vld [vmem:[#allocation2 + $0x92] sm:$0xff] }
 0x36d   : > { %v2464_v7 = vmax.f32 %v2432_v6, 0.0  ;;  %v6571_v59 = vld [vmem:[#allocation2 + $0x9a] sm:$0xff] }
 0x36e   : > { %2497 = vst.msk [vmem:[#allocation2 + $0x171] sm:$0xff] %vm279_vm0, %v2465_v27  ;;  %v6580_v27 = vld [vmem:[#allocation2 + $0xb2] sm:$0xff] }
 0x36f   : > { %2496 = vst.msk [vmem:[#allocation2 + $0x169] sm:$0xff] %vm279_vm0, %v2464_v7  ;;  %v6585_v7 = vld [vmem:[#allocation2 + $0xaa] sm:$0xff] }
 0x374   : > { %v2635_v9 = vpop.permute.xlu1 %2634 }
 0x375   : > { %2727 = vst.msk [vmem:[#allocation3 + $0x18] sm:$0xff] %vm610_vm3, %v2635_v9  ;;  %v2633_v15 = vpop.permute.xlu0 %2632  ;;  %v2595_v39 = vld [vmem:[#allocation2 + $0x171] sm:$0xff] }
 0x376   : > { %2726 = vst.msk [vmem:[#allocation3 + $0x10] sm:$0xff] %vm610_vm3, %v2633_v15  ;;  %2690 = vrot.lane.b32.xlu1 %v2595_v39, %s5076_s8  ;;  %v2594_v40 = vld [vmem:[#allocation2 + $0x169] sm:$0xff] }
 0x377   : > { %v2531_v41 = vld [vmem:[#allocation2 + $0x170] sm:$0xff]  ;;  %2688 = vrot.lane.b32.xlu0 %v2594_v40, %s5076_s8  ;;  %v2530_v43 = vld [vmem:[#allocation2 + $0x168] sm:$0xff] }
 0x378   : > { %2563 = vst.msk [vmem:[#allocation3 + $0xf8] sm:$0xff] %vm279_vm0, %v2531_v41  ;;  %2562 = vst.msk [vmem:[#allocation3 + $0xf0] sm:$0xff] %vm279_vm0, %v2530_v43  ;;  %v6589_v9 = vld [vmem:[#allocation2 + $0xca] sm:$0xff]  ;;  %v6593_v15 = vld [vmem:[#allocation2 + $0xc2] sm:$0xff] }
 0x379   : > { %v6598_v41 = vld [vmem:[#allocation2 + $0xe2] sm:$0xff]  ;;  %v2777_v43 = vld [vmem:[#allocation2 + $0xfa] sm:$0xff] }
 0x37a   : > { %2822 = vrot.lane.b32.xlu1 %v2757_v42, %s5077_s9  ;;  %v6603_v42 = vld [vmem:[#allocation2 + $0xda] sm:$0xff] }
 0x37b   : > { %2820 = vrot.lane.b32.xlu0 %v2756_v16, %s5077_s9  ;;  %v2776_v16 = vld [vmem:[#allocation2 + $0xf2] sm:$0xff] }
 0x37c   : > { %v2639_v48 = vpop.permute.xlu1 %2638 }
 0x37d   : > { %2729 = vst.msk [vmem:[#allocation3 + $0x28] sm:$0xff] %vm610_vm3, %v2639_v48  ;;  %v2637_v45 = vpop.permute.xlu0 %2636 }
 0x37e   : > { %2728 = vst.msk [vmem:[#allocation3 + $0x20] sm:$0xff] %vm610_vm3, %v2637_v45  ;;  %2826 = vrot.lane.b32.xlu1 %v6526_v20, %s5077_s9 }
 0x37f   : > { %2824 = vrot.lane.b32.xlu0 %v6531_v56, %s5077_s9 }
 0x382   : > { %2830 = vrot.lane.b32.xlu1 %v6535_v63, %s5077_s9 }
 0x383   : > { %2828 = vrot.lane.b32.xlu0 %v6539_v36, %s5077_s9 }
 0x384   : > { %v2643_v18 = vpop.permute.xlu1 %2642 }
 0x385   : > { %2731 = vst.msk [vmem:[#allocation3 + $0x38] sm:$0xff] %vm610_vm3, %v2643_v18  ;;  %v2641_v33 = vpop.permute.xlu0 %2640  ;;  %v2779_v18 = vld [vmem:[#allocation2 + $0x112] sm:$0xff] }
 0x386   : > { %2730 = vst.msk [vmem:[#allocation3 + $0x30] sm:$0xff] %vm610_vm3, %v2641_v33  ;;  %2834 = vrot.lane.b32.xlu1 %v6544_v46, %s5077_s9  ;;  %v2778_v33 = vld [vmem:[#allocation2 + $0x10a] sm:$0xff] }
 0x387   : > { %2832 = vrot.lane.b32.xlu0 %v6549_v29, %s5077_s9 }
 0x38a   : > { %2838 = vrot.lane.b32.xlu1 %v6553_v37, %s5077_s9 }
 0x38b   : > { %2836 = vrot.lane.b32.xlu0 %v6557_v51, %s5077_s9 }
 0x38c   : > { %v2647_v26 = vpop.permute.xlu1 %2646 }
 0x38d   : > { %2733 = vst.msk [vmem:[#allocation3 + $0x48] sm:$0xff] %vm610_vm3, %v2647_v26  ;;  %v2645_v54 = vpop.permute.xlu0 %2644  ;;  %v2781_v26 = vld [vmem:[#allocation2 + $0x12a] sm:$0xff] }
 0x38e   : > { %2732 = vst.msk [vmem:[#allocation3 + $0x40] sm:$0xff] %vm610_vm3, %v2645_v54  ;;  %2842 = vrot.lane.b32.xlu1 %v6562_v52, %s5077_s9  ;;  %v2780_v54 = vld [vmem:[#allocation2 + $0x122] sm:$0xff] }
 0x38f   : > { %2840 = vrot.lane.b32.xlu0 %v6567_v57, %s5077_s9 }
 0x392   : > { %2846 = vrot.lane.b32.xlu1 %v6571_v59, %s5077_s9 }
 0x393   : > { %2844 = vrot.lane.b32.xlu0 %v6575_v3, %s5077_s9 }
 0x394   : > { %v2651_v6 = vpop.permute.xlu1 %2650 }
 0x395   : > { %2735 = vst.msk [vmem:[#allocation3 + $0x58] sm:$0xff] %vm610_vm3, %v2651_v6  ;;  %v2649_v8 = vpop.permute.xlu0 %2648 }
 0x396   : > { %2734 = vst.msk [vmem:[#allocation3 + $0x50] sm:$0xff] %vm610_vm3, %v2649_v8  ;;  %2850 = vrot.lane.b32.xlu1 %v6580_v27, %s5077_s9 }
 0x397   : > { %2848 = vrot.lane.b32.xlu0 %v6585_v7, %s5077_s9 }
 0x39a   : > { %2854 = vrot.lane.b32.xlu1 %v6589_v9, %s5077_s9 }
 0x39b   : > { %2852 = vrot.lane.b32.xlu0 %v6593_v15, %s5077_s9 }
 0x39c   : > { %v2655_v39 = vpop.permute.xlu1 %2654 }
 0x39d   : > { %2737 = vst.msk [vmem:[#allocation3 + $0x68] sm:$0xff] %vm610_vm3, %v2655_v39  ;;  %v2653_v40 = vpop.permute.xlu0 %2652  ;;  %v2783_v39 = vld [vmem:[#allocation2 + $0x142] sm:$0xff] }
 0x39e   : > { %2736 = vst.msk [vmem:[#allocation3 + $0x60] sm:$0xff] %vm610_vm3, %v2653_v40  ;;  %2858 = vrot.lane.b32.xlu1 %v6598_v41, %s5077_s9  ;;  %v2782_v40 = vld [vmem:[#allocation2 + $0x13a] sm:$0xff] }
 0x39f   : > { %2856 = vrot.lane.b32.xlu0 %v6603_v42, %s5077_s9 }
 0x3a2   : > { %2862 = vrot.lane.b32.xlu1 %v2777_v43, %s5077_s9  ;;  %v2785_v43 = vld [vmem:[#allocation2 + $0x15a] sm:$0xff] }
 0x3a3   : > { %2860 = vrot.lane.b32.xlu0 %v2776_v16, %s5077_s9  ;;  %v2784_v16 = vld [vmem:[#allocation2 + $0x152] sm:$0xff] }
 0x3a4   : > { %v2659_v48 = vpop.permute.xlu1 %2658 }
 0x3a5   : > { %2739 = vst.msk [vmem:[#allocation3 + $0x78] sm:$0xff] %vm610_vm3, %v2659_v48  ;;  %v2657_v45 = vpop.permute.xlu0 %2656 }
 0x3a6   : > { %2738 = vst.msk [vmem:[#allocation3 + $0x70] sm:$0xff] %vm610_vm3, %v2657_v45  ;;  %2866 = vrot.lane.b32.xlu1 %v2779_v18, %s5077_s9  ;;  %v2787_v18 = vld [vmem:[#allocation2 + $0x172] sm:$0xff] }
 0x3a7   : > { %2864 = vrot.lane.b32.xlu0 %v2778_v33, %s5077_s9  ;;  %v2786_v33 = vld [vmem:[#allocation2 + $0x16a] sm:$0xff] }
 0x3aa   : > { %2870 = vrot.lane.b32.xlu1 %v2781_v26, %s5077_s9 }
 0x3ab   : > { %2868 = vrot.lane.b32.xlu0 %v2780_v54, %s5077_s9 }
 0x3ac   : > { %v2663_v6 = vpop.permute.xlu1 %2662 }
 0x3ad   : > { %2741 = vst.msk [vmem:[#allocation3 + $0x88] sm:$0xff] %vm610_vm3, %v2663_v6  ;;  %v2661_v8 = vpop.permute.xlu0 %2660 }
 0x3ae   : > { %2740 = vst.msk [vmem:[#allocation3 + $0x80] sm:$0xff] %vm610_vm3, %v2661_v8  ;;  %2874 = vrot.lane.b32.xlu1 %v2783_v39, %s5077_s9 }
 0x3af   : > { %2872 = vrot.lane.b32.xlu0 %v2782_v40, %s5077_s9 }
 0x3b2   : > { %2878 = vrot.lane.b32.xlu1 %v2785_v43, %s5077_s9  ;;  %v4132_v43 = vld [vmem:[%s7393_s2] sm:$0xff] }
 0x3b3   : > { %2876 = vrot.lane.b32.xlu0 %v2784_v16, %s5077_s9  ;;  %v4133_v16 = vld [vmem:[%s7393_s2 + $0x8] sm:$0xff] }
 0x3b4   : > { %v2667_v48 = vpop.permute.xlu1 %2666 }
 0x3b5   : > { %2743 = vst.msk [vmem:[#allocation3 + $0x98] sm:$0xff] %vm610_vm3, %v2667_v48  ;;  %v2665_v45 = vpop.permute.xlu0 %2664  ;;  %v5034_v48 = vpack.c.bf16 %v4133_v16, %v4132_v43 }
 0x3b6   : > { %2742 = vst.msk [vmem:[#allocation3 + $0x90] sm:$0xff] %vm610_vm3, %v2665_v45  ;;  %2882 = vrot.lane.b32.xlu1 %v2787_v18, %s5077_s9 }
 0x3b7   : > { %2880 = vrot.lane.b32.xlu0 %v2786_v33, %s5077_s9  ;;  %5035 = vmatprep.subr.bf16.mxu1 %v5034_v48 }
 0x3b8   : > { %5037 = vmatpush3.bf16.msra.mxu1 %v5034_v48 }
 0x3ba   : > { %3014 = vrot.lane.b32.xlu1 %v6292_v23, %s5078_s10 }
 0x3bb   : > { %3012 = vrot.lane.b32.xlu0 %v6294_v28, %s5078_s10 }
 0x3bc   : > { %v2671_v26 = vpop.permute.xlu1 %2670 }
 0x3bd   : > { %2745 = vst.msk [vmem:[#allocation3 + $0xa8] sm:$0xff] %vm610_vm3, %v2671_v26  ;;  %v2669_v54 = vpop.permute.xlu0 %2668  ;;  %v4137_v26 = vld [vmem:[%s7393_s2 + $0x28] sm:$0xff] }
 0x3be   : > { %2744 = vst.msk [vmem:[#allocation3 + $0xa0] sm:$0xff] %vm610_vm3, %v2669_v54  ;;  %3018 = vrot.lane.b32.xlu1 %v6314_v14, %s5078_s10 }
 0x3bf   : > { %3016 = vrot.lane.b32.xlu0 %v6316_v24, %s5078_s10 }
 0x3c2   : > { %3022 = vrot.lane.b32.xlu1 %v6336_v38, %s5078_s10 }
 0x3c3   : > { %3020 = vrot.lane.b32.xlu0 %v6338_v25, %s5078_s10 }
 0x3c4   : > { %v2675_v23 = vpop.permute.xlu1 %2674 }
 0x3c5   : > { %2747 = vst.msk [vmem:[#allocation3 + $0xb8] sm:$0xff] %vm610_vm3, %v2675_v23  ;;  %v2673_v28 = vpop.permute.xlu0 %2672 }
 0x3c6   : > { %2746 = vst.msk [vmem:[#allocation3 + $0xb0] sm:$0xff] %vm610_vm3, %v2673_v28  ;;  %3026 = vrot.lane.b32.xlu1 %v6358_v60, %s5078_s10 }
 0x3c7   : > { %3024 = vrot.lane.b32.xlu0 %v6365_v62, %s5078_s10 }
 0x3ca   : > { %3030 = vrot.lane.b32.xlu1 %v6380_v31, %s5078_s10 }
 0x3cb   : > { %3028 = vrot.lane.b32.xlu0 %v6387_v32, %s5078_s10 }
 0x3cc   : > { %v2679_v6 = vpop.permute.xlu1 %2678 }
 0x3cd   : > { %2749 = vst.msk [vmem:[#allocation3 + $0xc8] sm:$0xff] %vm610_vm3, %v2679_v6  ;;  %v2677_v8 = vpop.permute.xlu0 %2676  ;;  %v4140_v6 = vld [vmem:[%s7393_s2 + $0x40] sm:$0xff] }
 0x3ce   : > { %2748 = vst.msk [vmem:[#allocation3 + $0xc0] sm:$0xff] %vm610_vm3, %v2677_v8  ;;  %3034 = vrot.lane.b32.xlu1 %v6397_v50, %s5078_s10 }
 0x3cf   : > { %3032 = vrot.lane.b32.xlu0 %v6403_v53, %s5078_s10 }
 0x3d2   : > { %3038 = vrot.lane.b32.xlu1 %v6413_v22, %s5078_s10 }
 0x3d3   : > { %3036 = vrot.lane.b32.xlu0 %v6419_v35, %s5078_s10 }
 0x3d4   : > { %v2683_v39 = vpop.permute.xlu1 %2682 }
 0x3d5   : > { %2751 = vst.msk [vmem:[#allocation3 + $0xd8] sm:$0xff] %vm610_vm3, %v2683_v39  ;;  %v2681_v40 = vpop.permute.xlu0 %2680 }
 0x3d6   : > { %2750 = vst.msk [vmem:[#allocation3 + $0xd0] sm:$0xff] %vm610_vm3, %v2681_v40  ;;  %3042 = vrot.lane.b32.xlu1 %v6429_v0, %s5078_s10 }
 0x3d7   : > { %3040 = vrot.lane.b32.xlu0 %v6435_v1, %s5078_s10 }
 0x3da   : > { %3206 = vrot.lane.b32.xlu1 %v6285_v44, %s5079_s11  ;;  %v4134_v44 = vld [vmem:[%s7393_s2 + $0x10] sm:$0xff] }
 0x3db   : > { %3204 = vrot.lane.b32.xlu0 %v6290_v47, %s5079_s11  ;;  %v4135_v47 = vld [vmem:[%s7393_s2 + $0x18] sm:$0xff] }
 0x3dc   : > { %v2687_v45 = vpop.permute.xlu1 %2686  ;;  %v5038_v33 = vpack.c.bf16 %v4135_v47, %v4134_v44 }
 0x3dd   : > { %2753 = vst.msk [vmem:[#allocation3 + $0xe8] sm:$0xff] %vm610_vm3, %v2687_v45  ;;  %v2685_v18 = vpop.permute.xlu0 %2684 }
 0x3de   : > { %2752 = vst.msk [vmem:[#allocation3 + $0xe0] sm:$0xff] %vm610_vm3, %v2685_v18  ;;  %3398 = vrot.lane.b32.xlu1 %v6526_v20, %s5080_s12  ;;  %5039 = vmatprep.subr.bf16.mxu1 %v5038_v33  ;;  %v4136_v20 = vld [vmem:[%s7393_s2 + $0x20] sm:$0xff]  ;;  %v4951_v18 = vpop.f32.mrb[30].mxu0 }
 0x3df   : > { %3396 = vrot.lane.b32.xlu0 %v6531_v56, %s5080_s12  ;;  %5041 = vmatpush3.bf16.msra.mxu1 %v5038_v33  ;;  %v5042_v54 = vpack.c.bf16 %v4137_v26, %v4136_v20  ;;  %v4139_v56 = vld [vmem:[%s7393_s2 + $0x38] sm:$0xff]  ;;  %v2396_v44 = vmul.f32 %v4951_v18, %v6264_v4  ;;  %v2349_v47 = vpop.f32.mrb[31].mxu0 }
 0x3e0   : > { %v2395_v33 = vmul.f32 %v6264_v4, %v2349_v47 }
 0x3e1   : > { %5043 = vmatprep.subr.bf16.mxu1 %v5042_v54  ;;  %v2435_v20 = vadd.f32 %v6271_v5, %v2396_v44 }
 0x3e2   : > { %3590 = vrot.lane.b32.xlu1 %v6314_v14, %s5081_s13  ;;  %v4138_v14 = vld [vmem:[%s7393_s2 + $0x30] sm:$0xff]  ;;  %v2434_v26 = vadd.f32 %v6271_v5, %v2395_v33 }
 0x3e3   : > { %3588 = vrot.lane.b32.xlu0 %v6316_v24, %s5081_s13  ;;  %5045 = vmatpush3.bf16.msra.mxu1 %v5042_v54  ;;  %v5046_v23 = vpack.c.bf16 %v4139_v56, %v4138_v14 }
 0x3e4   : > { %v2466_v14 = vmax.f32 %v2434_v26, 0.0 }
 0x3e5   : > { %5047 = vmatprep.subr.bf16.mxu1 %v5046_v23 }
 0x3e6   : > { %3208 = vrot.lane.b32.xlu1 %v6312_v13, %s5079_s11  ;;  %2498 = vst.msk [vmem:[#allocation2 + $0x181] sm:$0xff] %vm279_vm0, %v2466_v14 }
 0x3e7   : > { %3780 = vrot.lane.b32.xlu0 %v6312_v13, %s5082_s17  ;;  %5049 = vmatpush3.bf16.msra.mxu1 %v5046_v23 }
 0x3e8   : > { %v2691_v28 = vpop.permute.xlu1 %2690  ;;  %4968 = vmatprep.subr.mxu1 %v4140_v6 }
 0x3e9   : > { %2755 = vst.msk [vmem:[#allocation3 + $0xf8] sm:$0xff] %vm610_vm3, %v2691_v28  ;;  %v2689_v24 = vpop.permute.xlu0 %2688 }
 0x3ea   : > { %2754 = vst.msk [vmem:[#allocation3 + $0xf0] sm:$0xff] %vm610_vm3, %v2689_v24  ;;  %3972 = vrot.lane.b32.xlu1 %v6539_v36, %s5083_s20 }
 0x3eb   : > { %3782 = vrot.lane.b32.xlu0 %v6307_v10, %s5082_s17  ;;  %4969 = vmatpush3.msra.mxu1 %v4140_v6 }
 0x3ec   : > { %v2823_v13 = vpop.permute.xlu1 %2822 }
 0x3ed   : > { %2917 = vst.msk [vmem:[#allocation3 + $0x8] sm:$0xff] %vm803_vm4, %v2823_v13  ;;  %v2821_v8 = vpop.permute.xlu0 %2820 }
 0x3ee   : > { %2916 = vst.msk [vmem:[#allocation3] sm:$0xff] %vm803_vm4, %v2821_v8  ;;  %3400 = vrot.lane.b32.xlu1 %v6539_v36, %s5080_s12 }
 0x3ef   : > { %3210 = vrot.lane.b32.xlu0 %v6307_v10, %s5079_s11 }
 0x3f0   : > { %v2827_v39 = vpop.permute.xlu1 %2826 }
 0x3f1   : > { %2919 = vst.msk [vmem:[#allocation3 + $0x18] sm:$0xff] %vm803_vm4, %v2827_v39  ;;  %v2825_v40 = vpop.permute.xlu0 %2824 }
 0x3f2   : > { %2918 = vst.msk [vmem:[#allocation3 + $0x10] sm:$0xff] %vm803_vm4, %v2825_v40  ;;  %3402 = vrot.lane.b32.xlu1 %v6535_v63, %s5080_s12 }
 0x3f3   : > { %3974 = vrot.lane.b32.xlu0 %v6535_v63, %s5083_s20 }
 0x3f4   : > { %v2831_v43 = vpop.permute.xlu1 %2830 }
 0x3f5   : > { %2921 = vst.msk [vmem:[#allocation3 + $0x28] sm:$0xff] %vm803_vm4, %v2831_v43  ;;  %v2829_v36 = vpop.permute.xlu0 %2828  ;;  %v3150_v43 = vld [vmem:[#allocation2 + $0x91] sm:$0xff] }
 0x3f6   : > { %2920 = vst.msk [vmem:[#allocation3 + $0x20] sm:$0xff] %vm803_vm4, %v2829_v36  ;;  %3594 = vrot.lane.b32.xlu1 %v6336_v38, %s5081_s13 }
 0x3f7   : > { %3592 = vrot.lane.b32.xlu0 %v6338_v25, %s5081_s13 }
 0x3f8   : > { %v2835_v10 = vpop.permute.xlu1 %2834 }
 0x3f9   : > { %2923 = vst.msk [vmem:[#allocation3 + $0x38] sm:$0xff] %vm803_vm4, %v2835_v10  ;;  %v2833_v16 = vpop.permute.xlu0 %2832 }
 0x3fa   : > { %2922 = vst.msk [vmem:[#allocation3 + $0x30] sm:$0xff] %vm803_vm4, %v2833_v16  ;;  %3212 = vrot.lane.b32.xlu1 %v6334_v49, %s5079_s11 }
 0x3fb   : > { %3784 = vrot.lane.b32.xlu0 %v6334_v49, %s5082_s17 }
 0x3fc   : > { %v2839_v63 = vpop.permute.xlu1 %2838 }
 0x3fd   : > { %2925 = vst.msk [vmem:[#allocation3 + $0x48] sm:$0xff] %vm803_vm4, %v2839_v63  ;;  %v2837_v48 = vpop.permute.xlu0 %2836 }
 0x3fe   : > { %2924 = vst.msk [vmem:[#allocation3 + $0x40] sm:$0xff] %vm803_vm4, %v2837_v48  ;;  %3976 = vrot.lane.b32.xlu1 %v6549_v29, %s5083_s20 }
 0x3ff   : > { %3786 = vrot.lane.b32.xlu0 %v6329_v34, %s5082_s17 }
 0x400   : > { %v2843_v38 = vpop.permute.xlu1 %2842 }
 0x401   : > { %2927 = vst.msk [vmem:[#allocation3 + $0x58] sm:$0xff] %vm803_vm4, %v2843_v38  ;;  %v2841_v25 = vpop.permute.xlu0 %2840 }
 0x402   : > { %2926 = vst.msk [vmem:[#allocation3 + $0x50] sm:$0xff] %vm803_vm4, %v2841_v25  ;;  %3404 = vrot.lane.b32.xlu1 %v6549_v29, %s5080_s12 }
 0x403   : > { %3214 = vrot.lane.b32.xlu0 %v6329_v34, %s5079_s11 }
 0x404   : > { %v2847_v49 = vpop.permute.xlu1 %2846 }
 0x405   : > { %2929 = vst.msk [vmem:[#allocation3 + $0x68] sm:$0xff] %vm803_vm4, %v2847_v49  ;;  %v2845_v45 = vpop.permute.xlu0 %2844  ;;  %v3152_v49 = vld [vmem:[#allocation2 + $0xa9] sm:$0xff] }
 0x406   : > { %2928 = vst.msk [vmem:[#allocation3 + $0x60] sm:$0xff] %vm803_vm4, %v2845_v45  ;;  %3406 = vrot.lane.b32.xlu1 %v6544_v46, %s5080_s12 }
 0x407   : > { %3978 = vrot.lane.b32.xlu0 %v6544_v46, %s5083_s20  ;;  %v2467_v46 = vmax.f32 %v2435_v20, 0.0  ;;  %v3154_v20 = vld [vmem:[#allocation2 + $0xc1] sm:$0xff] }
 0x408   : > { %v2851_v29 = vpop.permute.xlu1 %2850 }
 0x409   : > { %2931 = vst.msk [vmem:[#allocation3 + $0x78] sm:$0xff] %vm803_vm4, %v2851_v29  ;;  %v2849_v34 = vpop.permute.xlu0 %2848 }
 0x40a   : > { %2930 = vst.msk [vmem:[#allocation3 + $0x70] sm:$0xff] %vm803_vm4, %v2849_v34  ;;  %3598 = vrot.lane.b32.xlu1 %v6358_v60, %s5081_s13 }
 0x40b   : > { %3596 = vrot.lane.b32.xlu0 %v6365_v62, %s5081_s13  ;;  %2499 = vst.msk [vmem:[#allocation2 + $0x189] sm:$0xff] %vm279_vm0, %v2467_v46 }
 0x40c   : > { %v2855_v54 = vpop.permute.xlu1 %2854 }
 0x40d   : > { %2933 = vst.msk [vmem:[#allocation3 + $0x88] sm:$0xff] %vm803_vm4, %v2855_v54  ;;  %v2853_v4 = vpop.permute.xlu0 %2852 }
 0x40e   : > { %2932 = vst.msk [vmem:[#allocation3 + $0x80] sm:$0xff] %vm803_vm4, %v2853_v4  ;;  %3216 = vrot.lane.b32.xlu1 %v6356_v61, %s5079_s11 }
 0x40f   : > { %3788 = vrot.lane.b32.xlu0 %v6356_v61, %s5082_s17 }
 0x410   : > { %v2859_v5 = vpop.permute.xlu1 %2858 }
 0x411   : > { %2935 = vst.msk [vmem:[#allocation3 + $0x98] sm:$0xff] %vm803_vm4, %v2859_v5  ;;  %v2857_v60 = vpop.permute.xlu0 %2856 }
 0x412   : > { %2934 = vst.msk [vmem:[#allocation3 + $0x90] sm:$0xff] %vm803_vm4, %v2857_v60  ;;  %3980 = vrot.lane.b32.xlu1 %v6557_v51, %s5083_s20 }
 0x413   : > { %3790 = vrot.lane.b32.xlu0 %v6351_v58, %s5082_s17 }
 0x414   : > { %v2863_v62 = vpop.permute.xlu1 %2862 }
 0x415   : > { %2937 = vst.msk [vmem:[#allocation3 + $0xa8] sm:$0xff] %vm803_vm4, %v2863_v62  ;;  %v2861_v56 = vpop.permute.xlu0 %2860 }
 0x416   : > { %2936 = vst.msk [vmem:[#allocation3 + $0xa0] sm:$0xff] %vm803_vm4, %v2861_v56  ;;  %3408 = vrot.lane.b32.xlu1 %v6557_v51, %s5080_s12 }
 0x417   : > { %3218 = vrot.lane.b32.xlu0 %v6351_v58, %s5079_s11 }
 0x418   : > { %v2867_v61 = vpop.permute.xlu1 %2866 }
 0x419   : > { %2939 = vst.msk [vmem:[#allocation3 + $0xb8] sm:$0xff] %vm803_vm4, %v2867_v61  ;;  %v2865_v23 = vpop.permute.xlu0 %2864 }
 0x41a   : > { %2938 = vst.msk [vmem:[#allocation3 + $0xb0] sm:$0xff] %vm803_vm4, %v2865_v23  ;;  %3410 = vrot.lane.b32.xlu1 %v6553_v37, %s5080_s12 }
 0x41b   : > { %3982 = vrot.lane.b32.xlu0 %v6553_v37, %s5083_s20 }
 0x41c   : > { %v2871_v28 = vpop.permute.xlu1 %2870 }
 0x41d   : > { %2941 = vst.msk [vmem:[#allocation3 + $0xc8] sm:$0xff] %vm803_vm4, %v2871_v28  ;;  %v2869_v24 = vpop.permute.xlu0 %2868 }
 0x41e   : > { %2940 = vst.msk [vmem:[#allocation3 + $0xc0] sm:$0xff] %vm803_vm4, %v2869_v24  ;;  %3602 = vrot.lane.b32.xlu1 %v6380_v31, %s5081_s13 }
 0x41f   : > { %3600 = vrot.lane.b32.xlu0 %v6387_v32, %s5081_s13 }
 0x420   : > { %v2875_v58 = vpop.permute.xlu1 %2874 }
 0x421   : > { %2943 = vst.msk [vmem:[#allocation3 + $0xd8] sm:$0xff] %vm803_vm4, %v2875_v58  ;;  %v2873_v51 = vpop.permute.xlu0 %2872  ;;  %v3731_v58 = vld [vmem:[#allocation2 + $0xe1] sm:$0xff] }
 0x422   : > { %2942 = vst.msk [vmem:[#allocation3 + $0xd0] sm:$0xff] %vm803_vm4, %v2873_v51  ;;  %3220 = vrot.lane.b32.xlu1 %v6378_v11, %s5079_s11 }
 0x423   : > { %3792 = vrot.lane.b32.xlu0 %v6378_v11, %s5082_s17  ;;  %v3149_v11 = vld [vmem:[#allocation2 + $0x81] sm:$0xff] }
 0x424   : > { %v2879_v37 = vpop.permute.xlu1 %2878 }
 0x425   : > { %2945 = vst.msk [vmem:[#allocation3 + $0xe8] sm:$0xff] %vm803_vm4, %v2879_v37  ;;  %v2877_v6 = vpop.permute.xlu0 %2876 }
 0x426   : > { %2944 = vst.msk [vmem:[#allocation3 + $0xe0] sm:$0xff] %vm803_vm4, %v2877_v6  ;;  %3984 = vrot.lane.b32.xlu1 %v6567_v57, %s5083_s20 }
 0x427   : > { %3794 = vrot.lane.b32.xlu0 %v6373_v30, %s5082_s17 }
 0x428   : > { %v2883_v31 = vpop.permute.xlu1 %2882 }
 0x429   : > { %2947 = vst.msk [vmem:[#allocation3 + $0xf8] sm:$0xff] %vm803_vm4, %v2883_v31  ;;  %v2881_v32 = vpop.permute.xlu0 %2880 }
 0x42a   : > { %2946 = vst.msk [vmem:[#allocation3 + $0xf0] sm:$0xff] %vm803_vm4, %v2881_v32  ;;  %3412 = vrot.lane.b32.xlu1 %v6567_v57, %s5080_s12 }
 0x42b   : > { %3222 = vrot.lane.b32.xlu0 %v3149_v11, %s5079_s11 }
 0x42c   : > { %v3015_v13 = vpop.permute.xlu1 %3014 }
 0x42d   : > { %3109 = vst.msk [vmem:[#allocation3 + $0x8] sm:$0xff] %vm996_vm5, %v3015_v13  ;;  %v3013_v8 = vpop.permute.xlu0 %3012 }
 0x42e   : > { %3108 = vst.msk [vmem:[#allocation3] sm:$0xff] %vm996_vm5, %v3013_v8  ;;  %3414 = vrot.lane.b32.xlu1 %v6562_v52, %s5080_s12  ;;  %v3732_v8 = vld [vmem:[#allocation2 + $0xf1] sm:$0xff] }
 0x42f   : > { %3986 = vrot.lane.b32.xlu0 %v6562_v52, %s5083_s20 }
 0x430   : > { %v3019_v30 = vpop.permute.xlu1 %3018 }
 0x431   : > { %3111 = vst.msk [vmem:[#allocation3 + $0x18] sm:$0xff] %vm996_vm5, %v3019_v30  ;;  %v3017_v39 = vpop.permute.xlu0 %3016 }
 0x432   : > { %3110 = vst.msk [vmem:[#allocation3 + $0x10] sm:$0xff] %vm996_vm5, %v3017_v39  ;;  %3606 = vrot.lane.b32.xlu1 %v6397_v50, %s5081_s13  ;;  %v3725_v50 = vld [vmem:[#allocation2 + $0x99] sm:$0xff] }
 0x433   : > { %3604 = vrot.lane.b32.xlu0 %v6403_v53, %s5081_s13 }
 0x434   : > { %v3023_v57 = vpop.permute.xlu1 %3022 }
 0x435   : > { %3113 = vst.msk [vmem:[#allocation3 + $0x28] sm:$0xff] %vm996_vm5, %v3023_v57  ;;  %v3021_v40 = vpop.permute.xlu0 %3020 }
 0x436   : > { %3112 = vst.msk [vmem:[#allocation3 + $0x20] sm:$0xff] %vm996_vm5, %v3021_v40  ;;  %3224 = vrot.lane.b32.xlu1 %v3150_v43, %s5079_s11  ;;  %v3924_v40 = vld [vmem:[#allocation2 + $0xf2] sm:$0xff] }
 0x437   : > { %3796 = vrot.lane.b32.xlu0 %v3150_v43, %s5082_s17  ;;  %v3733_v43 = vld [vmem:[#allocation2 + $0xf9] sm:$0xff] }
 0x438   : > { %v3027_v52 = vpop.permute.xlu1 %3026 }
 0x439   : > { %3115 = vst.msk [vmem:[#allocation3 + $0x38] sm:$0xff] %vm996_vm5, %v3027_v52  ;;  %v3025_v36 = vpop.permute.xlu0 %3024 }
 0x43a   : > { %3114 = vst.msk [vmem:[#allocation3 + $0x30] sm:$0xff] %vm996_vm5, %v3025_v36  ;;  %3988 = vrot.lane.b32.xlu1 %v6575_v3, %s5083_s20 }
 0x43b   : > { %3798 = vrot.lane.b32.xlu0 %v3725_v50, %s5082_s17 }
 0x43c   : > { %v3031_v53 = vpop.permute.xlu1 %3030 }
 0x43d   : > { %3117 = vst.msk [vmem:[#allocation3 + $0x48] sm:$0xff] %vm996_vm5, %v3031_v53  ;;  %v3029_v10 = vpop.permute.xlu0 %3028 }
 0x43e   : > { %3116 = vst.msk [vmem:[#allocation3 + $0x40] sm:$0xff] %vm996_vm5, %v3029_v10  ;;  %3416 = vrot.lane.b32.xlu1 %v6575_v3, %s5080_s12  ;;  %v3351_v10 = vld [vmem:[#allocation2 + $0xfa] sm:$0xff] }
 0x43f   : > { %3226 = vrot.lane.b32.xlu0 %v3725_v50, %s5079_s11 }
 0x440   : > { %v3035_v16 = vpop.permute.xlu1 %3034 }
 0x441   : > { %3119 = vst.msk [vmem:[#allocation3 + $0x58] sm:$0xff] %vm996_vm5, %v3035_v16  ;;  %v3033_v63 = vpop.permute.xlu0 %3032 }
 0x442   : > { %3118 = vst.msk [vmem:[#allocation3 + $0x50] sm:$0xff] %vm996_vm5, %v3033_v63  ;;  %3418 = vrot.lane.b32.xlu1 %v6571_v59, %s5080_s12 }
 0x443   : > { %3990 = vrot.lane.b32.xlu0 %v6571_v59, %s5083_s20 }
 0x444   : > { %v3039_v48 = vpop.permute.xlu1 %3038 }
 0x445   : > { %3121 = vst.msk [vmem:[#allocation3 + $0x68] sm:$0xff] %vm996_vm5, %v3039_v48  ;;  %v3037_v38 = vpop.permute.xlu0 %3036 }
 0x446   : > { %3120 = vst.msk [vmem:[#allocation3 + $0x60] sm:$0xff] %vm996_vm5, %v3037_v38  ;;  %3610 = vrot.lane.b32.xlu1 %v6413_v22, %s5081_s13  ;;  %v3727_v22 = vld [vmem:[#allocation2 + $0xb1] sm:$0xff] }
 0x447   : > { %3608 = vrot.lane.b32.xlu0 %v6419_v35, %s5081_s13 }
 0x448   : > { %v3043_v3 = vpop.permute.xlu1 %3042 }
 0x449   : > { %3123 = vst.msk [vmem:[#allocation3 + $0x78] sm:$0xff] %vm996_vm5, %v3043_v3  ;;  %v3041_v25 = vpop.permute.xlu0 %3040 }
 0x44a   : > { %3122 = vst.msk [vmem:[#allocation3 + $0x70] sm:$0xff] %vm996_vm5, %v3041_v25  ;;  %3228 = vrot.lane.b32.xlu1 %v3152_v49, %s5079_s11  ;;  %v3734_v25 = vld [vmem:[#allocation2 + $0x109] sm:$0xff] }
 0x44b   : > { %3800 = vrot.lane.b32.xlu0 %v3152_v49, %s5082_s17 }
 0x44c   : > { %v3207_v59 = vpop.permute.xlu1 %3206 }
 0x44d   : > { %3301 = vst.msk [vmem:[#allocation3 + $0x8] sm:$0xff] %vm1189_vm6, %v3207_v59  ;;  %v3205_v45 = vpop.permute.xlu0 %3204 }
 0x44e   : > { %3300 = vst.msk [vmem:[#allocation3] sm:$0xff] %vm1189_vm6, %v3205_v45  ;;  %3992 = vrot.lane.b32.xlu1 %v6585_v7, %s5083_s20 }
 0x44f   : > { %3802 = vrot.lane.b32.xlu0 %v3727_v22, %s5082_s17 }
 0x450   : > { %v3399_v35 = vpop.permute.xlu1 %3398 }
 0x451   : > { %3493 = vst.msk [vmem:[#allocation3 + $0x8] sm:$0xff] %vm1382_vm7, %v3399_v35  ;;  %v3397_v18 = vpop.permute.xlu0 %3396 }
 0x452   : > { %3492 = vst.msk [vmem:[#allocation3] sm:$0xff] %vm1382_vm7, %v3397_v18  ;;  %3420 = vrot.lane.b32.xlu1 %v6585_v7, %s5080_s12  ;;  %v3735_v18 = vld [vmem:[#allocation2 + $0x111] sm:$0xff] }
 0x453   : > { %3230 = vrot.lane.b32.xlu0 %v3727_v22, %s5079_s11  ;;  %v3926_v22 = vld [vmem:[#allocation2 + $0x10a] sm:$0xff] }
 0x454   : > { %v3591_v44 = vpop.permute.xlu1 %3590 }
 0x455   : > { %3685 = vst.msk [vmem:[#allocation3 + $0x8] sm:$0xff] %vm1576_vm8, %v3591_v44  ;;  %v3589_v47 = vpop.permute.xlu0 %3588 }
 0x456   : > { %3684 = vst.msk [vmem:[#allocation3] sm:$0xff] %vm1576_vm8, %v3589_v47  ;;  %3422 = vrot.lane.b32.xlu1 %v6580_v27, %s5080_s12 }
 0x457   : > { %3994 = vrot.lane.b32.xlu0 %v6580_v27, %s5083_s20 }
 0x458   : > { %v3209_v29 = vpop.permute.xlu1 %3208 }
 0x459   : > { %3302 = vst.msk [vmem:[#allocation3 + $0x10] sm:$0xff] %vm1189_vm6, %v3209_v29  ;;  %v3781_v33 = vpop.permute.xlu0 %3780 }
 0x45a   : > { %3876 = vst.msk [vmem:[#allocation3] sm:$0xff] %vm1769_vm9, %v3781_v33  ;;  %3614 = vrot.lane.b32.xlu1 %v6429_v0, %s5081_s13  ;;  %v3729_v0 = vld [vmem:[#allocation2 + $0xc9] sm:$0xff]  ;;  %v3353_v33 = vld [vmem:[#allocation2 + $0x112] sm:$0xff] }
 0x45b   : > { %3612 = vrot.lane.b32.xlu0 %v6435_v1, %s5081_s13 }
 0x45c   : > { %v3973_v7 = vpop.permute.xlu1 %3972 }
 0x45d   : > { %4068 = vst.msk [vmem:[#allocation3] sm:$0xff] %vm1962_vm10, %v3973_v7  ;;  %v3783_v34 = vpop.permute.xlu0 %3782 }
 0x45e   : > { %3877 = vst.msk [vmem:[#allocation3 + $0x8] sm:$0xff] %vm1769_vm9, %v3783_v34  ;;  %3232 = vrot.lane.b32.xlu1 %v3154_v20, %s5079_s11 }
 0x45f   : > { %3804 = vrot.lane.b32.xlu0 %v3154_v20, %s5082_s17 }
 0x460   : > { %v3401_v27 = vpop.permute.xlu1 %3400 }
 0x461   : > { %3494 = vst.msk [vmem:[#allocation3 + $0x10] sm:$0xff] %vm1382_vm7, %v3401_v27  ;;  %v3211_v26 = vpop.permute.xlu0 %3210  ;;  %v2970_v27 = vld [vmem:[#allocation2 + $0x120] sm:$0xff] }
 0x462   : > { %3303 = vst.msk [vmem:[#allocation3 + $0x18] sm:$0xff] %vm1189_vm6, %v3211_v26  ;;  %3996 = vrot.lane.b32.xlu1 %v6593_v15, %s5083_s20 }
 0x463   : > { %3806 = vrot.lane.b32.xlu0 %v3729_v0, %s5082_s17 }
 0x464   : > { %v3403_v1 = vpop.permute.xlu1 %3402  ;;  %v4100_v46 = vld [vmem:[#allocation3] sm:$0xff] }
 0x465   : > { %3495 = vst.msk [vmem:[#allocation3 + $0x18] sm:$0xff] %vm1382_vm7, %v3403_v1  ;;  %4970 = vmatprep.mubr.msk.f32.mxu1 %vm2036_vm11, %v4100_v46  ;;  %v3975_v54 = vpop.permute.xlu0 %3974  ;;  %v3736_v1 = vld [vmem:[#allocation2 + $0x121] sm:$0xff] }
 0x466   : > { %4069 = vst.msk [vmem:[#allocation3 + $0x8] sm:$0xff] %vm1962_vm10, %v3975_v54  ;;  %3424 = vrot.lane.b32.xlu1 %v6593_v15, %s5080_s12  ;;  %v3545_v46 = vld [vmem:[#allocation2 + $0x128] sm:$0xff] }
 0x467   : > { %3234 = vrot.lane.b32.xlu0 %v3729_v0, %s5079_s11 }
 0x468   : > { %v3595_v14 = vpop.permute.xlu1 %3594 }
 0x469   : > { %3687 = vst.msk [vmem:[#allocation3 + $0x18] sm:$0xff] %vm1576_vm8, %v3595_v14  ;;  %v3593_v4 = vpop.permute.xlu0 %3592 }
 0x46a   : > { %3686 = vst.msk [vmem:[#allocation3 + $0x10] sm:$0xff] %vm1576_vm8, %v3593_v4  ;;  %3426 = vrot.lane.b32.xlu1 %v6589_v9, %s5080_s12 }
 0x46b   : > { %3998 = vrot.lane.b32.xlu0 %v6589_v9, %s5083_s20  ;;  %v3730_v9 = vld [vmem:[#allocation2 + $0xd9] sm:$0xff] }
 0x46c   : > { %v3213_v5 = vpop.permute.xlu1 %3212 }
 0x46d   : > { %3304 = vst.msk [vmem:[#allocation3 + $0x20] sm:$0xff] %vm1189_vm6, %v3213_v5  ;;  %v3785_v60 = vpop.permute.xlu0 %3784  ;;  %v4101_v62 = vld [vmem:[#allocation3 + $0x8] sm:$0xff] }
 0x46e   : > { %3878 = vst.msk [vmem:[#allocation3 + $0x10] sm:$0xff] %vm1769_vm9, %v3785_v60  ;;  %3044 = vrot.lane.b32.xlu1 %v6451_v19, %s5078_s10  ;;  %4971 = vmatmul.mubr.msk.f32.vlgmr.msra.gmra.mrb[0].mxu1 %vm2036_vm11, %v4101_v62  ;;  %v3928_v62 = vld [vmem:[#allocation2 + $0x122] sm:$0xff] }
 0x46f   : > { %3616 = vrot.lane.b32.xlu0 %v6451_v19, %s5081_s13 }
 0x470   : > { %v3977_v15 = vpop.permute.xlu1 %3976 }
 0x471   : > { %4070 = vst.msk [vmem:[#allocation3 + $0x10] sm:$0xff] %vm1962_vm10, %v3977_v15  ;;  %v3787_v56 = vpop.permute.xlu0 %3786  ;;  %v3737_v15 = vld [vmem:[#allocation2 + $0x129] sm:$0xff] }
 0x472   : > { %3879 = vst.msk [vmem:[#allocation3 + $0x18] sm:$0xff] %vm1769_vm9, %v3787_v56  ;;  %3808 = vrot.lane.b32.xlu1 %v3730_v9, %s5082_s17 }
 0x473   : > { %3618 = vrot.lane.b32.xlu0 %v6445_v12, %s5081_s13 }
 0x474   : > { %v3405_v61 = vpop.permute.xlu1 %3404 }
 0x475   : > { %3496 = vst.msk [vmem:[#allocation3 + $0x20] sm:$0xff] %vm1382_vm7, %v3405_v61  ;;  %v3215_v23 = vpop.permute.xlu0 %3214 }
 0x476   : > { %3305 = vst.msk [vmem:[#allocation3 + $0x28] sm:$0xff] %vm1189_vm6, %v3215_v23  ;;  %3236 = vrot.lane.b32.xlu1 %v3730_v9, %s5079_s11 }
 0x477   : > { %3046 = vrot.lane.b32.xlu0 %v6445_v12, %s5078_s10 }
 0x478   : > { %v3407_v19 = vpop.permute.xlu1 %3406  ;;  %v4102_v28 = vld [vmem:[#allocation3 + $0x10] sm:$0xff] }
 0x479   : > { %3497 = vst.msk [vmem:[#allocation3 + $0x28] sm:$0xff] %vm1382_vm7, %v3407_v19  ;;  %4973 = vmatprep.mubr.msk.f32.mxu1 %vm2036_vm11, %v4102_v28  ;;  %v3979_v24 = vpop.permute.xlu0 %3978  ;;  %v3355_v28 = vld [vmem:[#allocation2 + $0x12a] sm:$0xff] }
 0x47a   : > { %4071 = vst.msk [vmem:[#allocation3 + $0x18] sm:$0xff] %vm1962_vm10, %v3979_v24  ;;  %4000 = vrot.lane.b32.xlu1 %v6603_v42, %s5083_s20 }
 0x47b   : > { %3810 = vrot.lane.b32.xlu0 %v3731_v58, %s5082_s17 }
 0x47c   : > { %v3599_v51 = vpop.permute.xlu1 %3598 }
 0x47d   : > { %3689 = vst.msk [vmem:[#allocation3 + $0x28] sm:$0xff] %vm1576_vm8, %v3599_v51  ;;  %v3597_v37 = vpop.permute.xlu0 %3596  ;;  %v2972_v51 = vld [vmem:[#allocation2 + $0x138] sm:$0xff] }
 0x47e   : > { %3688 = vst.msk [vmem:[#allocation3 + $0x20] sm:$0xff] %vm1576_vm8, %v3597_v37  ;;  %3428 = vrot.lane.b32.xlu1 %v6603_v42, %s5080_s12 }
 0x47f   : > { %3238 = vrot.lane.b32.xlu0 %v3731_v58, %s5079_s11 }
 0x480   : > { %v3217_v12 = vpop.permute.xlu1 %3216 }
 0x481   : > { %3306 = vst.msk [vmem:[#allocation3 + $0x30] sm:$0xff] %vm1189_vm6, %v3217_v12  ;;  %v3789_v6 = vpop.permute.xlu0 %3788  ;;  %v4103_v31 = vld [vmem:[#allocation3 + $0x18] sm:$0xff] }
 0x482   : > { %3880 = vst.msk [vmem:[#allocation3 + $0x20] sm:$0xff] %vm1769_vm9, %v3789_v6  ;;  %3430 = vrot.lane.b32.xlu1 %v6598_v41, %s5080_s12  ;;  %4974 = vmatmul.mubr.msk.f32.gmra.mrb[2].mxu1 %vm2036_vm11, %v4103_v31  ;;  %v3738_v6 = vld [vmem:[#allocation2 + $0x139] sm:$0xff] }
 0x483   : > { %4002 = vrot.lane.b32.xlu0 %v6598_v41, %s5083_s20 }
 0x484   : > { %v3981_v32 = vpop.permute.xlu1 %3980 }
 0x485   : > { %4072 = vst.msk [vmem:[#allocation3 + $0x20] sm:$0xff] %vm1962_vm10, %v3981_v32  ;;  %v3791_v42 = vpop.permute.xlu0 %3790  ;;  %v3547_v32 = vld [vmem:[#allocation2 + $0x140] sm:$0xff] }
 0x486   : > { %3881 = vst.msk [vmem:[#allocation3 + $0x28] sm:$0xff] %vm1769_vm9, %v3791_v42  ;;  %3048 = vrot.lane.b32.xlu1 %v6467_v21, %s5078_s10 }
 0x487   : > { %3620 = vrot.lane.b32.xlu0 %v6467_v21, %s5081_s13 }
 0x488   : > { %v3409_v11 = vpop.permute.xlu1 %3408 }
 0x489   : > { %3498 = vst.msk [vmem:[#allocation3 + $0x30] sm:$0xff] %vm1382_vm7, %v3409_v11  ;;  %v3219_v13 = vpop.permute.xlu0 %3218 }
 0x48a   : > { %3307 = vst.msk [vmem:[#allocation3 + $0x38] sm:$0xff] %vm1189_vm6, %v3219_v13  ;;  %3812 = vrot.lane.b32.xlu1 %v3732_v8, %s5082_s17 }
 0x48b   : > { %3622 = vrot.lane.b32.xlu0 %v6461_v17, %s5081_s13 }
 0x48c   : > { %v3411_v41 = vpop.permute.xlu1 %3410  ;;  %v4104_v30 = vld [vmem:[#allocation3 + $0x20] sm:$0xff] }
 0x48d   : > { %3499 = vst.msk [vmem:[#allocation3 + $0x38] sm:$0xff] %vm1382_vm7, %v3411_v41  ;;  %4976 = vmatprep.mubr.msk.f32.mxu1 %vm2036_vm11, %v4104_v30  ;;  %v3983_v39 = vpop.permute.xlu0 %3982  ;;  %v3930_v41 = vld [vmem:[#allocation2 + $0x13a] sm:$0xff] }
 0x48e   : > { %4073 = vst.msk [vmem:[#allocation3 + $0x28] sm:$0xff] %vm1962_vm10, %v3983_v39  ;;  %3240 = vrot.lane.b32.xlu1 %v3732_v8, %s5079_s11  ;;  %v3739_v30 = vld [vmem:[#allocation2 + $0x141] sm:$0xff] }
 0x48f   : > { %3050 = vrot.lane.b32.xlu0 %v6461_v17, %s5078_s10 }
 0x490   : > { %v3603_v21 = vpop.permute.xlu1 %3602 }
 0x491   : > { %3691 = vst.msk [vmem:[#allocation3 + $0x38] sm:$0xff] %vm1576_vm8, %v3603_v21  ;;  %v3601_v57 = vpop.permute.xlu0 %3600 }
 0x492   : > { %3690 = vst.msk [vmem:[#allocation3 + $0x30] sm:$0xff] %vm1576_vm8, %v3601_v57  ;;  %4004 = vrot.lane.b32.xlu1 %v3924_v40, %s5083_s20 }
 0x493   : > { %3814 = vrot.lane.b32.xlu0 %v3733_v43, %s5082_s17 }
 0x494   : > { %v3221_v52 = vpop.permute.xlu1 %3220 }
 0x495   : > { %3308 = vst.msk [vmem:[#allocation3 + $0x40] sm:$0xff] %vm1189_vm6, %v3221_v52  ;;  %v3793_v36 = vpop.permute.xlu0 %3792  ;;  %v4105_v50 = vld [vmem:[#allocation3 + $0x28] sm:$0xff]  ;;  %v3357_v52 = vld [vmem:[#allocation2 + $0x142] sm:$0xff] }
 0x496   : > { %3882 = vst.msk [vmem:[#allocation3 + $0x30] sm:$0xff] %vm1769_vm9, %v3793_v36  ;;  %3432 = vrot.lane.b32.xlu1 %v3924_v40, %s5080_s12  ;;  %4977 = vmatmul.mubr.msk.f32.gmra.mrb[4].mxu1 %vm2036_vm11, %v4105_v50 }
 0x497   : > { %3242 = vrot.lane.b32.xlu0 %v3733_v43, %s5079_s11 }
 0x498   : > { %v3985_v17 = vpop.permute.xlu1 %3984 }
 0x499   : > { %4074 = vst.msk [vmem:[#allocation3 + $0x30] sm:$0xff] %vm1962_vm10, %v3985_v17  ;;  %v3795_v53 = vpop.permute.xlu0 %3794  ;;  %v2974_v17 = vld [vmem:[#allocation2 + $0x150] sm:$0xff] }
 0x49a   : > { %3883 = vst.msk [vmem:[#allocation3 + $0x38] sm:$0xff] %vm1769_vm9, %v3795_v53  ;;  %3434 = vrot.lane.b32.xlu1 %v3351_v10, %s5080_s12 }
 0x49b   : > { %4006 = vrot.lane.b32.xlu0 %v3351_v10, %s5083_s20 }
 0x49c   : > { %v3413_v16 = vpop.permute.xlu1 %3412 }
 0x49d   : > { %3500 = vst.msk [vmem:[#allocation3 + $0x40] sm:$0xff] %vm1382_vm7, %v3413_v16  ;;  %v3223_v63 = vpop.permute.xlu0 %3222 }
 0x49e   : > { %3309 = vst.msk [vmem:[#allocation3 + $0x48] sm:$0xff] %vm1189_vm6, %v3223_v63  ;;  %3052 = vrot.lane.b32.xlu1 %v6483_v2, %s5078_s10  ;;  %v3740_v63 = vld [vmem:[#allocation2 + $0x151] sm:$0xff] }
 0x49f   : > { %3624 = vrot.lane.b32.xlu0 %v6483_v2, %s5081_s13 }
 0x4a0   : > { %v3415_v48 = vpop.permute.xlu1 %3414  ;;  %v4106_v38 = vld [vmem:[#allocation3 + $0x30] sm:$0xff] }
 0x4a1   : > { %3501 = vst.msk [vmem:[#allocation3 + $0x48] sm:$0xff] %vm1382_vm7, %v3415_v48  ;;  %4979 = vmatprep.mubr.msk.f32.mxu1 %vm2036_vm11, %v4106_v38  ;;  %v3987_v3 = vpop.permute.xlu0 %3986  ;;  %v3549_v48 = vld [vmem:[#allocation2 + $0x158] sm:$0xff] }
 0x4a2   : > { %4075 = vst.msk [vmem:[#allocation3 + $0x38] sm:$0xff] %vm1962_vm10, %v3987_v3  ;;  %3816 = vrot.lane.b32.xlu1 %v3734_v25, %s5082_s17 }
 0x4a3   : > { %3626 = vrot.lane.b32.xlu0 %v6477_v55, %s5081_s13 }
 0x4a4   : > { %v3607_v49 = vpop.permute.xlu1 %3606 }
 0x4a5   : > { %3693 = vst.msk [vmem:[#allocation3 + $0x48] sm:$0xff] %vm1576_vm8, %v3607_v49  ;;  %v3605_v59 = vpop.permute.xlu0 %3604 }
 0x4a6   : > { %3692 = vst.msk [vmem:[#allocation3 + $0x40] sm:$0xff] %vm1576_vm8, %v3605_v59  ;;  %3244 = vrot.lane.b32.xlu1 %v3734_v25, %s5079_s11  ;;  %v3932_v59 = vld [vmem:[#allocation2 + $0x152] sm:$0xff] }
 0x4a7   : > { %3054 = vrot.lane.b32.xlu0 %v6477_v55, %s5078_s10 }
 0x4a8   : > { %v3225_v2 = vpop.permute.xlu1 %3224 }
 0x4a9   : > { %3310 = vst.msk [vmem:[#allocation3 + $0x50] sm:$0xff] %vm1189_vm6, %v3225_v2  ;;  %v3797_v45 = vpop.permute.xlu0 %3796  ;;  %v4107_v35 = vld [vmem:[#allocation3 + $0x38] sm:$0xff]  ;;  %v3741_v2 = vld [vmem:[#allocation2 + $0x159] sm:$0xff] }
 0x4aa   : > { %3884 = vst.msk [vmem:[#allocation3 + $0x40] sm:$0xff] %vm1769_vm9, %v3797_v45  ;;  %4008 = vrot.lane.b32.xlu1 %v3926_v22, %s5083_s20  ;;  %4980 = vmatmul.mubr.msk.f32.gmra.mrb[6].mxu1 %vm2036_vm11, %v4107_v35 }
 0x4ab   : > { %3818 = vrot.lane.b32.xlu0 %v3735_v18, %s5082_s17 }
 0x4ac   : > { %v3989_v44 = vpop.permute.xlu1 %3988 }
 0x4ad   : > { %4076 = vst.msk [vmem:[#allocation3 + $0x40] sm:$0xff] %vm1962_vm10, %v3989_v44  ;;  %v3799_v47 = vpop.permute.xlu0 %3798 }
 0x4ae   : > { %3885 = vst.msk [vmem:[#allocation3 + $0x48] sm:$0xff] %vm1769_vm9, %v3799_v47  ;;  %3436 = vrot.lane.b32.xlu1 %v3926_v22, %s5080_s12  ;;  %v3359_v47 = vld [vmem:[#allocation2 + $0x15a] sm:$0xff] }
 0x4af   : > { %3246 = vrot.lane.b32.xlu0 %v3735_v18, %s5079_s11 }
 0x4b0   : > { %v3417_v55 = vpop.permute.xlu1 %3416 }
 0x4b1   : > { %3502 = vst.msk [vmem:[#allocation3 + $0x50] sm:$0xff] %vm1382_vm7, %v3417_v55  ;;  %v3227_v29 = vpop.permute.xlu0 %3226 }
 0x4b2   : > { %3311 = vst.msk [vmem:[#allocation3 + $0x58] sm:$0xff] %vm1189_vm6, %v3227_v29  ;;  %3438 = vrot.lane.b32.xlu1 %v3353_v33, %s5080_s12 }
 0x4b3   : > { %4010 = vrot.lane.b32.xlu0 %v3353_v33, %s5083_s20  ;;  %v2976_v33 = vld [vmem:[#allocation2 + $0x168] sm:$0xff] }
 0x4b4   : > { %v3419_v7 = vpop.permute.xlu1 %3418  ;;  %v4108_v34 = vld [vmem:[#allocation3 + $0x40] sm:$0xff] }
 0x4b5   : > { %3503 = vst.msk [vmem:[#allocation3 + $0x58] sm:$0xff] %vm1382_vm7, %v3419_v7  ;;  %4982 = vmatprep.mubr.msk.f32.mxu1 %vm2036_vm11, %v4108_v34  ;;  %v3991_v20 = vpop.permute.xlu0 %3990 }
 0x4b6   : > { %4077 = vst.msk [vmem:[#allocation3 + $0x48] sm:$0xff] %vm1962_vm10, %v3991_v20  ;;  %3056 = vrot.lane.b32.xlu1 %v2970_v27, %s5078_s10 }
 0x4b7   : > { %3628 = vrot.lane.b32.xlu0 %v2970_v27, %s5081_s13  ;;  %v3742_v27 = vld [vmem:[#allocation2 + $0x169] sm:$0xff] }
 0x4b8   : > { %v3611_v26 = vpop.permute.xlu1 %3610 }
 0x4b9   : > { %3695 = vst.msk [vmem:[#allocation3 + $0x58] sm:$0xff] %vm1576_vm8, %v3611_v26  ;;  %v3609_v0 = vpop.permute.xlu0 %3608  ;;  %v3551_v26 = vld [vmem:[#allocation2 + $0x170] sm:$0xff] }
 0x4ba   : > { %3694 = vst.msk [vmem:[#allocation3 + $0x50] sm:$0xff] %vm1576_vm8, %v3609_v0  ;;  %3820 = vrot.lane.b32.xlu1 %v3736_v1, %s5082_s17 }
 0x4bb   : > { %3630 = vrot.lane.b32.xlu0 %v3545_v46, %s5081_s13 }
 0x4bc   : > { %v3229_v54 = vpop.permute.xlu1 %3228 }
 0x4bd   : > { %3312 = vst.msk [vmem:[#allocation3 + $0x60] sm:$0xff] %vm1189_vm6, %v3229_v54  ;;  %v3801_v14 = vpop.permute.xlu0 %3800  ;;  %v4109_v4 = vld [vmem:[#allocation3 + $0x48] sm:$0xff] }
 0x4be   : > { %3886 = vst.msk [vmem:[#allocation3 + $0x50] sm:$0xff] %vm1769_vm9, %v3801_v14  ;;  %3248 = vrot.lane.b32.xlu1 %v3736_v1, %s5079_s11  ;;  %4983 = vmatmul.mubr.msk.f32.gmra.mrb[8].mxu1 %vm2036_vm11, %v4109_v4  ;;  %v3934_v14 = vld [vmem:[#allocation2 + $0x16a] sm:$0xff] }
 0x4bf   : > { %3058 = vrot.lane.b32.xlu0 %v3545_v46, %s5078_s10  ;;  %v3743_v4 = vld [vmem:[#allocation2 + $0x171] sm:$0xff] }
 0x4c0   : > { %v3993_v5 = vpop.permute.xlu1 %3992 }
 0x4c1   : > { %4078 = vst.msk [vmem:[#allocation3 + $0x50] sm:$0xff] %vm1962_vm10, %v3993_v5  ;;  %v3803_v60 = vpop.permute.xlu0 %3802 }
 0x4c2   : > { %3887 = vst.msk [vmem:[#allocation3 + $0x58] sm:$0xff] %vm1769_vm9, %v3803_v60  ;;  %4012 = vrot.lane.b32.xlu1 %v3928_v62, %s5083_s20 }
 0x4c3   : > { %3822 = vrot.lane.b32.xlu0 %v3737_v15, %s5082_s17 }
 0x4c4   : > { %v3421_v56 = vpop.permute.xlu1 %3420 }
 0x4c5   : > { %3504 = vst.msk [vmem:[#allocation3 + $0x60] sm:$0xff] %vm1382_vm7, %v3421_v56  ;;  %v3231_v9 = vpop.permute.xlu0 %3230 }
 0x4c6   : > { %3313 = vst.msk [vmem:[#allocation3 + $0x68] sm:$0xff] %vm1189_vm6, %v3231_v9  ;;  %3440 = vrot.lane.b32.xlu1 %v3928_v62, %s5080_s12  ;;  %v3361_v9 = vld [vmem:[#allocation2 + $0x172] sm:$0xff] }
 0x4c7   : > { %3250 = vrot.lane.b32.xlu0 %v3737_v15, %s5079_s11 }
 0x4c8   : > { %v3423_v61 = vpop.permute.xlu1 %3422  ;;  %v4110_v23 = vld [vmem:[#allocation3 + $0x50] sm:$0xff] }
 0x4c9   : > { %3505 = vst.msk [vmem:[#allocation3 + $0x68] sm:$0xff] %vm1382_vm7, %v3423_v61  ;;  %4985 = vmatprep.mubr.msk.f32.mxu1 %vm2036_vm11, %v4110_v23  ;;  %v3995_v19 = vpop.permute.xlu0 %3994 }
 0x4ca   : > { %4079 = vst.msk [vmem:[#allocation3 + $0x58] sm:$0xff] %vm1962_vm10, %v3995_v19  ;;  %3442 = vrot.lane.b32.xlu1 %v3355_v28, %s5080_s12 }
 0x4cb   : > { %4014 = vrot.lane.b32.xlu0 %v3355_v28, %s5083_s20  ;;  %v2978_v28 = vld [vmem:[#allocation2 + $0x180] sm:$0xff] }
 0x4cc   : > { %v3615_v24 = vpop.permute.xlu1 %3614 }
 0x4cd   : > { %3697 = vst.msk [vmem:[#allocation3 + $0x68] sm:$0xff] %vm1576_vm8, %v3615_v24  ;;  %v3613_v58 = vpop.permute.xlu0 %3612 }
 0x4ce   : > { %3696 = vst.msk [vmem:[#allocation3 + $0x60] sm:$0xff] %vm1576_vm8, %v3613_v58  ;;  %3060 = vrot.lane.b32.xlu1 %v2972_v51, %s5078_s10 }
 0x4cf   : > { %3632 = vrot.lane.b32.xlu0 %v2972_v51, %s5081_s13  ;;  %v3744_v51 = vld [vmem:[#allocation2 + $0x181] sm:$0xff] }
 0x4d0   : > { %v3233_v37 = vpop.permute.xlu1 %3232 }
 0x4d1   : > { %3314 = vst.msk [vmem:[#allocation3 + $0x70] sm:$0xff] %vm1189_vm6, %v3233_v37  ;;  %v3805_v12 = vpop.permute.xlu0 %3804  ;;  %v4111_v31 = vld [vmem:[#allocation3 + $0x58] sm:$0xff] }
 0x4d2   : > { %3888 = vst.msk [vmem:[#allocation3 + $0x60] sm:$0xff] %vm1769_vm9, %v3805_v12  ;;  %3824 = vrot.lane.b32.xlu1 %v3738_v6, %s5082_s17  ;;  %4986 = vmatmul.mubr.msk.f32.gmra.mrb[10].mxu1 %vm2036_vm11, %v4111_v31  ;;  %v3553_v37 = vld [vmem:[#allocation2 + $0x188] sm:$0xff] }
 0x4d3   : > { %3634 = vrot.lane.b32.xlu0 %v3547_v32, %s5081_s13 }
 0x4d4   : > { %v3997_v42 = vpop.permute.xlu1 %3996 }
 0x4d5   : > { %4080 = vst.msk [vmem:[#allocation3 + $0x60] sm:$0xff] %vm1962_vm10, %v3997_v42  ;;  %v3807_v11 = vpop.permute.xlu0 %3806  ;;  %v3936_v42 = vld [vmem:[#allocation2 + $0x182] sm:$0xff] }
 0x4d6   : > { %3889 = vst.msk [vmem:[#allocation3 + $0x68] sm:$0xff] %vm1769_vm9, %v3807_v11  ;;  %3252 = vrot.lane.b32.xlu1 %v3738_v6, %s5079_s11  ;;  %v3745_v11 = vld [vmem:[#allocation2 + $0x189] sm:$0xff] }
 0x4d7   : > { %3062 = vrot.lane.b32.xlu0 %v3547_v32, %s5078_s10 }
 0x4d8   : > { %v3425_v13 = vpop.permute.xlu1 %3424 }
 0x4d9   : > { %3506 = vst.msk [vmem:[#allocation3 + $0x70] sm:$0xff] %vm1382_vm7, %v3425_v13  ;;  %v3235_v8 = vpop.permute.xlu0 %3234 }
 0x4da   : > { %3315 = vst.msk [vmem:[#allocation3 + $0x78] sm:$0xff] %vm1189_vm6, %v3235_v8  ;;  %4016 = vrot.lane.b32.xlu1 %v3930_v41, %s5083_s20 }
 0x4db   : > { %3826 = vrot.lane.b32.xlu0 %v3739_v30, %s5082_s17 }
 0x4dc   : > { %v3427_v39 = vpop.permute.xlu1 %3426  ;;  %v4112_v21 = vld [vmem:[#allocation3 + $0x60] sm:$0xff] }
 0x4dd   : > { %3507 = vst.msk [vmem:[#allocation3 + $0x78] sm:$0xff] %vm1382_vm7, %v3427_v39  ;;  %4988 = vmatprep.mubr.msk.f32.mxu1 %vm2036_vm11, %v4112_v21  ;;  %v3999_v57 = vpop.permute.xlu0 %3998  ;;  %v3363_v21 = vld [vmem:[#allocation2 + $0x18a] sm:$0xff] }
 0x4de   : > { %4081 = vst.msk [vmem:[#allocation3 + $0x68] sm:$0xff] %vm1962_vm10, %v3999_v57  ;;  %3444 = vrot.lane.b32.xlu1 %v3930_v41, %s5080_s12  ;;  %v3555_v57 = vld [vmem:[#allocation2 + $0x1a0] sm:$0xff] }
 0x4df   : > { %3254 = vrot.lane.b32.xlu0 %v3739_v30, %s5079_s11 }
 0x4e0   : > { %v3045_v40 = vpop.permute.xlu1 %3044 }
 0x4e1   : > { %3124 = vst.msk [vmem:[#allocation3 + $0x80] sm:$0xff] %vm996_vm5, %v3045_v40  ;;  %v3617_v43 = vpop.permute.xlu0 %3616 }
 0x4e2   : > { %3698 = vst.msk [vmem:[#allocation3 + $0x70] sm:$0xff] %vm1576_vm8, %v3617_v43  ;;  %3446 = vrot.lane.b32.xlu1 %v3357_v52, %s5080_s12  ;;  %v3554_v43 = vld [vmem:[#allocation2 + $0x198] sm:$0xff] }
 0x4e3   : > { %4018 = vrot.lane.b32.xlu0 %v3357_v52, %s5083_s20 }
 0x4e4   : > { %v3809_v36 = vpop.permute.xlu1 %3808 }
 0x4e5   : > { %3890 = vst.msk [vmem:[#allocation3 + $0x70] sm:$0xff] %vm1769_vm9, %v3809_v36  ;;  %v3619_v50 = vpop.permute.xlu0 %3618  ;;  %v4113_v53 = vld [vmem:[#allocation3 + $0x68] sm:$0xff] }
 0x4e6   : > { %3699 = vst.msk [vmem:[#allocation3 + $0x78] sm:$0xff] %vm1576_vm8, %v3619_v50  ;;  %3064 = vrot.lane.b32.xlu1 %v2974_v17, %s5078_s10  ;;  %4989 = vmatmul.mubr.msk.f32.gmra.mrb[12].mxu1 %vm2036_vm11, %v4113_v53  ;;  %v3747_v50 = vld [vmem:[#allocation2 + $0x1a1] sm:$0xff]  ;;  %v3746_v53 = vld [vmem:[#allocation2 + $0x199] sm:$0xff] }
 0x4e7   : > { %3636 = vrot.lane.b32.xlu0 %v2974_v17, %s5081_s13 }
 0x4e8   : > { %v3237_v10 = vpop.permute.xlu1 %3236 }
 0x4e9   : > { %3316 = vst.msk [vmem:[#allocation3 + $0x80] sm:$0xff] %vm1189_vm6, %v3237_v10  ;;  %v3047_v16 = vpop.permute.xlu0 %3046 }
 0x4ea   : > { %3125 = vst.msk [vmem:[#allocation3 + $0x88] sm:$0xff] %vm996_vm5, %v3047_v16  ;;  %3828 = vrot.lane.b32.xlu1 %v3740_v63, %s5082_s17  ;;  %v3939_v16 = vld [vmem:[#allocation2 + $0x1a2] sm:$0xff] }
 0x4eb   : > { %3638 = vrot.lane.b32.xlu0 %v3549_v48, %s5081_s13 }
 0x4ec   : > { %v4001_v38 = vpop.permute.xlu1 %4000 }
 0x4ed   : > { %4082 = vst.msk [vmem:[#allocation3 + $0x70] sm:$0xff] %vm1962_vm10, %v4001_v38  ;;  %v3811_v3 = vpop.permute.xlu0 %3810 }
 0x4ee   : > { %3891 = vst.msk [vmem:[#allocation3 + $0x78] sm:$0xff] %vm1769_vm9, %v3811_v3  ;;  %3256 = vrot.lane.b32.xlu1 %v3740_v63, %s5079_s11 }
 0x4ef   : > { %3066 = vrot.lane.b32.xlu0 %v3549_v48, %s5078_s10  ;;  %v3938_v48 = vld [vmem:[#allocation2 + $0x19a] sm:$0xff] }
 0x4f0   : > { %v3429_v25 = vpop.permute.xlu1 %3428 }
 0x4f1   : > { %3508 = vst.msk [vmem:[#allocation3 + $0x80] sm:$0xff] %vm1382_vm7, %v3429_v25  ;;  %v3239_v49 = vpop.permute.xlu0 %3238 }
 0x4f2   : > { %3317 = vst.msk [vmem:[#allocation3 + $0x88] sm:$0xff] %vm1189_vm6, %v3239_v49  ;;  %4020 = vrot.lane.b32.xlu1 %v3932_v59, %s5083_s20 }
 0x4f3   : > { %3830 = vrot.lane.b32.xlu0 %v3741_v2, %s5082_s17 }
 0x4f4   : > { %v3431_v45 = vpop.permute.xlu1 %3430  ;;  %v4114_v22 = vld [vmem:[#allocation3 + $0x70] sm:$0xff] }
 0x4f5   : > { %3509 = vst.msk [vmem:[#allocation3 + $0x88] sm:$0xff] %vm1382_vm7, %v3431_v45  ;;  %4991 = vmatprep.mubr.msk.f32.mxu1 %vm2036_vm11, %v4114_v22  ;;  %v4003_v35 = vpop.permute.xlu0 %4002  ;;  %v7149_v45 = vld [vmem:[%s7396_s5] ss:$0 sm:$0xff] }
 0x4f6   : > { %4083 = vst.msk [vmem:[#allocation3 + $0x78] sm:$0xff] %vm1962_vm10, %v4003_v35  ;;  %3448 = vrot.lane.b32.xlu1 %v3932_v59, %s5080_s12 }
 0x4f7   : > { %3258 = vrot.lane.b32.xlu0 %v3741_v2, %s5079_s11 }
 0x4f8   : > { %v3049_v18 = vpop.permute.xlu1 %3048 }
 0x4f9   : > { %3126 = vst.msk [vmem:[#allocation3 + $0x90] sm:$0xff] %vm996_vm5, %v3049_v18  ;;  %v3621_v44 = vpop.permute.xlu0 %3620  ;;  %v7155_v18 = vld [vmem:[%s7397_s6] ss:$0 sm:$0xff] }
 0x4fa   : > { %3700 = vst.msk [vmem:[#allocation3 + $0x80] sm:$0xff] %vm1576_vm8, %v3621_v44  ;;  %3450 = vrot.lane.b32.xlu1 %v3359_v47, %s5080_s12 }
 0x4fb   : > { %4022 = vrot.lane.b32.xlu0 %v3359_v47, %s5083_s20 }
 0x4fc   : > { %v3813_v55 = vpop.permute.xlu1 %3812 }
 0x4fd   : > { %3892 = vst.msk [vmem:[#allocation3 + $0x80] sm:$0xff] %vm1769_vm9, %v3813_v55  ;;  %v3623_v29 = vpop.permute.xlu0 %3622  ;;  %v4115_v7 = vld [vmem:[#allocation3 + $0x78] sm:$0xff] }
 0x4fe   : > { %3701 = vst.msk [vmem:[#allocation3 + $0x88] sm:$0xff] %vm1576_vm8, %v3623_v29  ;;  %3068 = vrot.lane.b32.xlu1 %v2976_v33, %s5078_s10  ;;  %4992 = vmatmul.mubr.msk.f32.gmra.mrb[14].mxu1 %vm2036_vm11, %v4115_v7  ;;  %v4541_v29 = vld [vmem:[%s5186_s30 + $0x8] sm:$0xff] }
 0x4ff   : > { %3640 = vrot.lane.b32.xlu0 %v2976_v33, %s5081_s13 }
 0x500   : > { %v3241_v34 = vpop.permute.xlu1 %3240 }
 0x501   : > { %3318 = vst.msk [vmem:[#allocation3 + $0x90] sm:$0xff] %vm1189_vm6, %v3241_v34  ;;  %v3051_v20 = vpop.permute.xlu0 %3050  ;;  %v4540_v34 = vld [vmem:[%s5186_s30] sm:$0xff] }
 0x502   : > { %3127 = vst.msk [vmem:[#allocation3 + $0x98] sm:$0xff] %vm996_vm5, %v3051_v20  ;;  %3832 = vrot.lane.b32.xlu1 %v3742_v27, %s5082_s17 }
 0x503   : > { %3642 = vrot.lane.b32.xlu0 %v3551_v26, %s5081_s13 }
 0x504   : > { %v4005_v0 = vpop.permute.xlu1 %4004 }
 0x505   : > { %4084 = vst.msk [vmem:[#allocation3 + $0x80] sm:$0xff] %vm1962_vm10, %v4005_v0  ;;  %v3815_v1 = vpop.permute.xlu0 %3814 }
 0x506   : > { %3893 = vst.msk [vmem:[#allocation3 + $0x88] sm:$0xff] %vm1769_vm9, %v3815_v1  ;;  %3260 = vrot.lane.b32.xlu1 %v3742_v27, %s5079_s11 }
 0x507   : > { %3070 = vrot.lane.b32.xlu0 %v3551_v26, %s5078_s10 }
 0x508   : > { %v3433_v46 = vpop.permute.xlu1 %3432 }
 0x509   : > { %3510 = vst.msk [vmem:[#allocation3 + $0x90] sm:$0xff] %vm1382_vm7, %v3433_v46  ;;  %v3243_v54 = vpop.permute.xlu0 %3242 }
 0x50a   : > { %3319 = vst.msk [vmem:[#allocation3 + $0x98] sm:$0xff] %vm1189_vm6, %v3243_v54  ;;  %4024 = vrot.lane.b32.xlu1 %v3934_v14, %s5083_s20 }
 0x50b   : > { %3834 = vrot.lane.b32.xlu0 %v3743_v4, %s5082_s17 }
 0x50c   : > { %v3435_v5 = vpop.permute.xlu1 %3434  ;;  %v4116_v60 = vld [vmem:[#allocation3 + $0x80] sm:$0xff] }
 0x50d   : > { %3511 = vst.msk [vmem:[#allocation3 + $0x98] sm:$0xff] %vm1382_vm7, %v3435_v5  ;;  %4994 = vmatprep.mubr.msk.f32.mxu1 %vm2036_vm11, %v4116_v60  ;;  %v4007_v62 = vpop.permute.xlu0 %4006 }
 0x50e   : > { %4085 = vst.msk [vmem:[#allocation3 + $0x88] sm:$0xff] %vm1962_vm10, %v4007_v62  ;;  %3452 = vrot.lane.b32.xlu1 %v3934_v14, %s5080_s12 }
 0x50f   : > { %3262 = vrot.lane.b32.xlu0 %v3743_v4, %s5079_s11 }
 0x510   : > { %v3053_v15 = vpop.permute.xlu1 %3052 }
 0x511   : > { %3128 = vst.msk [vmem:[#allocation3 + $0xa0] sm:$0xff] %vm996_vm5, %v3053_v15  ;;  %v3625_v56 = vpop.permute.xlu0 %3624 }
 0x512   : > { %3702 = vst.msk [vmem:[#allocation3 + $0x90] sm:$0xff] %vm1576_vm8, %v3625_v56  ;;  %3454 = vrot.lane.b32.xlu1 %v3361_v9, %s5080_s12 }
 0x513   : > { %4026 = vrot.lane.b32.xlu0 %v3361_v9, %s5083_s20 }
 0x514   : > { %v3817_v61 = vpop.permute.xlu1 %3816 }
 0x515   : > { %3894 = vst.msk [vmem:[#allocation3 + $0x90] sm:$0xff] %vm1769_vm9, %v3817_v61  ;;  %v3627_v23 = vpop.permute.xlu0 %3626  ;;  %v4117_v19 = vld [vmem:[#allocation3 + $0x88] sm:$0xff] }
 0x516   : > { %3703 = vst.msk [vmem:[#allocation3 + $0x98] sm:$0xff] %vm1576_vm8, %v3627_v23  ;;  %4995 = vmatmul.mubr.msk.f32.gmra.mrb[16].mxu1 %vm2036_vm11, %v4117_v19  ;;  %3072 = vrot.lane.b32.xlu1 %v2978_v28, %s5078_s10 }
 0x517   : > { %3644 = vrot.lane.b32.xlu0 %v2978_v28, %s5081_s13 }
 0x518   : > { %v3245_v24 = vpop.permute.xlu1 %3244 }
 0x519   : > { %3320 = vst.msk [vmem:[#allocation3 + $0xa0] sm:$0xff] %vm1189_vm6, %v3245_v24  ;;  %v3055_v58 = vpop.permute.xlu0 %3054 }
 0x51a   : > { %3129 = vst.msk [vmem:[#allocation3 + $0xa8] sm:$0xff] %vm996_vm5, %v3055_v58  ;;  %3836 = vrot.lane.b32.xlu1 %v3744_v51, %s5082_s17  ;;  %v4543_v58 = vld [vmem:[%s5186_s30 + $0x18] sm:$0xff] }
 0x51b   : > { %3646 = vrot.lane.b32.xlu0 %v3553_v37, %s5081_s13 }
 0x51c   : > { %v4009_v12 = vpop.permute.xlu1 %4008 }
 0x51d   : > { %4086 = vst.msk [vmem:[#allocation3 + $0x90] sm:$0xff] %vm1962_vm10, %v4009_v12  ;;  %v3819_v6 = vpop.permute.xlu0 %3818  ;;  %v4542_v12 = vld [vmem:[%s5186_s30 + $0x10] sm:$0xff] }
 0x51e   : > { %3895 = vst.msk [vmem:[#allocation3 + $0x98] sm:$0xff] %vm1769_vm9, %v3819_v6  ;;  %3264 = vrot.lane.b32.xlu1 %v3744_v51, %s5079_s11 }
 0x51f   : > { %3074 = vrot.lane.b32.xlu0 %v3553_v37, %s5078_s10 }
 0x520   : > { %v3437_v31 = vpop.permute.xlu1 %3436 }
 0x521   : > { %3512 = vst.msk [vmem:[#allocation3 + $0xa0] sm:$0xff] %vm1382_vm7, %v3437_v31  ;;  %v3247_v32 = vpop.permute.xlu0 %3246 }
 0x522   : > { %3321 = vst.msk [vmem:[#allocation3 + $0xa8] sm:$0xff] %vm1189_vm6, %v3247_v32  ;;  %4028 = vrot.lane.b32.xlu1 %v3936_v42, %s5083_s20 }
 0x523   : > { %3838 = vrot.lane.b32.xlu0 %v3745_v11, %s5082_s17 }
 0x524   : > { %v3439_v13 = vpop.permute.xlu1 %3438  ;;  %v4118_v8 = vld [vmem:[#allocation3 + $0x90] sm:$0xff] }
 0x525   : > { %3513 = vst.msk [vmem:[#allocation3 + $0xa8] sm:$0xff] %vm1382_vm7, %v3439_v13  ;;  %4997 = vmatprep.mubr.msk.f32.mxu1 %vm2036_vm11, %v4118_v8  ;;  %v4011_v41 = vpop.permute.xlu0 %4010 }
 0x526   : > { %4087 = vst.msk [vmem:[#allocation3 + $0x98] sm:$0xff] %vm1962_vm10, %v4011_v41  ;;  %3456 = vrot.lane.b32.xlu1 %v3936_v42, %s5080_s12 }
 0x527   : > { %3266 = vrot.lane.b32.xlu0 %v3745_v11, %s5079_s11 }
 0x528   : > { %v3057_v30 = vpop.permute.xlu1 %3056 }
 0x529   : > { %3130 = vst.msk [vmem:[#allocation3 + $0xb0] sm:$0xff] %vm996_vm5, %v3057_v30  ;;  %v3629_v39 = vpop.permute.xlu0 %3628 }
 0x52a   : > { %3704 = vst.msk [vmem:[#allocation3 + $0xa0] sm:$0xff] %vm1576_vm8, %v3629_v39  ;;  %3458 = vrot.lane.b32.xlu1 %v3363_v21, %s5080_s12 }
 0x52b   : > { %4030 = vrot.lane.b32.xlu0 %v3363_v21, %s5083_s20 }
 0x52c   : > { %v3821_v40 = vpop.permute.xlu1 %3820 }
 0x52d   : > { %3896 = vst.msk [vmem:[#allocation3 + $0xa0] sm:$0xff] %vm1769_vm9, %v3821_v40  ;;  %v3631_v52 = vpop.permute.xlu0 %3630  ;;  %v4119_v36 = vld [vmem:[#allocation3 + $0x98] sm:$0xff] }
 0x52e   : > { %3705 = vst.msk [vmem:[#allocation3 + $0xa8] sm:$0xff] %vm1576_vm8, %v3631_v52  ;;  %4998 = vmatmul.mubr.msk.f32.gmra.mrb[18].mxu1 %vm2036_vm11, %v4119_v36  ;;  %3650 = vrot.lane.b32.xlu1 %v3555_v57, %s5081_s13 }
 0x52f   : > { %3648 = vrot.lane.b32.xlu0 %v3554_v43, %s5081_s13 }
 0x530   : > { %v3249_v17 = vpop.permute.xlu1 %3248 }
 0x531   : > { %3322 = vst.msk [vmem:[#allocation3 + $0xb0] sm:$0xff] %vm1189_vm6, %v3249_v17  ;;  %v3059_v10 = vpop.permute.xlu0 %3058 }
 0x532   : > { %3131 = vst.msk [vmem:[#allocation3 + $0xb8] sm:$0xff] %vm996_vm5, %v3059_v10  ;;  %3842 = vrot.lane.b32.xlu1 %v3747_v50, %s5082_s17  ;;  %v4545_v10 = vld [vmem:[%s5186_s30 + $0x28] sm:$0xff] }
 0x533   : > { %3840 = vrot.lane.b32.xlu0 %v3746_v53, %s5082_s17 }
 0x534   : > { %v4013_v63 = vpop.permute.xlu1 %4012 }
 0x535   : > { %4088 = vst.msk [vmem:[#allocation3 + $0xa0] sm:$0xff] %vm1962_vm10, %v4013_v63  ;;  %v3823_v38 = vpop.permute.xlu0 %3822 }
 0x536   : > { %3897 = vst.msk [vmem:[#allocation3 + $0xa8] sm:$0xff] %vm1769_vm9, %v3823_v38  ;;  %4034 = vrot.lane.b32.xlu1 %v3939_v16, %s5083_s20 }
 0x537   : > { %4032 = vrot.lane.b32.xlu0 %v3938_v48, %s5083_s20  ;;  %v4544_v48 = vld [vmem:[%s5186_s30 + $0x20] sm:$0xff] }
 0x538   : > { %v3441_v3 = vpop.permute.xlu1 %3440 }
 0x539   : > { %3514 = vst.msk [vmem:[#allocation3 + $0xb0] sm:$0xff] %vm1382_vm7, %v3441_v3  ;;  %v3251_v25 = vpop.permute.xlu0 %3250 }
 0x53a   : > { %3323 = vst.msk [vmem:[#allocation3 + $0xb8] sm:$0xff] %vm1189_vm6, %v3251_v25 }
 0x53c   : > { %v3443_v49 = vpop.permute.xlu1 %3442  ;;  %v4120_v59 = vld [vmem:[#allocation3 + $0xa0] sm:$0xff] }
 0x53d   : > { %3515 = vst.msk [vmem:[#allocation3 + $0xb8] sm:$0xff] %vm1382_vm7, %v3443_v49  ;;  %5000 = vmatprep.mubr.msk.f32.mxu1 %vm2036_vm11, %v4120_v59  ;;  %v4015_v2 = vpop.permute.xlu0 %4014 }
 0x53e   : > { %4089 = vst.msk [vmem:[#allocation3 + $0xa8] sm:$0xff] %vm1962_vm10, %v4015_v2 }
 0x540   : > { %v3061_v22 = vpop.permute.xlu1 %3060 }
 0x541   : > { %3132 = vst.msk [vmem:[#allocation3 + $0xc0] sm:$0xff] %vm996_vm5, %v3061_v22  ;;  %v4972_v35 = vpop.f32.mrb[0].mxu1  ;;  %v3633_v44 = vpop.permute.xlu0 %3632 }
 0x542   : > { %v4470_v47 = vmul.f32 %v4972_v35, %v7149_v45  ;;  %3706 = vst.msk [vmem:[#allocation3 + $0xb0] sm:$0xff] %vm1576_vm8, %v3633_v44  ;;  %v4303_v55 = vpop.f32.mrb[1].mxu1 }
 0x543   : > { %v4469_v33 = vmul.f32 %v7149_v45, %v4303_v55 }
 0x544   : > { %v4509_v7 = vadd.f32 %v7155_v18, %v4470_v47  ;;  %v3825_v20 = vpop.permute.xlu1 %3824 }
 0x545   : > { %v4508_v27 = vadd.f32 %v7155_v18, %v4469_v33  ;;  %3898 = vst.msk [vmem:[#allocation3 + $0xb0] sm:$0xff] %vm1769_vm9, %v3825_v20  ;;  %v3635_v26 = vpop.permute.xlu0 %3634  ;;  %v4121_v0 = vld [vmem:[#allocation3 + $0xa8] sm:$0xff] }
 0x546   : > { %v4573_v1 = vadd.f32 %v4541_v29, %v4509_v7  ;;  %3707 = vst.msk [vmem:[#allocation3 + $0xb8] sm:$0xff] %vm1576_vm8, %v3635_v26  ;;  %5001 = vmatmul.mubr.msk.f32.gmra.mrb[20].mxu1 %vm2036_vm11, %v4121_v0 }
 0x547   : > { %v4572_v46 = vadd.f32 %v4540_v34, %v4508_v27 }
 0x548   : > { %v4605_v54 = vmax.f32 %v4573_v1, 0.0  ;;  %v3253_v14 = vpop.permute.xlu1 %3252 }
 0x549   : > { %v4604_v4 = vmax.f32 %v4572_v46, 0.0  ;;  %3324 = vst.msk [vmem:[#allocation3 + $0xc0] sm:$0xff] %vm1189_vm6, %v3253_v14  ;;  %v3063_v5 = vpop.permute.xlu0 %3062  ;;  %v4547_v46 = vld [vmem:[%s5186_s30 + $0x38] sm:$0xff] }
 0x54a   : > { %4637 = vst.msk [vmem:[%s7172_s15 + $0x8] sm:$0xff] %vm279_vm0, %v4605_v54 }
 0x54b   : > { %3133 = vst.msk [vmem:[#allocation3 + $0xc8] sm:$0xff] %vm996_vm5, %v3063_v5 }
 0x54c   : > { %4636 = vst.msk [vmem:[%s7172_s15] sm:$0xff] %vm279_vm0, %v4604_v4  ;;  %v4017_v60 = vpop.permute.xlu1 %4016  ;;  %v4546_v4 = vld [vmem:[%s5186_s30 + $0x30] sm:$0xff] }
 0x54d   : > { %4090 = vst.msk [vmem:[#allocation3 + $0xb0] sm:$0xff] %vm1962_vm10, %v4017_v60  ;;  %v3827_v62 = vpop.permute.xlu0 %3826 }
 0x54e   : > { %3899 = vst.msk [vmem:[#allocation3 + $0xb8] sm:$0xff] %vm1769_vm9, %v3827_v62 }
 0x550   : > { %v3445_v15 = vpop.permute.xlu1 %3444 }
 0x551   : > { %3516 = vst.msk [vmem:[#allocation3 + $0xc0] sm:$0xff] %vm1382_vm7, %v3445_v15  ;;  %v3255_v56 = vpop.permute.xlu0 %3254 }
 0x552   : > { %3325 = vst.msk [vmem:[#allocation3 + $0xc8] sm:$0xff] %vm1189_vm6, %v3255_v56 }
 0x554   : > { %v3447_v9 = vpop.permute.xlu1 %3446  ;;  %v4122_v61 = vld [vmem:[#allocation3 + $0xb0] sm:$0xff] }
 0x555   : > { %3517 = vst.msk [vmem:[#allocation3 + $0xc8] sm:$0xff] %vm1382_vm7, %v3447_v9  ;;  %v4975_v23 = vpop.f32.mrb[2].mxu1  ;;  %5003 = vmatprep.mubr.msk.f32.mxu1 %vm2036_vm11, %v4122_v61  ;;  %v4019_v19 = vpop.permute.xlu0 %4018 }
 0x556   : > { %v4472_v28 = vmul.f32 %v4975_v23, %v7149_v45  ;;  %4091 = vst.msk [vmem:[#allocation3 + $0xb8] sm:$0xff] %vm1962_vm10, %v4019_v19  ;;  %v4313_v24 = vpop.f32.mrb[3].mxu1 }
 0x557   : > { %v4471_v51 = vmul.f32 %v7149_v45, %v4313_v24 }
 0x558   : > { %v4511_v37 = vadd.f32 %v7155_v18, %v4472_v28  ;;  %v3065_v6 = vpop.permute.xlu1 %3064 }
 0x559   : > { %v4510_v31 = vadd.f32 %v7155_v18, %v4471_v51  ;;  %3134 = vst.msk [vmem:[#allocation3 + $0xd0] sm:$0xff] %vm996_vm5, %v3065_v6  ;;  %v3637_v32 = vpop.permute.xlu0 %3636 }
 0x55a   : > { %v4575_v42 = vadd.f32 %v4543_v58, %v4511_v37  ;;  %3708 = vst.msk [vmem:[#allocation3 + $0xc0] sm:$0xff] %vm1576_vm8, %v3637_v32 }
 0x55b   : > { %v4574_v11 = vadd.f32 %v4542_v12, %v4510_v31 }
 0x55c   : > { %v4607_v13 = vmax.f32 %v4575_v42, 0.0  ;;  %v3829_v8 = vpop.permute.xlu1 %3828 }
 0x55d   : > { %v4606_v41 = vmax.f32 %v4574_v11, 0.0  ;;  %3900 = vst.msk [vmem:[#allocation3 + $0xc0] sm:$0xff] %vm1769_vm9, %v3829_v8  ;;  %v3639_v30 = vpop.permute.xlu0 %3638  ;;  %v4123_v39 = vld [vmem:[#allocation3 + $0xb8] sm:$0xff] }
 0x55e   : > { %4639 = vst.msk [vmem:[%s7172_s15 + $0x18] sm:$0xff] %vm279_vm0, %v4607_v13  ;;  %5004 = vmatmul.mubr.msk.f32.gmra.mrb[22].mxu1 %vm2036_vm11, %v4123_v39  ;;  %v4549_v13 = vld [vmem:[%s5186_s30 + $0x48] sm:$0xff] }
 0x55f   : > { %3709 = vst.msk [vmem:[#allocation3 + $0xc8] sm:$0xff] %vm1576_vm8, %v3639_v30  ;;  %v4548_v30 = vld [vmem:[%s5186_s30 + $0x40] sm:$0xff] }
 0x560   : > { %4638 = vst.msk [vmem:[%s7172_s15 + $0x10] sm:$0xff] %vm279_vm0, %v4606_v41  ;;  %v3257_v21 = vpop.permute.xlu1 %3256 }
 0x561   : > { %3326 = vst.msk [vmem:[#allocation3 + $0xd0] sm:$0xff] %vm1189_vm6, %v3257_v21  ;;  %v3067_v57 = vpop.permute.xlu0 %3066 }
 0x562   : > { %3135 = vst.msk [vmem:[#allocation3 + $0xd8] sm:$0xff] %vm996_vm5, %v3067_v57 }
 0x564   : > { %v4021_v40 = vpop.permute.xlu1 %4020 }
 0x565   : > { %4092 = vst.msk [vmem:[#allocation3 + $0xc0] sm:$0xff] %vm1962_vm10, %v4021_v40  ;;  %v3831_v43 = vpop.permute.xlu0 %3830 }
 0x566   : > { %3901 = vst.msk [vmem:[#allocation3 + $0xc8] sm:$0xff] %vm1769_vm9, %v3831_v43 }
 0x568   : > { %v3449_v52 = vpop.permute.xlu1 %3448 }
 0x569   : > { %3518 = vst.msk [vmem:[#allocation3 + $0xd0] sm:$0xff] %vm1382_vm7, %v3449_v52  ;;  %v4978_v36 = vpop.f32.mrb[4].mxu1  ;;  %v3259_v50 = vpop.permute.xlu0 %3258 }
 0x56a   : > { %v4474_v17 = vmul.f32 %v4978_v36, %v7149_v45  ;;  %3327 = vst.msk [vmem:[#allocation3 + $0xd8] sm:$0xff] %vm1189_vm6, %v3259_v50  ;;  %v4323_v53 = vpop.f32.mrb[5].mxu1 }
 0x56b   : > { %v4473_v16 = vmul.f32 %v7149_v45, %v4323_v53 }
 0x56c   : > { %v4513_v63 = vadd.f32 %v7155_v18, %v4474_v17  ;;  %v3451_v38 = vpop.permute.xlu1 %3450  ;;  %v4124_v3 = vld [vmem:[#allocation3 + $0xc0] sm:$0xff] }
 0x56d   : > { %v4512_v25 = vadd.f32 %v7155_v18, %v4473_v16  ;;  %3519 = vst.msk [vmem:[#allocation3 + $0xd8] sm:$0xff] %vm1382_vm7, %v3451_v38  ;;  %5006 = vmatprep.mubr.msk.f32.mxu1 %vm2036_vm11, %v4124_v3  ;;  %v4023_v49 = vpop.permute.xlu0 %4022 }
 0x56e   : > { %v4577_v59 = vadd.f32 %v4545_v10, %v4513_v63  ;;  %4093 = vst.msk [vmem:[#allocation3 + $0xc8] sm:$0xff] %vm1962_vm10, %v4023_v49 }
 0x56f   : > { %v4576_v2 = vadd.f32 %v4544_v48, %v4512_v25 }
 0x570   : > { %v4609_v22 = vmax.f32 %v4577_v59, 0.0  ;;  %v3069_v35 = vpop.permute.xlu1 %3068 }
 0x571   : > { %v4608_v44 = vmax.f32 %v4576_v2, 0.0  ;;  %3136 = vst.msk [vmem:[#allocation3 + $0xe0] sm:$0xff] %vm996_vm5, %v3069_v35  ;;  %v3641_v47 = vpop.permute.xlu0 %3640 }
 0x572   : > { %4641 = vst.msk [vmem:[%s7172_s15 + $0x28] sm:$0xff] %vm279_vm0, %v4609_v22  ;;  %v4551_v22 = vld [vmem:[%s5186_s30 + $0x58] sm:$0xff] }
 0x573   : > { %3710 = vst.msk [vmem:[#allocation3 + $0xd0] sm:$0xff] %vm1576_vm8, %v3641_v47  ;;  %v4550_v47 = vld [vmem:[%s5186_s30 + $0x50] sm:$0xff] }
 0x574   : > { %4640 = vst.msk [vmem:[%s7172_s15 + $0x20] sm:$0xff] %vm279_vm0, %v4608_v44  ;;  %v3833_v55 = vpop.permute.xlu1 %3832 }
 0x575   : > { %3902 = vst.msk [vmem:[#allocation3 + $0xd0] sm:$0xff] %vm1769_vm9, %v3833_v55  ;;  %v3643_v29 = vpop.permute.xlu0 %3642  ;;  %v4125_v33 = vld [vmem:[#allocation3 + $0xc8] sm:$0xff] }
 0x576   : > { %3711 = vst.msk [vmem:[#allocation3 + $0xd8] sm:$0xff] %vm1576_vm8, %v3643_v29  ;;  %5007 = vmatmul.mubr.msk.f32.gmra.mrb[24].mxu1 %vm2036_vm11, %v4125_v33 }
 0x578   : > { %v3261_v7 = vpop.permute.xlu1 %3260 }
 0x579   : > { %3328 = vst.msk [vmem:[#allocation3 + $0xe0] sm:$0xff] %vm1189_vm6, %v3261_v7  ;;  %v3071_v34 = vpop.permute.xlu0 %3070 }
 0x57a   : > { %3137 = vst.msk [vmem:[#allocation3 + $0xe8] sm:$0xff] %vm996_vm5, %v3071_v34 }
 0x57c   : > { %v4025_v20 = vpop.permute.xlu1 %4024 }
 0x57d   : > { %4094 = vst.msk [vmem:[#allocation3 + $0xd0] sm:$0xff] %vm1962_vm10, %v4025_v20  ;;  %v4981_v27 = vpop.f32.mrb[6].mxu1  ;;  %v3835_v26 = vpop.permute.xlu0 %3834 }
 0x57e   : > { %v4476_v0 = vmul.f32 %v4981_v27, %v7149_v45  ;;  %3903 = vst.msk [vmem:[#allocation3 + $0xd8] sm:$0xff] %vm1769_vm9, %v3835_v26  ;;  %v4333_v1 = vpop.f32.mrb[7].mxu1 }
 0x57f   : > { %v4475_v54 = vmul.f32 %v7149_v45, %v4333_v1 }
 0x580   : > { %v4515_v14 = vadd.f32 %v7155_v18, %v4476_v0  ;;  %v3453_v5 = vpop.permute.xlu1 %3452 }
 0x581   : > { %v4514_v60 = vadd.f32 %v7155_v18, %v4475_v54  ;;  %3520 = vst.msk [vmem:[#allocation3 + $0xe0] sm:$0xff] %vm1382_vm7, %v3453_v5  ;;  %v3263_v62 = vpop.permute.xlu0 %3262 }
 0x582   : > { %v4579_v15 = vadd.f32 %v4547_v46, %v4515_v14  ;;  %3329 = vst.msk [vmem:[#allocation3 + $0xe8] sm:$0xff] %vm1189_vm6, %v3263_v62  ;;  %v4553_v14 = vld [vmem:[%s5186_s30 + $0x68] sm:$0xff] }
 0x583   : > { %v4578_v56 = vadd.f32 %v4546_v4, %v4514_v60  ;;  %v4552_v60 = vld [vmem:[%s5186_s30 + $0x60] sm:$0xff] }
 0x584   : > { %v4611_v9 = vmax.f32 %v4579_v15, 0.0  ;;  %v3455_v61 = vpop.permute.xlu1 %3454  ;;  %v4126_v23 = vld [vmem:[#allocation3 + $0xd0] sm:$0xff] }
 0x585   : > { %v4610_v19 = vmax.f32 %v4578_v56, 0.0  ;;  %3521 = vst.msk [vmem:[#allocation3 + $0xe8] sm:$0xff] %vm1382_vm7, %v3455_v61  ;;  %5009 = vmatprep.mubr.msk.f32.mxu1 %vm2036_vm11, %v4126_v23  ;;  %v4027_v28 = vpop.permute.xlu0 %4026 }
 0x586   : > { %4643 = vst.msk [vmem:[%s7172_s15 + $0x38] sm:$0xff] %vm279_vm0, %v4611_v9 }
 0x587   : > { %4095 = vst.msk [vmem:[#allocation3 + $0xd8] sm:$0xff] %vm1962_vm10, %v4027_v28 }
 0x588   : > { %4642 = vst.msk [vmem:[%s7172_s15 + $0x30] sm:$0xff] %vm279_vm0, %v4610_v19  ;;  %v3073_v24 = vpop.permute.xlu1 %3072 }
 0x589   : > { %3138 = vst.msk [vmem:[#allocation3 + $0xf0] sm:$0xff] %vm996_vm5, %v3073_v24  ;;  %v3645_v58 = vpop.permute.xlu0 %3644  ;;  %v4555_v24 = vld [vmem:[%s5186_s30 + $0x78] sm:$0xff] }
 0x58a   : > { %3712 = vst.msk [vmem:[#allocation3 + $0xe0] sm:$0xff] %vm1576_vm8, %v3645_v58 }
 0x58c   : > { %v3837_v51 = vpop.permute.xlu1 %3836 }
 0x58d   : > { %3904 = vst.msk [vmem:[#allocation3 + $0xe0] sm:$0xff] %vm1769_vm9, %v3837_v51  ;;  %v3647_v37 = vpop.permute.xlu0 %3646 }
 0x58e   : > { %v4127_v12 = vld [vmem:[#allocation3 + $0xd8] sm:$0xff]  ;;  %3713 = vst.msk [vmem:[#allocation3 + $0xe8] sm:$0xff] %vm1576_vm8, %v3647_v37  ;;  %v4554_v37 = vld [vmem:[%s5186_s30 + $0x70] sm:$0xff] }
 0x58f   : > { %5010 = vmatmul.mubr.msk.f32.gmra.mrb[26].mxu1 %vm2036_vm11, %v4127_v12 }
 0x590   : > { %v3265_v6 = vpop.permute.xlu1 %3264 }
 0x591   : > { %3330 = vst.msk [vmem:[#allocation3 + $0xf0] sm:$0xff] %vm1189_vm6, %v3265_v6  ;;  %v4984_v31 = vpop.f32.mrb[8].mxu1  ;;  %v3075_v32 = vpop.permute.xlu0 %3074 }
 0x592   : > { %v4478_v42 = vmul.f32 %v4984_v31, %v7149_v45  ;;  %3139 = vst.msk [vmem:[#allocation3 + $0xf8] sm:$0xff] %vm996_vm5, %v3075_v32  ;;  %v4343_v11 = vpop.f32.mrb[9].mxu1 }
 0x593   : > { %v4477_v8 = vmul.f32 %v7149_v45, %v4343_v11 }
 0x594   : > { %v4517_v41 = vadd.f32 %v7155_v18, %v4478_v42  ;;  %v4029_v39 = vpop.permute.xlu1 %4028 }
 0x595   : > { %v4516_v21 = vadd.f32 %v7155_v18, %v4477_v8  ;;  %4096 = vst.msk [vmem:[#allocation3 + $0xe0] sm:$0xff] %vm1962_vm10, %v4029_v39  ;;  %v3839_v57 = vpop.permute.xlu0 %3838 }
 0x596   : > { %v4581_v40 = vadd.f32 %v4549_v13, %v4517_v41  ;;  %3905 = vst.msk [vmem:[#allocation3 + $0xe8] sm:$0xff] %vm1769_vm9, %v3839_v57  ;;  %v4557_v41 = vld [vmem:[%s5186_s30 + $0x88] sm:$0xff] }
 0x597   : > { %v4580_v43 = vadd.f32 %v4548_v30, %v4516_v21  ;;  %v4556_v21 = vld [vmem:[%s5186_s30 + $0x80] sm:$0xff] }
 0x598   : > { %v4613_v52 = vmax.f32 %v4581_v40, 0.0  ;;  %v3457_v36 = vpop.permute.xlu1 %3456 }
 0x599   : > { %v4612_v50 = vmax.f32 %v4580_v43, 0.0  ;;  %3522 = vst.msk [vmem:[#allocation3 + $0xf0] sm:$0xff] %vm1382_vm7, %v3457_v36  ;;  %v3267_v17 = vpop.permute.xlu0 %3266 }
 0x59a   : > { %4645 = vst.msk [vmem:[%s7172_s15 + $0x48] sm:$0xff] %vm279_vm0, %v4613_v52 }
 0x59b   : > { %3331 = vst.msk [vmem:[#allocation3 + $0xf8] sm:$0xff] %vm1189_vm6, %v3267_v17 }
 0x59c   : > { %4644 = vst.msk [vmem:[%s7172_s15 + $0x40] sm:$0xff] %vm279_vm0, %v4612_v50  ;;  %v3459_v53 = vpop.permute.xlu1 %3458  ;;  %v4128_v10 = vld [vmem:[#allocation3 + $0xe0] sm:$0xff] }
 0x59d   : > { %3523 = vst.msk [vmem:[#allocation3 + $0xf8] sm:$0xff] %vm1382_vm7, %v3459_v53  ;;  %v4031_v16 = vpop.permute.xlu0 %4030  ;;  %5012 = vmatprep.mubr.msk.f32.mxu1 %vm2036_vm11, %v4128_v10  ;;  %v4559_v10 = vld [vmem:[%s5186_s30 + $0x98] sm:$0xff] }
 0x59e   : > { %4097 = vst.msk [vmem:[#allocation3 + $0xe8] sm:$0xff] %vm1962_vm10, %v4031_v16 }
 0x5a0   : > { %v3651_v63 = vpop.permute.xlu1 %3650 }
 0x5a1   : > { %v3649_v48 = vpop.permute.xlu0 %3648  ;;  %3715 = vst.msk [vmem:[#allocation3 + $0xf8] sm:$0xff] %vm1576_vm8, %v3651_v63 }
 0x5a2   : > { %3714 = vst.msk [vmem:[#allocation3 + $0xf0] sm:$0xff] %vm1576_vm8, %v3649_v48  ;;  %v4558_v48 = vld [vmem:[%s5186_s30 + $0x90] sm:$0xff] }
 0x5a4   : > { %v3843_v38 = vpop.permute.xlu1 %3842 }
 0x5a5   : > { %v4987_v3 = vpop.f32.mrb[10].mxu1  ;;  %v3841_v25 = vpop.permute.xlu0 %3840  ;;  %v4129_v49 = vld [vmem:[#allocation3 + $0xe8] sm:$0xff]  ;;  %3907 = vst.msk [vmem:[#allocation3 + $0xf8] sm:$0xff] %vm1769_vm9, %v3843_v38 }
 0x5a6   : > { %v4480_v59 = vmul.f32 %v4987_v3, %v7149_v45  ;;  %3906 = vst.msk [vmem:[#allocation3 + $0xf0] sm:$0xff] %vm1769_vm9, %v3841_v25  ;;  %v4353_v2 = vpop.f32.mrb[11].mxu1  ;;  %5013 = vmatmul.mubr.msk.f32.gmra.mrb[28].mxu1 %vm2036_vm11, %v4129_v49 }
 0x5a7   : > { %v4479_v35 = vmul.f32 %v7149_v45, %v4353_v2 }
 0x5a8   : > { %v4519_v44 = vadd.f32 %v7155_v18, %v4480_v59  ;;  %v4035_v55 = vpop.permute.xlu1 %4034 }
 0x5a9   : > { %v4518_v29 = vadd.f32 %v7155_v18, %v4479_v35  ;;  %v4033_v33 = vpop.permute.xlu0 %4032  ;;  %4099 = vst.msk [vmem:[#allocation3 + $0xf8] sm:$0xff] %vm1962_vm10, %v4035_v55 }
 0x5aa   : > { %v4583_v7 = vadd.f32 %v4551_v22, %v4519_v44  ;;  %4098 = vst.msk [vmem:[#allocation3 + $0xf0] sm:$0xff] %vm1962_vm10, %v4033_v33  ;;  %v4561_v44 = vld [vmem:[%s5186_s30 + $0xa8] sm:$0xff] }
 0x5ab   : > { %v4582_v34 = vadd.f32 %v4550_v47, %v4518_v29  ;;  %v4560_v29 = vld [vmem:[%s5186_s30 + $0xa0] sm:$0xff] }
 0x5ac   : > { %v4615_v20 = vmax.f32 %v4583_v7, 0.0 }
 0x5ad   : > { %v4614_v27 = vmax.f32 %v4582_v34, 0.0 }
 0x5ae   : > { %4647 = vst.msk [vmem:[%s7172_s15 + $0x58] sm:$0xff] %vm279_vm0, %v4615_v20 }
 0x5af   : > { %4646 = vst.msk [vmem:[%s7172_s15 + $0x50] sm:$0xff] %vm279_vm0, %v4614_v27 }
 0x5b0   : > { %v4131_v26 = vld [vmem:[#allocation3 + $0xf8] sm:$0xff] }
 0x5b1   : > { %v4130_v0 = vld [vmem:[#allocation3 + $0xf0] sm:$0xff] }
 0x5b2   : > { %5015 = vmatprep.mubr.msk.f32.mxu1 %vm2036_vm11, %v4130_v0 }
 0x5b3   : > { %5016 = vmatmul.mubr.msk.f32.gmra.mrb[30].mxu1 %vm2036_vm11, %v4131_v26 }
 0x5b9   : > { %v4990_v1 = vpop.f32.mrb[12].mxu1 }
 0x5ba   : > { %v4482_v46 = vmul.f32 %v4990_v1, %v7149_v45  ;;  %v4363_v54 = vpop.f32.mrb[13].mxu1 }
 0x5bb   : > { %v4481_v4 = vmul.f32 %v7149_v45, %v4363_v54 }
 0x5bc   : > { %v4521_v5 = vadd.f32 %v7155_v18, %v4482_v46  ;;  %v4563_v46 = vld [vmem:[%s5186_s30 + $0xb8] sm:$0xff] }
 0x5bd   : > { %v4520_v62 = vadd.f32 %v7155_v18, %v4481_v4  ;;  %v4562_v4 = vld [vmem:[%s5186_s30 + $0xb0] sm:$0xff] }
 0x5be   : > { %v4585_v15 = vadd.f32 %v4553_v14, %v4521_v5 }
 0x5bf   : > { %v4584_v56 = vadd.f32 %v4552_v60, %v4520_v62 }
 0x5c0   : > { %v4617_v9 = vmax.f32 %v4585_v15, 0.0 }
 0x5c1   : > { %v4616_v61 = vmax.f32 %v4584_v56, 0.0 }
 0x5c2   : > { %4649 = vst.msk [vmem:[%s7172_s15 + $0x68] sm:$0xff] %vm279_vm0, %v4617_v9 }
 0x5c3   : > { %4648 = vst.msk [vmem:[%s7172_s15 + $0x60] sm:$0xff] %vm279_vm0, %v4616_v61 }
 0x5d1   : > { %v4993_v23 = vpop.f32.mrb[14].mxu1 }
 0x5d2   : > { %v4484_v19 = vmul.f32 %v4993_v23, %v7149_v45  ;;  %v4373_v28 = vpop.f32.mrb[15].mxu1 }
 0x5d3   : > { %v4483_v58 = vmul.f32 %v7149_v45, %v4373_v28 }
 0x5d4   : > { %v4523_v51 = vadd.f32 %v7155_v18, %v4484_v19  ;;  %v4565_v19 = vld [vmem:[%s5186_s30 + $0xc8] sm:$0xff] }
 0x5d5   : > { %v4522_v12 = vadd.f32 %v7155_v18, %v4483_v58  ;;  %v4564_v58 = vld [vmem:[%s5186_s30 + $0xc0] sm:$0xff] }
 0x5d6   : > { %v4587_v6 = vadd.f32 %v4555_v24, %v4523_v51 }
 0x5d7   : > { %v4586_v31 = vadd.f32 %v4554_v37, %v4522_v12 }
 0x5d8   : > { %v4619_v32 = vmax.f32 %v4587_v6, 0.0 }
 0x5d9   : > { %v4618_v42 = vmax.f32 %v4586_v31, 0.0 }
 0x5da   : > { %4651 = vst.msk [vmem:[%s7172_s15 + $0x78] sm:$0xff] %vm279_vm0, %v4619_v32 }
 0x5db   : > { %4650 = vst.msk [vmem:[%s7172_s15 + $0x70] sm:$0xff] %vm279_vm0, %v4618_v42 }
 0x5e9   : > { %v4996_v11 = vpop.f32.mrb[16].mxu1 }
 0x5ea   : > { %v4486_v13 = vmul.f32 %v4996_v11, %v7149_v45  ;;  %v4383_v8 = vpop.f32.mrb[17].mxu1 }
 0x5eb   : > { %v4485_v30 = vmul.f32 %v7149_v45, %v4383_v8 }
 0x5ec   : > { %v4525_v39 = vadd.f32 %v7155_v18, %v4486_v13  ;;  %v4567_v13 = vld [vmem:[%s5186_s30 + $0xd8] sm:$0xff] }
 0x5ed   : > { %v4524_v57 = vadd.f32 %v7155_v18, %v4485_v30  ;;  %v4566_v30 = vld [vmem:[%s5186_s30 + $0xd0] sm:$0xff] }
 0x5ee   : > { %v4589_v40 = vadd.f32 %v4557_v41, %v4525_v39 }
 0x5ef   : > { %v4588_v43 = vadd.f32 %v4556_v21, %v4524_v57 }
 0x5f0   : > { %v4621_v52 = vmax.f32 %v4589_v40, 0.0 }
 0x5f1   : > { %v4620_v36 = vmax.f32 %v4588_v43, 0.0 }
 0x5f2   : > { %4653 = vst.msk [vmem:[%s7172_s15 + $0x88] sm:$0xff] %vm279_vm0, %v4621_v52 }
 0x5f3   : > { %4652 = vst.msk [vmem:[%s7172_s15 + $0x80] sm:$0xff] %vm279_vm0, %v4620_v36 }
 0x601   : > { %v4999_v50 = vpop.f32.mrb[18].mxu1 }
 0x602   : > { %v4488_v17 = vmul.f32 %v4999_v50, %v7149_v45  ;;  %v4393_v53 = vpop.f32.mrb[19].mxu1 }
 0x603   : > { %v4487_v16 = vmul.f32 %v7149_v45, %v4393_v53 }
 0x604   : > { %v4527_v63 = vadd.f32 %v7155_v18, %v4488_v17  ;;  %v4569_v17 = vld [vmem:[%s5186_s30 + $0xe8] sm:$0xff] }
 0x605   : > { %v4526_v38 = vadd.f32 %v7155_v18, %v4487_v16  ;;  %v4568_v16 = vld [vmem:[%s5186_s30 + $0xe0] sm:$0xff] }
 0x606   : > { %v4591_v3 = vadd.f32 %v4559_v10, %v4527_v63 }
 0x607   : > { %v4590_v25 = vadd.f32 %v4558_v48, %v4526_v38 }
 0x608   : > { %v4623_v49 = vmax.f32 %v4591_v3, 0.0 }
 0x609   : > { %v4622_v59 = vmax.f32 %v4590_v25, 0.0 }
 0x60a   : > { %4655 = vst.msk [vmem:[%s7172_s15 + $0x98] sm:$0xff] %vm279_vm0, %v4623_v49 }
 0x60b   : > { %4654 = vst.msk [vmem:[%s7172_s15 + $0x90] sm:$0xff] %vm279_vm0, %v4622_v59 }
 0x619   : > { %v5002_v2 = vpop.f32.mrb[20].mxu1 }
 0x61a   : > { %v4490_v22 = vmul.f32 %v5002_v2, %v7149_v45  ;;  %v4403_v35 = vpop.f32.mrb[21].mxu1 }
 0x61b   : > { %v4489_v47 = vmul.f32 %v7149_v45, %v4403_v35 }
 0x61c   : > { %v4529_v55 = vadd.f32 %v7155_v18, %v4490_v22  ;;  %v4571_v22 = vld [vmem:[%s5186_s30 + $0xf8] sm:$0xff] }
 0x61d   : > { %v4528_v33 = vadd.f32 %v7155_v18, %v4489_v47  ;;  %v4570_v47 = vld [vmem:[%s5186_s30 + $0xf0] sm:$0xff] }
 0x61e   : > { %v4593_v7 = vadd.f32 %v4561_v44, %v4529_v55 }
 0x61f   : > { %v4592_v34 = vadd.f32 %v4560_v29, %v4528_v33 }
 0x620   : > { %v4625_v20 = vmax.f32 %v4593_v7, 0.0 }
 0x621   : > { %v4624_v27 = vmax.f32 %v4592_v34, 0.0 }
 0x622   : > { %4657 = vst.msk [vmem:[%s7172_s15 + $0xa8] sm:$0xff] %vm279_vm0, %v4625_v20 }
 0x623   : > { %4656 = vst.msk [vmem:[%s7172_s15 + $0xa0] sm:$0xff] %vm279_vm0, %v4624_v27 }
 0x631   : > { %v5005_v26 = vpop.f32.mrb[22].mxu1 }
 0x632   : > { %v4492_v0 = vmul.f32 %v5005_v26, %v7149_v45  ;;  %v4413_v1 = vpop.f32.mrb[23].mxu1 }
 0x633   : > { %v4491_v54 = vmul.f32 %v7149_v45, %v4413_v1 }
 0x634   : > { %v4531_v14 = vadd.f32 %v7155_v18, %v4492_v0 }
 0x635   : > { %v4530_v5 = vadd.f32 %v7155_v18, %v4491_v54 }
 0x636   : > { %v4595_v60 = vadd.f32 %v4563_v46, %v4531_v14 }
 0x637   : > { %v4594_v62 = vadd.f32 %v4562_v4, %v4530_v5 }
 0x638   : > { %v4627_v15 = vmax.f32 %v4595_v60, 0.0 }
 0x639   : > { %v4626_v56 = vmax.f32 %v4594_v62, 0.0 }
 0x63a   : > { %4659 = vst.msk [vmem:[%s7172_s15 + $0xb8] sm:$0xff] %vm279_vm0, %v4627_v15 }
 0x63b   : > { %4658 = vst.msk [vmem:[%s7172_s15 + $0xb0] sm:$0xff] %vm279_vm0, %v4626_v56 }
 0x649   : > { %v5008_v9 = vpop.f32.mrb[24].mxu1 }
 0x64a   : > { %v4494_v61 = vmul.f32 %v5008_v9, %v7149_v45  ;;  %v4423_v23 = vpop.f32.mrb[25].mxu1 }
 0x64b   : > { %v4493_v28 = vmul.f32 %v7149_v45, %v4423_v23 }
 0x64c   : > { %v4533_v24 = vadd.f32 %v7155_v18, %v4494_v61 }
 0x64d   : > { %v4532_v51 = vadd.f32 %v7155_v18, %v4493_v28 }
 0x64e   : > { %v4597_v37 = vadd.f32 %v4565_v19, %v4533_v24 }
 0x64f   : > { %v4596_v12 = vadd.f32 %v4564_v58, %v4532_v51 }
 0x650   : > { %v4629_v6 = vmax.f32 %v4597_v37, 0.0 }
 0x651   : > { %v4628_v31 = vmax.f32 %v4596_v12, 0.0 }
 0x652   : > { %4661 = vst.msk [vmem:[%s7172_s15 + $0xc8] sm:$0xff] %vm279_vm0, %v4629_v6 }
 0x653   : > { %4660 = vst.msk [vmem:[%s7172_s15 + $0xc0] sm:$0xff] %vm279_vm0, %v4628_v31 }
 0x662   : > { %v5011_v32 = vpop.f32.mrb[26].mxu1 }
 0x663   : > { %v4496_v42 = vmul.f32 %v5011_v32, %v7149_v45  ;;  %v4433_v11 = vpop.f32.mrb[27].mxu1 }
 0x664   : > { %v4495_v8 = vmul.f32 %v7149_v45, %v4433_v11 }
 0x665   : > { %v4535_v41 = vadd.f32 %v7155_v18, %v4496_v42 }
 0x666   : > { %v4534_v39 = vadd.f32 %v7155_v18, %v4495_v8 }
 0x667   : > { %v4599_v21 = vadd.f32 %v4567_v13, %v4535_v41 }
 0x668   : > { %v4598_v57 = vadd.f32 %v4566_v30, %v4534_v39 }
 0x669   : > { %v4631_v40 = vmax.f32 %v4599_v21, 0.0 }
 0x66a   : > { %v4630_v43 = vmax.f32 %v4598_v57, 0.0 }
 0x66b   : > { %4663 = vst.msk [vmem:[%s7172_s15 + $0xd8] sm:$0xff] %vm279_vm0, %v4631_v40 }
 0x66c   : > { %4662 = vst.msk [vmem:[%s7172_s15 + $0xd0] sm:$0xff] %vm279_vm0, %v4630_v43 }
 0x679   : > { %v5014_v52 = vpop.f32.mrb[28].mxu1 }
 0x67a   : > { %v4498_v36 = vmul.f32 %v5014_v52, %v7149_v45  ;;  %v4443_v50 = vpop.f32.mrb[29].mxu1 }
 0x67b   : > { %v4497_v53 = vmul.f32 %v7149_v45, %v4443_v50 }
 0x67c   : > { %v4537_v10 = vadd.f32 %v7155_v18, %v4498_v36 }
 0x67d   : > { %v4536_v63 = vadd.f32 %v7155_v18, %v4497_v53 }
 0x67e   : > { %v4601_v48 = vadd.f32 %v4569_v17, %v4537_v10 }
 0x67f   : > { %v4600_v38 = vadd.f32 %v4568_v16, %v4536_v63 }
 0x680   : > { %v4633_v3 = vmax.f32 %v4601_v48, 0.0 }
 0x681   : > { %v4632_v25 = vmax.f32 %v4600_v38, 0.0 }
 0x682   : > { %4665 = vst.msk [vmem:[%s7172_s15 + $0xe8] sm:$0xff] %vm279_vm0, %v4633_v3 }
 0x683   : > { %4664 = vst.msk [vmem:[%s7172_s15 + $0xe0] sm:$0xff] %vm279_vm0, %v4632_v25 }
 0x686   : > { %v5017_v49 = vpop.f32.mrb[30].mxu1 }
 0x687   : > { %v4500_v59 = vmul.f32 %v5017_v49, %v7149_v45  ;;  %v4453_v2 = vpop.f32.mrb[31].mxu1 }
 0x688   : > { %v4499_v35 = vmul.f32 %v7149_v45, %v4453_v2 }
 0x689   : > { %v4539_v44 = vadd.f32 %v7155_v18, %v4500_v59 }
 0x68a   : > { %v4538_v55 = vadd.f32 %v7155_v18, %v4499_v35 }
 0x68b   : > { %v4603_v29 = vadd.f32 %v4571_v22, %v4539_v44 }
 0x68c   : > { %v4602_v33 = vadd.f32 %v4570_v47, %v4538_v55 }
 0x68d   : > { %v4635_v7 = vmax.f32 %v4603_v29, 0.0 }
 0x68e   : > { %v4634_v34 = vmax.f32 %v4602_v33, 0.0 }
 0x68f   : > { %4667 = vst.msk [vmem:[%s7172_s15 + $0xf8] sm:$0xff] %vm279_vm0, %v4635_v7 }
 0x690   : > { %4666 = vst.msk [vmem:[%s7172_s15 + $0xf0] sm:$0xff] %vm279_vm0, %v4634_v34 }
 0x691 PF: > { %s17_s24 = sadd.s32 1, %s5073_s24  }
 0x692   : > { %p14_p4 = scmp.ge.s32.totalorder %s17_s24, 4  }
 0x694   :  { %16 = sbr.rel (!%p14_p4) target bundleno = 1 (0x1), region = 81 }

</bundles_post_ra>
